<compile_context>
chip_gen: v7x
topology: tpu7x:2x2x1
jax: 0.10.0
libtpu: 0.0.40
codegen_flags: <defaults>
</compile_context>

<pallas_src>
import math
import jax
import jax.numpy as jnp
from jax.experimental import pallas as pl
from jax.experimental.pallas import tpu as pltpu

# ---- model hyper-parameters (small, consistent with the module) --------------
D_MODEL = 32
NHEAD = 4
HEAD_DIM = D_MODEL // NHEAD
DIM_FF = 64
NUM_LAYERS = 2
VOCAB = 64
MAX_LEN = 64
EPS = 1e-5
LANES = 128
NEG_INF = -1e30

T_LEN = 8     # target sequence length
S_LEN = 12    # memory (encoder) sequence length
BATCH = 2


# ------------------------------ fused kernel ----------------------------------
def _make_fused_kernel(n_batch, t_len, s_len):
    R = n_batch * t_len        # flattened target rows (row = n*T + t)
    C = n_batch * s_len        # flattened memory rows (row = n*S + s)
    E = D_MODEL
    scale = 1.0 / math.sqrt(HEAD_DIM)   # python scalars only are closed over
    sqrt_d = math.sqrt(D_MODEL)

    def kernel(tok_ref, const_ref, mem_ref, emb_ref, aw_ref, ab_ref,
               w1_ref, w2_ref, small_ref, fct_ref, out_ref):
        f32 = jnp.float32

        def layer_norm(y, g, b):
            mu = jnp.mean(y, axis=-1, keepdims=True)
            var = jnp.mean((y - mu) * (y - mu), axis=-1, keepdims=True)
            return (y - mu) * jax.lax.rsqrt(var + EPS) * g + b

        def softmax(s):
            s = s - jnp.max(s, axis=-1, keepdims=True)
            p = jnp.exp(s)
            return p * pl.reciprocal(jnp.sum(p, axis=-1, keepdims=True), approx=True)

        def attend(blk, q_src, kv_src, add_mask, fused_qkv):
            # Packed weights: lanes [0:32]=Wq, [32:64]=Wk, [64:96]=Wv, [96:128]=Wo.
            w = aw_ref[blk]                       # (E, 128)
            b = ab_ref[blk:blk + 1, :]            # (1, 128)
            if fused_qkv:                         # self-attn: one QKV matmul
                qkv = (jnp.dot(q_src, w[:, 0:3 * E], preferred_element_type=f32)
                       + b[:, 0:3 * E])
                q, k, v = qkv[:, 0:E], qkv[:, E:2 * E], qkv[:, 2 * E:3 * E]
            else:                                 # cross-attn: Q + fused KV
                q = jnp.dot(q_src, w[:, 0:E], preferred_element_type=f32) + b[:, 0:E]
                kv = (jnp.dot(kv_src, w[:, E:3 * E], preferred_element_type=f32)
                      + b[:, E:3 * E])
                k, v = kv[:, 0:E], kv[:, E:2 * E]
            heads = []
            for h in range(NHEAD):
                lo, hi = h * HEAD_DIM, (h + 1) * HEAD_DIM
                s = jnp.einsum('rd,sd->rs', q[:, lo:hi], k[:, lo:hi],
                               preferred_element_type=f32) * scale + add_mask
                heads.append(jnp.dot(softmax(s), v[:, lo:hi],
                                     preferred_element_type=f32))
            o = jnp.concatenate(heads, axis=1)    # (R, E)
            return (jnp.dot(o, w[:, 3 * E:4 * E], preferred_element_type=f32)
                    + b[:, 3 * E:4 * E])

        # ---- host-baked constants sliced from one buffer ----------------------
        pe = const_ref[:, 0:E]                    # (R, E)  batch-tiled PE slab
        self_mask = const_ref[:, E:E + R]         # (R, R)  causal + block-diag
        cross_mask = const_ref[:, E + R:E + R + C]  # (R, C)  block-diag only

        # ---- embedding: vectorized one-hot + MXU gather, scale, add PE --------
        lane_ids = jax.lax.broadcasted_iota(jnp.int32, (R, VOCAB), 1)
        onehot = (tok_ref[...] == lane_ids).astype(f32)                 # (R, V)
        x = jnp.dot(onehot, emb_ref[...], preferred_element_type=f32) * sqrt_d + pe
        mem = mem_ref[...]                                              # (C, E)
        # NOTE: pos_enc / decoder-layer dropouts are identity in eval mode.

        # ---- decoder layers (post-norm, nn.TransformerDecoderLayer default) ---
        for l in range(NUM_LAYERS):
            r0, r1, r2 = 3 * l, 3 * l + 1, 3 * l + 2
            # self-attention block
            x = layer_norm(x + attend(2 * l + 0, x, x, self_mask, True),
                           small_ref[r0:r0 + 1, 0:E], small_ref[r0:r0 + 1, E:2 * E])
            # cross-attention block
            x = layer_norm(x + attend(2 * l + 1, x, mem, cross_mask, False),
                           small_ref[r0:r0 + 1, 2 * E:3 * E],
                           small_ref[r0:r0 + 1, 3 * E:4 * E])
            # feed-forward block
            h = jnp.maximum(jnp.dot(x, w1_ref[l], preferred_element_type=f32)
                            + small_ref[r2:r2 + 1, 0:DIM_FF], 0.0)
            f = (jnp.dot(h, w2_ref[l], preferred_element_type=f32)
                 + small_ref[r1:r1 + 1, 2 * E:3 * E])
            x = layer_norm(x + f, small_ref[r1:r1 + 1, 0:E],
                           small_ref[r1:r1 + 1, E:2 * E])

        # ---- final decoder LayerNorm + fc head (128-lane padded store) --------
        rf = 3 * NUM_LAYERS
        x = layer_norm(x, small_ref[rf:rf + 1, 0:E], small_ref[rf:rf + 1, E:2 * E])
        out_ref[...] = (jnp.dot(x, fct_ref[...], preferred_element_type=f32)
                        + small_ref[rf + 1:rf + 2, :])

    return kernel


# ------------------------------ forward wrapper --------------------------------
def decoder_vgg_trans_forward(tgt, memory, tgt_mask, kp):
    """tgt: (T, N) int32 tokens; memory: (S, N, E) f32; tgt_mask: (T, T) additive.
    Returns (N, T, VOCAB), matching self.fc(de_out.transpose(0, 1))."""
    T, N = tgt.shape
    S = memory.shape[0]
    R, C = N * T, N * S

    # Host-side prep (tiny XLA ops that fuse): flatten batch-major, bake constants.
    tok = jnp.transpose(tgt).reshape(R, 1).astype(jnp.int32)            # (R, 1)
    mem2d = jnp.transpose(memory, (1, 0, 2)).reshape(C, D_MODEL)        # (C, E)
    pe_slab = jnp.tile(kp["pe"][:T, :], (N, 1))                         # (R, E)
    rb = jnp.repeat(jnp.arange(N, dtype=jnp.int32), T)                  # (R,)
    cb = jnp.repeat(jnp.arange(N, dtype=jnp.int32), S)                  # (C,)
    self_mask = jnp.where(rb[:, None] == rb[None, :],
                          jnp.tile(tgt_mask.astype(jnp.float32), (N, N)),
                          jnp.float32(NEG_INF))                         # (R, R)
    cross_mask = jnp.where(rb[:, None] == cb[None, :],
                           jnp.float32(0.0), jnp.float32(NEG_INF))      # (R, C)
    const_buf = jnp.concatenate([pe_slab, self_mask, cross_mask], axis=1)

    kernel = _make_fused_kernel(N, T, S)
    vmem = pl.BlockSpec(memory_space=pltpu.MemorySpace.VMEM)

    out2d = pl.pallas_call(
        kernel,
        out_shape=jax.ShapeDtypeStruct((R, LANES), jnp.float32),
        in_specs=[vmem] * 10,
        out_specs=vmem,
    )(tok, const_buf, mem2d, kp["emb"], kp["aw"], kp["ab"],
      kp["w1"], kp["w2"], kp["small"], kp["fct"])
    return out2d[:, :VOCAB].reshape(N, T, VOCAB)


# ------------------------------ parameter packing -------------------------------
def pack_params(p):
    """One-time host-side prep: fuse + pre-transpose every weight into lane-dense
    (>=32-lane, mostly 128-lane) buffers so the kernel never transposes anything."""
    E, F = D_MODEL, DIM_FF
    aw_blocks, ab_blocks = [], []
    w1_l, w2_l = [], []
    small_rows = []
    z32 = jnp.zeros((E,), jnp.float32)
    z64 = jnp.zeros((F,), jnp.float32)

    for (aw, ab, lng, lnb, w1, b1, w2, b2) in p["layers"]:
        for a in range(2):                         # 0 = self-attn, 1 = cross-attn
            # PyTorch (out, in) weights -> pre-transposed, packed [Wq|Wk|Wv|Wo].
            aw_blocks.append(jnp.concatenate(
                [jnp.transpose(aw[a, 0]), jnp.transpose(aw[a, 1]),
                 jnp.transpose(aw[a, 2]), jnp.transpose(aw[a, 3])], axis=1))  # (E,128)
            ab_blocks.append(jnp.concatenate(
                [ab[a, 0], ab[a, 1], ab[a, 2], ab[a, 3]], axis=0))            # (128,)
        # packed per-layer small params (each row = 128 lanes)
        small_rows.append(jnp.concatenate([lng[0], lnb[0], lng[1], lnb[1]]))  # LN1,LN2
        small_rows.append(jnp.concatenate([lng[2], lnb[2], b2.reshape(-1), z32]))  # LN3,b2
        small_rows.append(jnp.concatenate([b1.reshape(-1), z64]))             # b1
        w1_l.append(jnp.transpose(w1))             # (E, F)
        w2_l.append(jnp.transpose(w2))             # (F, E)

    small_rows.append(jnp.concatenate([p["lnf_g"].reshape(-1),
                                       p["lnf_b"].reshape(-1), z32, z32]))    # final LN
    small_rows.append(jnp.concatenate([p["fc_b"].reshape(-1),
                                       jnp.zeros((LANES - VOCAB,), jnp.float32)]))  # fc bias
    fct = jnp.concatenate([jnp.transpose(p["fc_w"]),
                           jnp.zeros((E, LANES - VOCAB), jnp.float32)], axis=1)

    return {
        "pe": p["pe"],                             # (MAX_LEN, E)
        "emb": p["embed"],                         # (VOCAB, E)
        "aw": jnp.stack(aw_blocks),                # (2L, E, 128)
        "ab": jnp.stack(ab_blocks),                # (2L, 128)
        "w1": jnp.stack(w1_l),                     # (L, E, F)
        "w2": jnp.stack(w2_l),                     # (L, F, E)
        "small": jnp.stack(small_rows),            # (3L+2, 128) == (8, 128)
        "fct": fct,                                # (E, 128), lanes >= VOCAB zero
    }


# ------------------------------ deterministic init ------------------------------
def sinusoidal_pe(max_len, d_model):
    pos = jnp.arange(max_len, dtype=jnp.float32)[:, None]
    div = jnp.exp(jnp.arange(0, d_model, 2, dtype=jnp.float32)
                  * (-math.log(10000.0) / d_model))
    pe = jnp.zeros((max_len, d_model), jnp.float32)
    pe = pe.at[:, 0::2].set(jnp.sin(pos * div))
    pe = pe.at[:, 1::2].set(jnp.cos(pos * div))
    return pe


def causal_mask(T):
    i = jnp.arange(T)[:, None]
    j = jnp.arange(T)[None, :]
    return jnp.where(j > i, jnp.float32(NEG_INF), jnp.float32(0.0))


def init_params(key):
    def nrm(k, shape, scale=0.05):
        return jax.random.normal(k, shape, jnp.float32) * scale

    keys = iter(jax.random.split(key, 8 + 8 * NUM_LAYERS))
    params = {
        "embed": nrm(next(keys), (VOCAB, D_MODEL), 1.0),
        "pe": sinusoidal_pe(MAX_LEN, D_MODEL),
        "lnf_g": jnp.ones((1, D_MODEL), jnp.float32),
        "lnf_b": jnp.zeros((1, D_MODEL), jnp.float32),
        "fc_w": nrm(next(keys), (VOCAB, D_MODEL)),
        "fc_b": jnp.zeros((1, VOCAB), jnp.float32),
        "layers": [],
    }
    for _ in range(NUM_LAYERS):
        aw = nrm(next(keys), (2, 4, D_MODEL, D_MODEL))   # [self/cross][q,k,v,o]
        ab = nrm(next(keys), (2, 4, D_MODEL), 0.01)
        lng = jnp.ones((3, D_MODEL), jnp.float32)
        lnb = jnp.zeros((3, D_MODEL), jnp.float32)
        w1 = nrm(next(keys), (DIM_FF, D_MODEL))
        b1 = nrm(next(keys), (1, DIM_FF), 0.01)
        w2 = nrm(next(keys), (D_MODEL, DIM_FF))
        b2 = nrm(next(keys), (1, D_MODEL), 0.01)
        params["layers"].append((aw, ab, lng, lnb, w1, b1, w2, b2))
    return params


# ------------------------------ main ---------------------------------------------
if __name__ == "__main__":
    root = jax.random.PRNGKey(0)
    k_par, k_tok, k_mem = jax.random.split(root, 3)

    params = init_params(k_par)
    kparams = pack_params(params)   # one-time host-side weight prep

    tgt = jax.random.randint(k_tok, (T_LEN, BATCH), 0, VOCAB, dtype=jnp.int32)
    memory = jax.random.normal(k_mem, (S_LEN, BATCH, D_MODEL), jnp.float32) * 0.1
    tgt_mask = causal_mask(T_LEN)

    fwd = jax.jit(decoder_vgg_trans_forward)
    out = jax.block_until_ready(fwd(tgt, memory, tgt_mask, kparams))

    assert out.shape == (BATCH, T_LEN, VOCAB), out.shape
    assert bool(jnp.all(jnp.isfinite(out)))
    print("KERNEL_OK")
</pallas_src>

<mosaic_0001>
module attributes {stable_mosaic.version = 11 : i64} {
  func.func @kernel(%arg0: memref<16x1xi32, #tpu.memory_space<vmem>>, %arg1: memref<16x72xf32, #tpu.memory_space<vmem>>, %arg2: memref<24x32xf32, #tpu.memory_space<vmem>>, %arg3: memref<64x32xf32, #tpu.memory_space<vmem>>, %arg4: memref<4x32x128xf32, #tpu.memory_space<vmem>>, %arg5: memref<4x128xf32, #tpu.memory_space<vmem>>, %arg6: memref<2x32x64xf32, #tpu.memory_space<vmem>>, %arg7: memref<2x64x32xf32, #tpu.memory_space<vmem>>, %arg8: memref<8x128xf32, #tpu.memory_space<vmem>>, %arg9: memref<32x128xf32, #tpu.memory_space<vmem>>, %arg10: memref<16x128xf32, #tpu.memory_space<vmem>>) attributes {dimension_semantics = [], scalar_prefetch = 0 : i64, scratch_operands = 0 : i64, tpu.core_type = #tpu.core_type<tc>} {
    %c0 = arith.constant 0 : index
    %c0_0 = arith.constant 0 : index
    %0 = vector.load %arg1[%c0, %c0_0] : memref<16x72xf32, #tpu.memory_space<vmem>>, vector<16x32xf32>
    %c0_1 = arith.constant 0 : index
    %c32 = arith.constant 32 : index
    %1 = vector.load %arg1[%c0_1, %c32] : memref<16x72xf32, #tpu.memory_space<vmem>>, vector<16x16xf32>
    %c0_2 = arith.constant 0 : index
    %c48 = arith.constant 48 : index
    %2 = vector.load %arg1[%c0_2, %c48] : memref<16x72xf32, #tpu.memory_space<vmem>>, vector<16x24xf32>
    %3 = tpu.iota {dimensions = array<i32: 1>} : vector<16x64xi32>
    %c0_3 = arith.constant 0 : index
    %c0_4 = arith.constant 0 : index
    %4 = vector.load %arg0[%c0_3, %c0_4] : memref<16x1xi32, #tpu.memory_space<vmem>>, vector<16x1xi32>
    %5 = vector.broadcast %4 : vector<16x1xi32> to vector<16x64xi32>
    %6 = arith.cmpi eq, %5, %3 : vector<16x64xi32>
    %7 = arith.extui %6 : vector<16x64xi1> to vector<16x64xi32>
    %8 = arith.sitofp %7 : vector<16x64xi32> to vector<16x64xf32>
    %c0_5 = arith.constant 0 : index
    %c0_6 = arith.constant 0 : index
    %9 = vector.load %arg3[%c0_5, %c0_6] : memref<64x32xf32, #tpu.memory_space<vmem>>, vector<64x32xf32>
    %cst = arith.constant dense<0.000000e+00> : vector<16x32xf32>
    %10 = tpu.matmul %8, %9, %cst {dimension_numbers = #tpu.dot_dimension_numbers<[1], [0], [0], [1], [0, 0, 1, 1], [], []>} : vector<16x64xf32>, vector<64x32xf32>, vector<16x32xf32> -> vector<16x32xf32>
    %cst_7 = arith.constant 5.65685415 : f32
    %11 = vector.broadcast %cst_7 : f32 to vector<16x32xf32>
    %12 = arith.mulf %10, %11 : vector<16x32xf32>
    %13 = arith.addf %12, %0 : vector<16x32xf32>
    %c0_8 = arith.constant 0 : index
    %c0_9 = arith.constant 0 : index
    %14 = vector.load %arg2[%c0_8, %c0_9] : memref<24x32xf32, #tpu.memory_space<vmem>>, vector<24x32xf32>
    %c0_10 = arith.constant 0 : index
    %c0_11 = arith.constant 0 : index
    %c0_12 = arith.constant 0 : index
    %15 = vector.load %arg4[%c0_10, %c0_11, %c0_12] : memref<4x32x128xf32, #tpu.memory_space<vmem>>, vector<1x32x128xf32>
    %16 = vector.shape_cast %15 : vector<1x32x128xf32> to vector<32x128xf32>
    %c0_13 = arith.constant 0 : index
    %c0_14 = arith.constant 0 : index
    %17 = vector.load %arg5[%c0_13, %c0_14] : memref<4x128xf32, #tpu.memory_space<vmem>>, vector<1x128xf32>
    %18 = vector.extract_strided_slice %16 {offsets = [0, 0], sizes = [32, 96], strides = [1, 1]} : vector<32x128xf32> to vector<32x96xf32>
    %cst_15 = arith.constant dense<0.000000e+00> : vector<16x96xf32>
    %19 = tpu.matmul %13, %18, %cst_15 {dimension_numbers = #tpu.dot_dimension_numbers<[1], [0], [0], [1], [0, 0, 1, 1], [], []>} : vector<16x32xf32>, vector<32x96xf32>, vector<16x96xf32> -> vector<16x96xf32>
    %20 = vector.extract_strided_slice %17 {offsets = [0, 0], sizes = [1, 96], strides = [1, 1]} : vector<1x128xf32> to vector<1x96xf32>
    %21 = vector.broadcast %20 : vector<1x96xf32> to vector<16x96xf32>
    %22 = arith.addf %19, %21 : vector<16x96xf32>
    %23 = vector.extract_strided_slice %22 {offsets = [0, 0], sizes = [16, 32], strides = [1, 1]} : vector<16x96xf32> to vector<16x32xf32>
    %24 = vector.extract_strided_slice %22 {offsets = [0, 32], sizes = [16, 32], strides = [1, 1]} : vector<16x96xf32> to vector<16x32xf32>
    %25 = vector.extract_strided_slice %22 {offsets = [0, 64], sizes = [16, 32], strides = [1, 1]} : vector<16x96xf32> to vector<16x32xf32>
    %26 = vector.extract_strided_slice %23 {offsets = [0, 0], sizes = [16, 8], strides = [1, 1]} : vector<16x32xf32> to vector<16x8xf32>
    %27 = vector.extract_strided_slice %24 {offsets = [0, 0], sizes = [16, 8], strides = [1, 1]} : vector<16x32xf32> to vector<16x8xf32>
    "tpu.trace_start"() <{level = 10 : i32, message = "rd,sd->rs"}> : () -> ()
    %cst_16 = arith.constant dense<0.000000e+00> : vector<16x16xf32>
    %28 = tpu.matmul %26, %27, %cst_16 {dimension_numbers = #tpu.dot_dimension_numbers<[1], [1], [0], [0], [0, 0, 1, 0], [], []>} : vector<16x8xf32>, vector<16x8xf32>, vector<16x16xf32> -> vector<16x16xf32>
    "tpu.trace_stop"() : () -> ()
    %cst_17 = arith.constant 0.353553385 : f32
    %29 = vector.broadcast %cst_17 : f32 to vector<16x16xf32>
    %30 = arith.mulf %28, %29 : vector<16x16xf32>
    %31 = arith.addf %30, %1 : vector<16x16xf32>
    %cst_18 = arith.constant dense<0xFF800000> : vector<16xf32>
    %32 = vector.multi_reduction <maximumf>, %31, %cst_18 [1] : vector<16x16xf32> to vector<16xf32>
    %33 = vector.shape_cast %32 : vector<16xf32> to vector<16x1xf32>
    %34 = vector.broadcast %33 : vector<16x1xf32> to vector<16x16xf32>
    %35 = arith.subf %31, %34 : vector<16x16xf32>
    %36 = math.exp %35 : vector<16x16xf32>
    %cst_19 = arith.constant dense<0.000000e+00> : vector<16xf32>
    %37 = vector.multi_reduction <add>, %36, %cst_19 [1] : vector<16x16xf32> to vector<16xf32>
    %38 = vector.shape_cast %37 : vector<16xf32> to vector<16x1xf32>
    %39 = tpu.reciprocal %38 {approx = true} : vector<16x1xf32> -> vector<16x1xf32>
    %40 = vector.broadcast %39 : vector<16x1xf32> to vector<16x16xf32>
    %41 = arith.mulf %36, %40 : vector<16x16xf32>
    %42 = vector.extract_strided_slice %25 {offsets = [0, 0], sizes = [16, 8], strides = [1, 1]} : vector<16x32xf32> to vector<16x8xf32>
    %cst_20 = arith.constant dense<0.000000e+00> : vector<16x8xf32>
    %43 = tpu.matmul %41, %42, %cst_20 {dimension_numbers = #tpu.dot_dimension_numbers<[1], [0], [0], [1], [0, 0, 1, 1], [], []>} : vector<16x16xf32>, vector<16x8xf32>, vector<16x8xf32> -> vector<16x8xf32>
    %44 = vector.extract_strided_slice %23 {offsets = [0, 8], sizes = [16, 8], strides = [1, 1]} : vector<16x32xf32> to vector<16x8xf32>
    %45 = vector.extract_strided_slice %24 {offsets = [0, 8], sizes = [16, 8], strides = [1, 1]} : vector<16x32xf32> to vector<16x8xf32>
    "tpu.trace_start"() <{level = 10 : i32, message = "rd,sd->rs"}> : () -> ()
    %cst_21 = arith.constant dense<0.000000e+00> : vector<16x16xf32>
    %46 = tpu.matmul %44, %45, %cst_21 {dimension_numbers = #tpu.dot_dimension_numbers<[1], [1], [0], [0], [0, 0, 1, 0], [], []>} : vector<16x8xf32>, vector<16x8xf32>, vector<16x16xf32> -> vector<16x16xf32>
    "tpu.trace_stop"() : () -> ()
    %cst_22 = arith.constant 0.353553385 : f32
    %47 = vector.broadcast %cst_22 : f32 to vector<16x16xf32>
    %48 = arith.mulf %46, %47 : vector<16x16xf32>
    %49 = arith.addf %48, %1 : vector<16x16xf32>
    %cst_23 = arith.constant dense<0xFF800000> : vector<16xf32>
    %50 = vector.multi_reduction <maximumf>, %49, %cst_23 [1] : vector<16x16xf32> to vector<16xf32>
    %51 = vector.shape_cast %50 : vector<16xf32> to vector<16x1xf32>
    %52 = vector.broadcast %51 : vector<16x1xf32> to vector<16x16xf32>
    %53 = arith.subf %49, %52 : vector<16x16xf32>
    %54 = math.exp %53 : vector<16x16xf32>
    %cst_24 = arith.constant dense<0.000000e+00> : vector<16xf32>
    %55 = vector.multi_reduction <add>, %54, %cst_24 [1] : vector<16x16xf32> to vector<16xf32>
    %56 = vector.shape_cast %55 : vector<16xf32> to vector<16x1xf32>
    %57 = tpu.reciprocal %56 {approx = true} : vector<16x1xf32> -> vector<16x1xf32>
    %58 = vector.broadcast %57 : vector<16x1xf32> to vector<16x16xf32>
    %59 = arith.mulf %54, %58 : vector<16x16xf32>
    %60 = vector.extract_strided_slice %25 {offsets = [0, 8], sizes = [16, 8], strides = [1, 1]} : vector<16x32xf32> to vector<16x8xf32>
    %cst_25 = arith.constant dense<0.000000e+00> : vector<16x8xf32>
    %61 = tpu.matmul %59, %60, %cst_25 {dimension_numbers = #tpu.dot_dimension_numbers<[1], [0], [0], [1], [0, 0, 1, 1], [], []>} : vector<16x16xf32>, vector<16x8xf32>, vector<16x8xf32> -> vector<16x8xf32>
    %62 = vector.extract_strided_slice %23 {offsets = [0, 16], sizes = [16, 8], strides = [1, 1]} : vector<16x32xf32> to vector<16x8xf32>
    %63 = vector.extract_strided_slice %24 {offsets = [0, 16], sizes = [16, 8], strides = [1, 1]} : vector<16x32xf32> to vector<16x8xf32>
    "tpu.trace_start"() <{level = 10 : i32, message = "rd,sd->rs"}> : () -> ()
    %cst_26 = arith.constant dense<0.000000e+00> : vector<16x16xf32>
    %64 = tpu.matmul %62, %63, %cst_26 {dimension_numbers = #tpu.dot_dimension_numbers<[1], [1], [0], [0], [0, 0, 1, 0], [], []>} : vector<16x8xf32>, vector<16x8xf32>, vector<16x16xf32> -> vector<16x16xf32>
    "tpu.trace_stop"() : () -> ()
    %cst_27 = arith.constant 0.353553385 : f32
    %65 = vector.broadcast %cst_27 : f32 to vector<16x16xf32>
    %66 = arith.mulf %64, %65 : vector<16x16xf32>
    %67 = arith.addf %66, %1 : vector<16x16xf32>
    %cst_28 = arith.constant dense<0xFF800000> : vector<16xf32>
    %68 = vector.multi_reduction <maximumf>, %67, %cst_28 [1] : vector<16x16xf32> to vector<16xf32>
    %69 = vector.shape_cast %68 : vector<16xf32> to vector<16x1xf32>
    %70 = vector.broadcast %69 : vector<16x1xf32> to vector<16x16xf32>
    %71 = arith.subf %67, %70 : vector<16x16xf32>
    %72 = math.exp %71 : vector<16x16xf32>
    %cst_29 = arith.constant dense<0.000000e+00> : vector<16xf32>
    %73 = vector.multi_reduction <add>, %72, %cst_29 [1] : vector<16x16xf32> to vector<16xf32>
    %74 = vector.shape_cast %73 : vector<16xf32> to vector<16x1xf32>
    %75 = tpu.reciprocal %74 {approx = true} : vector<16x1xf32> -> vector<16x1xf32>
    %76 = vector.broadcast %75 : vector<16x1xf32> to vector<16x16xf32>
    %77 = arith.mulf %72, %76 : vector<16x16xf32>
    %78 = vector.extract_strided_slice %25 {offsets = [0, 16], sizes = [16, 8], strides = [1, 1]} : vector<16x32xf32> to vector<16x8xf32>
    %cst_30 = arith.constant dense<0.000000e+00> : vector<16x8xf32>
    %79 = tpu.matmul %77, %78, %cst_30 {dimension_numbers = #tpu.dot_dimension_numbers<[1], [0], [0], [1], [0, 0, 1, 1], [], []>} : vector<16x16xf32>, vector<16x8xf32>, vector<16x8xf32> -> vector<16x8xf32>
    %80 = vector.extract_strided_slice %23 {offsets = [0, 24], sizes = [16, 8], strides = [1, 1]} : vector<16x32xf32> to vector<16x8xf32>
    %81 = vector.extract_strided_slice %24 {offsets = [0, 24], sizes = [16, 8], strides = [1, 1]} : vector<16x32xf32> to vector<16x8xf32>
    "tpu.trace_start"() <{level = 10 : i32, message = "rd,sd->rs"}> : () -> ()
    %cst_31 = arith.constant dense<0.000000e+00> : vector<16x16xf32>
    %82 = tpu.matmul %80, %81, %cst_31 {dimension_numbers = #tpu.dot_dimension_numbers<[1], [1], [0], [0], [0, 0, 1, 0], [], []>} : vector<16x8xf32>, vector<16x8xf32>, vector<16x16xf32> -> vector<16x16xf32>
    "tpu.trace_stop"() : () -> ()
    %cst_32 = arith.constant 0.353553385 : f32
    %83 = vector.broadcast %cst_32 : f32 to vector<16x16xf32>
    %84 = arith.mulf %82, %83 : vector<16x16xf32>
    %85 = arith.addf %84, %1 : vector<16x16xf32>
    %cst_33 = arith.constant dense<0xFF800000> : vector<16xf32>
    %86 = vector.multi_reduction <maximumf>, %85, %cst_33 [1] : vector<16x16xf32> to vector<16xf32>
    %87 = vector.shape_cast %86 : vector<16xf32> to vector<16x1xf32>
    %88 = vector.broadcast %87 : vector<16x1xf32> to vector<16x16xf32>
    %89 = arith.subf %85, %88 : vector<16x16xf32>
    %90 = math.exp %89 : vector<16x16xf32>
    %cst_34 = arith.constant dense<0.000000e+00> : vector<16xf32>
    %91 = vector.multi_reduction <add>, %90, %cst_34 [1] : vector<16x16xf32> to vector<16xf32>
    %92 = vector.shape_cast %91 : vector<16xf32> to vector<16x1xf32>
    %93 = tpu.reciprocal %92 {approx = true} : vector<16x1xf32> -> vector<16x1xf32>
    %94 = vector.broadcast %93 : vector<16x1xf32> to vector<16x16xf32>
    %95 = arith.mulf %90, %94 : vector<16x16xf32>
    %96 = vector.extract_strided_slice %25 {offsets = [0, 24], sizes = [16, 8], strides = [1, 1]} : vector<16x32xf32> to vector<16x8xf32>
    %cst_35 = arith.constant dense<0.000000e+00> : vector<16x8xf32>
    %97 = tpu.matmul %95, %96, %cst_35 {dimension_numbers = #tpu.dot_dimension_numbers<[1], [0], [0], [1], [0, 0, 1, 1], [], []>} : vector<16x16xf32>, vector<16x8xf32>, vector<16x8xf32> -> vector<16x8xf32>
    %98 = tpu.concatenate %43, %61, %79, %97 in 1 : vector<16x8xf32>, vector<16x8xf32>, vector<16x8xf32>, vector<16x8xf32> -> vector<16x32xf32>
    %99 = vector.extract_strided_slice %16 {offsets = [0, 96], sizes = [32, 32], strides = [1, 1]} : vector<32x128xf32> to vector<32x32xf32>
    %cst_36 = arith.constant dense<0.000000e+00> : vector<16x32xf32>
    %100 = tpu.matmul %98, %99, %cst_36 {dimension_numbers = #tpu.dot_dimension_numbers<[1], [0], [0], [1], [0, 0, 1, 1], [], []>} : vector<16x32xf32>, vector<32x32xf32>, vector<16x32xf32> -> vector<16x32xf32>
    %101 = vector.extract_strided_slice %17 {offsets = [0, 96], sizes = [1, 32], strides = [1, 1]} : vector<1x128xf32> to vector<1x32xf32>
    %102 = vector.broadcast %101 : vector<1x32xf32> to vector<16x32xf32>
    %103 = arith.addf %100, %102 : vector<16x32xf32>
    %104 = arith.addf %13, %103 : vector<16x32xf32>
    %c0_37 = arith.constant 0 : index
    %c0_38 = arith.constant 0 : index
    %105 = vector.load %arg8[%c0_37, %c0_38] : memref<8x128xf32, #tpu.memory_space<vmem>>, vector<1x32xf32>
    %c0_39 = arith.constant 0 : index
    %c32_40 = arith.constant 32 : index
    %106 = vector.load %arg8[%c0_39, %c32_40] : memref<8x128xf32, #tpu.memory_space<vmem>>, vector<1x32xf32>
    %cst_41 = arith.constant dense<0.000000e+00> : vector<16xf32>
    %107 = vector.multi_reduction <add>, %104, %cst_41 [1] : vector<16x32xf32> to vector<16xf32>
    %108 = vector.shape_cast %107 : vector<16xf32> to vector<16x1xf32>
    %cst_42 = arith.constant 3.200000e+01 : f32
    %109 = vector.broadcast %cst_42 : f32 to vector<16x1xf32>
    %110 = arith.divf %108, %109 : vector<16x1xf32>
    %111 = vector.broadcast %110 : vector<16x1xf32> to vector<16x32xf32>
    %112 = arith.subf %104, %111 : vector<16x32xf32>
    %113 = vector.broadcast %110 : vector<16x1xf32> to vector<16x32xf32>
    %114 = arith.subf %104, %113 : vector<16x32xf32>
    %115 = arith.mulf %112, %114 : vector<16x32xf32>
    %cst_43 = arith.constant dense<0.000000e+00> : vector<16xf32>
    %116 = vector.multi_reduction <add>, %115, %cst_43 [1] : vector<16x32xf32> to vector<16xf32>
    %117 = vector.shape_cast %116 : vector<16xf32> to vector<16x1xf32>
    %cst_44 = arith.constant 3.200000e+01 : f32
    %118 = vector.broadcast %cst_44 : f32 to vector<16x1xf32>
    %119 = arith.divf %117, %118 : vector<16x1xf32>
    %120 = vector.broadcast %110 : vector<16x1xf32> to vector<16x32xf32>
    %121 = arith.subf %104, %120 : vector<16x32xf32>
    %cst_45 = arith.constant 9.99999974E-6 : f32
    %122 = vector.broadcast %cst_45 : f32 to vector<16x1xf32>
    %123 = arith.addf %119, %122 : vector<16x1xf32>
    %124 = math.rsqrt %123 : vector<16x1xf32>
    %125 = vector.broadcast %124 : vector<16x1xf32> to vector<16x32xf32>
    %126 = arith.mulf %121, %125 : vector<16x32xf32>
    %127 = vector.broadcast %105 : vector<1x32xf32> to vector<16x32xf32>
    %128 = arith.mulf %126, %127 : vector<16x32xf32>
    %129 = vector.broadcast %106 : vector<1x32xf32> to vector<16x32xf32>
    %130 = arith.addf %128, %129 : vector<16x32xf32>
    %c1 = arith.constant 1 : index
    %c0_46 = arith.constant 0 : index
    %c0_47 = arith.constant 0 : index
    %131 = vector.load %arg4[%c1, %c0_46, %c0_47] : memref<4x32x128xf32, #tpu.memory_space<vmem>>, vector<1x32x128xf32>
    %132 = vector.shape_cast %131 : vector<1x32x128xf32> to vector<32x128xf32>
    %c1_48 = arith.constant 1 : index
    %c0_49 = arith.constant 0 : index
    %133 = vector.load %arg5[%c1_48, %c0_49] : memref<4x128xf32, #tpu.memory_space<vmem>>, vector<1x128xf32>
    %134 = vector.extract_strided_slice %132 {offsets = [0, 0], sizes = [32, 32], strides = [1, 1]} : vector<32x128xf32> to vector<32x32xf32>
    %cst_50 = arith.constant dense<0.000000e+00> : vector<16x32xf32>
    %135 = tpu.matmul %130, %134, %cst_50 {dimension_numbers = #tpu.dot_dimension_numbers<[1], [0], [0], [1], [0, 0, 1, 1], [], []>} : vector<16x32xf32>, vector<32x32xf32>, vector<16x32xf32> -> vector<16x32xf32>
    %136 = vector.extract_strided_slice %133 {offsets = [0, 0], sizes = [1, 32], strides = [1, 1]} : vector<1x128xf32> to vector<1x32xf32>
    %137 = vector.broadcast %136 : vector<1x32xf32> to vector<16x32xf32>
    %138 = arith.addf %135, %137 : vector<16x32xf32>
    %139 = vector.extract_strided_slice %132 {offsets = [0, 32], sizes = [32, 64], strides = [1, 1]} : vector<32x128xf32> to vector<32x64xf32>
    %cst_51 = arith.constant dense<0.000000e+00> : vector<24x64xf32>
    %140 = tpu.matmul %14, %139, %cst_51 {dimension_numbers = #tpu.dot_dimension_numbers<[1], [0], [0], [1], [0, 0, 1, 1], [], []>} : vector<24x32xf32>, vector<32x64xf32>, vector<24x64xf32> -> vector<24x64xf32>
    %141 = vector.extract_strided_slice %133 {offsets = [0, 32], sizes = [1, 64], strides = [1, 1]} : vector<1x128xf32> to vector<1x64xf32>
    %142 = vector.broadcast %141 : vector<1x64xf32> to vector<24x64xf32>
    %143 = arith.addf %140, %142 : vector<24x64xf32>
    %144 = vector.extract_strided_slice %143 {offsets = [0, 0], sizes = [24, 32], strides = [1, 1]} : vector<24x64xf32> to vector<24x32xf32>
    %145 = vector.extract_strided_slice %143 {offsets = [0, 32], sizes = [24, 32], strides = [1, 1]} : vector<24x64xf32> to vector<24x32xf32>
    %146 = vector.extract_strided_slice %138 {offsets = [0, 0], sizes = [16, 8], strides = [1, 1]} : vector<16x32xf32> to vector<16x8xf32>
    %147 = vector.extract_strided_slice %144 {offsets = [0, 0], sizes = [24, 8], strides = [1, 1]} : vector<24x32xf32> to vector<24x8xf32>
    "tpu.trace_start"() <{level = 10 : i32, message = "rd,sd->rs"}> : () -> ()
    %cst_52 = arith.constant dense<0.000000e+00> : vector<16x24xf32>
    %148 = tpu.matmul %146, %147, %cst_52 {dimension_numbers = #tpu.dot_dimension_numbers<[1], [1], [0], [0], [0, 0, 1, 0], [], []>} : vector<16x8xf32>, vector<24x8xf32>, vector<16x24xf32> -> vector<16x24xf32>
    "tpu.trace_stop"() : () -> ()
    %cst_53 = arith.constant 0.353553385 : f32
    %149 = vector.broadcast %cst_53 : f32 to vector<16x24xf32>
    %150 = arith.mulf %148, %149 : vector<16x24xf32>
    %151 = arith.addf %150, %2 : vector<16x24xf32>
    %cst_54 = arith.constant dense<0xFF800000> : vector<16xf32>
    %152 = vector.multi_reduction <maximumf>, %151, %cst_54 [1] : vector<16x24xf32> to vector<16xf32>
    %153 = vector.shape_cast %152 : vector<16xf32> to vector<16x1xf32>
    %154 = vector.broadcast %153 : vector<16x1xf32> to vector<16x24xf32>
    %155 = arith.subf %151, %154 : vector<16x24xf32>
    %156 = math.exp %155 : vector<16x24xf32>
    %cst_55 = arith.constant dense<0.000000e+00> : vector<16xf32>
    %157 = vector.multi_reduction <add>, %156, %cst_55 [1] : vector<16x24xf32> to vector<16xf32>
    %158 = vector.shape_cast %157 : vector<16xf32> to vector<16x1xf32>
    %159 = tpu.reciprocal %158 {approx = true} : vector<16x1xf32> -> vector<16x1xf32>
    %160 = vector.broadcast %159 : vector<16x1xf32> to vector<16x24xf32>
    %161 = arith.mulf %156, %160 : vector<16x24xf32>
    %162 = vector.extract_strided_slice %145 {offsets = [0, 0], sizes = [24, 8], strides = [1, 1]} : vector<24x32xf32> to vector<24x8xf32>
    %cst_56 = arith.constant dense<0.000000e+00> : vector<16x8xf32>
    %163 = tpu.matmul %161, %162, %cst_56 {dimension_numbers = #tpu.dot_dimension_numbers<[1], [0], [0], [1], [0, 0, 1, 1], [], []>} : vector<16x24xf32>, vector<24x8xf32>, vector<16x8xf32> -> vector<16x8xf32>
    %164 = vector.extract_strided_slice %138 {offsets = [0, 8], sizes = [16, 8], strides = [1, 1]} : vector<16x32xf32> to vector<16x8xf32>
    %165 = vector.extract_strided_slice %144 {offsets = [0, 8], sizes = [24, 8], strides = [1, 1]} : vector<24x32xf32> to vector<24x8xf32>
    "tpu.trace_start"() <{level = 10 : i32, message = "rd,sd->rs"}> : () -> ()
    %cst_57 = arith.constant dense<0.000000e+00> : vector<16x24xf32>
    %166 = tpu.matmul %164, %165, %cst_57 {dimension_numbers = #tpu.dot_dimension_numbers<[1], [1], [0], [0], [0, 0, 1, 0], [], []>} : vector<16x8xf32>, vector<24x8xf32>, vector<16x24xf32> -> vector<16x24xf32>
    "tpu.trace_stop"() : () -> ()
    %cst_58 = arith.constant 0.353553385 : f32
    %167 = vector.broadcast %cst_58 : f32 to vector<16x24xf32>
    %168 = arith.mulf %166, %167 : vector<16x24xf32>
    %169 = arith.addf %168, %2 : vector<16x24xf32>
    %cst_59 = arith.constant dense<0xFF800000> : vector<16xf32>
    %170 = vector.multi_reduction <maximumf>, %169, %cst_59 [1] : vector<16x24xf32> to vector<16xf32>
    %171 = vector.shape_cast %170 : vector<16xf32> to vector<16x1xf32>
    %172 = vector.broadcast %171 : vector<16x1xf32> to vector<16x24xf32>
    %173 = arith.subf %169, %172 : vector<16x24xf32>
    %174 = math.exp %173 : vector<16x24xf32>
    %cst_60 = arith.constant dense<0.000000e+00> : vector<16xf32>
    %175 = vector.multi_reduction <add>, %174, %cst_60 [1] : vector<16x24xf32> to vector<16xf32>
    %176 = vector.shape_cast %175 : vector<16xf32> to vector<16x1xf32>
    %177 = tpu.reciprocal %176 {approx = true} : vector<16x1xf32> -> vector<16x1xf32>
    %178 = vector.broadcast %177 : vector<16x1xf32> to vector<16x24xf32>
    %179 = arith.mulf %174, %178 : vector<16x24xf32>
    %180 = vector.extract_strided_slice %145 {offsets = [0, 8], sizes = [24, 8], strides = [1, 1]} : vector<24x32xf32> to vector<24x8xf32>
    %cst_61 = arith.constant dense<0.000000e+00> : vector<16x8xf32>
    %181 = tpu.matmul %179, %180, %cst_61 {dimension_numbers = #tpu.dot_dimension_numbers<[1], [0], [0], [1], [0, 0, 1, 1], [], []>} : vector<16x24xf32>, vector<24x8xf32>, vector<16x8xf32> -> vector<16x8xf32>
    %182 = vector.extract_strided_slice %138 {offsets = [0, 16], sizes = [16, 8], strides = [1, 1]} : vector<16x32xf32> to vector<16x8xf32>
    %183 = vector.extract_strided_slice %144 {offsets = [0, 16], sizes = [24, 8], strides = [1, 1]} : vector<24x32xf32> to vector<24x8xf32>
    "tpu.trace_start"() <{level = 10 : i32, message = "rd,sd->rs"}> : () -> ()
    %cst_62 = arith.constant dense<0.000000e+00> : vector<16x24xf32>
    %184 = tpu.matmul %182, %183, %cst_62 {dimension_numbers = #tpu.dot_dimension_numbers<[1], [1], [0], [0], [0, 0, 1, 0], [], []>} : vector<16x8xf32>, vector<24x8xf32>, vector<16x24xf32> -> vector<16x24xf32>
    "tpu.trace_stop"() : () -> ()
    %cst_63 = arith.constant 0.353553385 : f32
    %185 = vector.broadcast %cst_63 : f32 to vector<16x24xf32>
    %186 = arith.mulf %184, %185 : vector<16x24xf32>
    %187 = arith.addf %186, %2 : vector<16x24xf32>
    %cst_64 = arith.constant dense<0xFF800000> : vector<16xf32>
    %188 = vector.multi_reduction <maximumf>, %187, %cst_64 [1] : vector<16x24xf32> to vector<16xf32>
    %189 = vector.shape_cast %188 : vector<16xf32> to vector<16x1xf32>
    %190 = vector.broadcast %189 : vector<16x1xf32> to vector<16x24xf32>
    %191 = arith.subf %187, %190 : vector<16x24xf32>
    %192 = math.exp %191 : vector<16x24xf32>
    %cst_65 = arith.constant dense<0.000000e+00> : vector<16xf32>
    %193 = vector.multi_reduction <add>, %192, %cst_65 [1] : vector<16x24xf32> to vector<16xf32>
    %194 = vector.shape_cast %193 : vector<16xf32> to vector<16x1xf32>
    %195 = tpu.reciprocal %194 {approx = true} : vector<16x1xf32> -> vector<16x1xf32>
    %196 = vector.broadcast %195 : vector<16x1xf32> to vector<16x24xf32>
    %197 = arith.mulf %192, %196 : vector<16x24xf32>
    %198 = vector.extract_strided_slice %145 {offsets = [0, 16], sizes = [24, 8], strides = [1, 1]} : vector<24x32xf32> to vector<24x8xf32>
    %cst_66 = arith.constant dense<0.000000e+00> : vector<16x8xf32>
    %199 = tpu.matmul %197, %198, %cst_66 {dimension_numbers = #tpu.dot_dimension_numbers<[1], [0], [0], [1], [0, 0, 1, 1], [], []>} : vector<16x24xf32>, vector<24x8xf32>, vector<16x8xf32> -> vector<16x8xf32>
    %200 = vector.extract_strided_slice %138 {offsets = [0, 24], sizes = [16, 8], strides = [1, 1]} : vector<16x32xf32> to vector<16x8xf32>
    %201 = vector.extract_strided_slice %144 {offsets = [0, 24], sizes = [24, 8], strides = [1, 1]} : vector<24x32xf32> to vector<24x8xf32>
    "tpu.trace_start"() <{level = 10 : i32, message = "rd,sd->rs"}> : () -> ()
    %cst_67 = arith.constant dense<0.000000e+00> : vector<16x24xf32>
    %202 = tpu.matmul %200, %201, %cst_67 {dimension_numbers = #tpu.dot_dimension_numbers<[1], [1], [0], [0], [0, 0, 1, 0], [], []>} : vector<16x8xf32>, vector<24x8xf32>, vector<16x24xf32> -> vector<16x24xf32>
    "tpu.trace_stop"() : () -> ()
    %cst_68 = arith.constant 0.353553385 : f32
    %203 = vector.broadcast %cst_68 : f32 to vector<16x24xf32>
    %204 = arith.mulf %202, %203 : vector<16x24xf32>
    %205 = arith.addf %204, %2 : vector<16x24xf32>
    %cst_69 = arith.constant dense<0xFF800000> : vector<16xf32>
    %206 = vector.multi_reduction <maximumf>, %205, %cst_69 [1] : vector<16x24xf32> to vector<16xf32>
    %207 = vector.shape_cast %206 : vector<16xf32> to vector<16x1xf32>
    %208 = vector.broadcast %207 : vector<16x1xf32> to vector<16x24xf32>
    %209 = arith.subf %205, %208 : vector<16x24xf32>
    %210 = math.exp %209 : vector<16x24xf32>
    %cst_70 = arith.constant dense<0.000000e+00> : vector<16xf32>
    %211 = vector.multi_reduction <add>, %210, %cst_70 [1] : vector<16x24xf32> to vector<16xf32>
    %212 = vector.shape_cast %211 : vector<16xf32> to vector<16x1xf32>
    %213 = tpu.reciprocal %212 {approx = true} : vector<16x1xf32> -> vector<16x1xf32>
    %214 = vector.broadcast %213 : vector<16x1xf32> to vector<16x24xf32>
    %215 = arith.mulf %210, %214 : vector<16x24xf32>
    %216 = vector.extract_strided_slice %145 {offsets = [0, 24], sizes = [24, 8], strides = [1, 1]} : vector<24x32xf32> to vector<24x8xf32>
    %cst_71 = arith.constant dense<0.000000e+00> : vector<16x8xf32>
    %217 = tpu.matmul %215, %216, %cst_71 {dimension_numbers = #tpu.dot_dimension_numbers<[1], [0], [0], [1], [0, 0, 1, 1], [], []>} : vector<16x24xf32>, vector<24x8xf32>, vector<16x8xf32> -> vector<16x8xf32>
    %218 = tpu.concatenate %163, %181, %199, %217 in 1 : vector<16x8xf32>, vector<16x8xf32>, vector<16x8xf32>, vector<16x8xf32> -> vector<16x32xf32>
    %219 = vector.extract_strided_slice %132 {offsets = [0, 96], sizes = [32, 32], strides = [1, 1]} : vector<32x128xf32> to vector<32x32xf32>
    %cst_72 = arith.constant dense<0.000000e+00> : vector<16x32xf32>
    %220 = tpu.matmul %218, %219, %cst_72 {dimension_numbers = #tpu.dot_dimension_numbers<[1], [0], [0], [1], [0, 0, 1, 1], [], []>} : vector<16x32xf32>, vector<32x32xf32>, vector<16x32xf32> -> vector<16x32xf32>
    %221 = vector.extract_strided_slice %133 {offsets = [0, 96], sizes = [1, 32], strides = [1, 1]} : vector<1x128xf32> to vector<1x32xf32>
    %222 = vector.broadcast %221 : vector<1x32xf32> to vector<16x32xf32>
    %223 = arith.addf %220, %222 : vector<16x32xf32>
    %224 = arith.addf %130, %223 : vector<16x32xf32>
    %c0_73 = arith.constant 0 : index
    %c64 = arith.constant 64 : index
    %225 = vector.load %arg8[%c0_73, %c64] : memref<8x128xf32, #tpu.memory_space<vmem>>, vector<1x32xf32>
    %c0_74 = arith.constant 0 : index
    %c96 = arith.constant 96 : index
    %226 = vector.load %arg8[%c0_74, %c96] : memref<8x128xf32, #tpu.memory_space<vmem>>, vector<1x32xf32>
    %cst_75 = arith.constant dense<0.000000e+00> : vector<16xf32>
    %227 = vector.multi_reduction <add>, %224, %cst_75 [1] : vector<16x32xf32> to vector<16xf32>
    %228 = vector.shape_cast %227 : vector<16xf32> to vector<16x1xf32>
    %cst_76 = arith.constant 3.200000e+01 : f32
    %229 = vector.broadcast %cst_76 : f32 to vector<16x1xf32>
    %230 = arith.divf %228, %229 : vector<16x1xf32>
    %231 = vector.broadcast %230 : vector<16x1xf32> to vector<16x32xf32>
    %232 = arith.subf %224, %231 : vector<16x32xf32>
    %233 = vector.broadcast %230 : vector<16x1xf32> to vector<16x32xf32>
    %234 = arith.subf %224, %233 : vector<16x32xf32>
    %235 = arith.mulf %232, %234 : vector<16x32xf32>
    %cst_77 = arith.constant dense<0.000000e+00> : vector<16xf32>
    %236 = vector.multi_reduction <add>, %235, %cst_77 [1] : vector<16x32xf32> to vector<16xf32>
    %237 = vector.shape_cast %236 : vector<16xf32> to vector<16x1xf32>
    %cst_78 = arith.constant 3.200000e+01 : f32
    %238 = vector.broadcast %cst_78 : f32 to vector<16x1xf32>
    %239 = arith.divf %237, %238 : vector<16x1xf32>
    %240 = vector.broadcast %230 : vector<16x1xf32> to vector<16x32xf32>
    %241 = arith.subf %224, %240 : vector<16x32xf32>
    %cst_79 = arith.constant 9.99999974E-6 : f32
    %242 = vector.broadcast %cst_79 : f32 to vector<16x1xf32>
    %243 = arith.addf %239, %242 : vector<16x1xf32>
    %244 = math.rsqrt %243 : vector<16x1xf32>
    %245 = vector.broadcast %244 : vector<16x1xf32> to vector<16x32xf32>
    %246 = arith.mulf %241, %245 : vector<16x32xf32>
    %247 = vector.broadcast %225 : vector<1x32xf32> to vector<16x32xf32>
    %248 = arith.mulf %246, %247 : vector<16x32xf32>
    %249 = vector.broadcast %226 : vector<1x32xf32> to vector<16x32xf32>
    %250 = arith.addf %248, %249 : vector<16x32xf32>
    %c0_80 = arith.constant 0 : index
    %c0_81 = arith.constant 0 : index
    %c0_82 = arith.constant 0 : index
    %251 = vector.load %arg6[%c0_80, %c0_81, %c0_82] : memref<2x32x64xf32, #tpu.memory_space<vmem>>, vector<1x32x64xf32>
    %252 = vector.shape_cast %251 : vector<1x32x64xf32> to vector<32x64xf32>
    %cst_83 = arith.constant dense<0.000000e+00> : vector<16x64xf32>
    %253 = tpu.matmul %250, %252, %cst_83 {dimension_numbers = #tpu.dot_dimension_numbers<[1], [0], [0], [1], [0, 0, 1, 1], [], []>} : vector<16x32xf32>, vector<32x64xf32>, vector<16x64xf32> -> vector<16x64xf32>
    %c2 = arith.constant 2 : index
    %c0_84 = arith.constant 0 : index
    %254 = vector.load %arg8[%c2, %c0_84] : memref<8x128xf32, #tpu.memory_space<vmem>>, vector<1x64xf32>
    %255 = vector.broadcast %254 : vector<1x64xf32> to vector<16x64xf32>
    %256 = arith.addf %253, %255 : vector<16x64xf32>
    %cst_85 = arith.constant 0.000000e+00 : f32
    %257 = vector.broadcast %cst_85 : f32 to vector<16x64xf32>
    %258 = arith.maximumf %256, %257 : vector<16x64xf32>
    %c0_86 = arith.constant 0 : index
    %c0_87 = arith.constant 0 : index
    %c0_88 = arith.constant 0 : index
    %259 = vector.load %arg7[%c0_86, %c0_87, %c0_88] : memref<2x64x32xf32, #tpu.memory_space<vmem>>, vector<1x64x32xf32>
    %260 = vector.shape_cast %259 : vector<1x64x32xf32> to vector<64x32xf32>
    %cst_89 = arith.constant dense<0.000000e+00> : vector<16x32xf32>
    %261 = tpu.matmul %258, %260, %cst_89 {dimension_numbers = #tpu.dot_dimension_numbers<[1], [0], [0], [1], [0, 0, 1, 1], [], []>} : vector<16x64xf32>, vector<64x32xf32>, vector<16x32xf32> -> vector<16x32xf32>
    %c1_90 = arith.constant 1 : index
    %c64_91 = arith.constant 64 : index
    %262 = vector.load %arg8[%c1_90, %c64_91] : memref<8x128xf32, #tpu.memory_space<vmem>>, vector<1x32xf32>
    %263 = vector.broadcast %262 : vector<1x32xf32> to vector<16x32xf32>
    %264 = arith.addf %261, %263 : vector<16x32xf32>
    %265 = arith.addf %250, %264 : vector<16x32xf32>
    %c1_92 = arith.constant 1 : index
    %c0_93 = arith.constant 0 : index
    %266 = vector.load %arg8[%c1_92, %c0_93] : memref<8x128xf32, #tpu.memory_space<vmem>>, vector<1x32xf32>
    %c1_94 = arith.constant 1 : index
    %c32_95 = arith.constant 32 : index
    %267 = vector.load %arg8[%c1_94, %c32_95] : memref<8x128xf32, #tpu.memory_space<vmem>>, vector<1x32xf32>
    %cst_96 = arith.constant dense<0.000000e+00> : vector<16xf32>
    %268 = vector.multi_reduction <add>, %265, %cst_96 [1] : vector<16x32xf32> to vector<16xf32>
    %269 = vector.shape_cast %268 : vector<16xf32> to vector<16x1xf32>
    %cst_97 = arith.constant 3.200000e+01 : f32
    %270 = vector.broadcast %cst_97 : f32 to vector<16x1xf32>
    %271 = arith.divf %269, %270 : vector<16x1xf32>
    %272 = vector.broadcast %271 : vector<16x1xf32> to vector<16x32xf32>
    %273 = arith.subf %265, %272 : vector<16x32xf32>
    %274 = vector.broadcast %271 : vector<16x1xf32> to vector<16x32xf32>
    %275 = arith.subf %265, %274 : vector<16x32xf32>
    %276 = arith.mulf %273, %275 : vector<16x32xf32>
    %cst_98 = arith.constant dense<0.000000e+00> : vector<16xf32>
    %277 = vector.multi_reduction <add>, %276, %cst_98 [1] : vector<16x32xf32> to vector<16xf32>
    %278 = vector.shape_cast %277 : vector<16xf32> to vector<16x1xf32>
    %cst_99 = arith.constant 3.200000e+01 : f32
    %279 = vector.broadcast %cst_99 : f32 to vector<16x1xf32>
    %280 = arith.divf %278, %279 : vector<16x1xf32>
    %281 = vector.broadcast %271 : vector<16x1xf32> to vector<16x32xf32>
    %282 = arith.subf %265, %281 : vector<16x32xf32>
    %cst_100 = arith.constant 9.99999974E-6 : f32
    %283 = vector.broadcast %cst_100 : f32 to vector<16x1xf32>
    %284 = arith.addf %280, %283 : vector<16x1xf32>
    %285 = math.rsqrt %284 : vector<16x1xf32>
    %286 = vector.broadcast %285 : vector<16x1xf32> to vector<16x32xf32>
    %287 = arith.mulf %282, %286 : vector<16x32xf32>
    %288 = vector.broadcast %266 : vector<1x32xf32> to vector<16x32xf32>
    %289 = arith.mulf %287, %288 : vector<16x32xf32>
    %290 = vector.broadcast %267 : vector<1x32xf32> to vector<16x32xf32>
    %291 = arith.addf %289, %290 : vector<16x32xf32>
    %c2_101 = arith.constant 2 : index
    %c0_102 = arith.constant 0 : index
    %c0_103 = arith.constant 0 : index
    %292 = vector.load %arg4[%c2_101, %c0_102, %c0_103] : memref<4x32x128xf32, #tpu.memory_space<vmem>>, vector<1x32x128xf32>
    %293 = vector.shape_cast %292 : vector<1x32x128xf32> to vector<32x128xf32>
    %c2_104 = arith.constant 2 : index
    %c0_105 = arith.constant 0 : index
    %294 = vector.load %arg5[%c2_104, %c0_105] : memref<4x128xf32, #tpu.memory_space<vmem>>, vector<1x128xf32>
    %295 = vector.extract_strided_slice %293 {offsets = [0, 0], sizes = [32, 96], strides = [1, 1]} : vector<32x128xf32> to vector<32x96xf32>
    %cst_106 = arith.constant dense<0.000000e+00> : vector<16x96xf32>
    %296 = tpu.matmul %291, %295, %cst_106 {dimension_numbers = #tpu.dot_dimension_numbers<[1], [0], [0], [1], [0, 0, 1, 1], [], []>} : vector<16x32xf32>, vector<32x96xf32>, vector<16x96xf32> -> vector<16x96xf32>
    %297 = vector.extract_strided_slice %294 {offsets = [0, 0], sizes = [1, 96], strides = [1, 1]} : vector<1x128xf32> to vector<1x96xf32>
    %298 = vector.broadcast %297 : vector<1x96xf32> to vector<16x96xf32>
    %299 = arith.addf %296, %298 : vector<16x96xf32>
    %300 = vector.extract_strided_slice %299 {offsets = [0, 0], sizes = [16, 32], strides = [1, 1]} : vector<16x96xf32> to vector<16x32xf32>
    %301 = vector.extract_strided_slice %299 {offsets = [0, 32], sizes = [16, 32], strides = [1, 1]} : vector<16x96xf32> to vector<16x32xf32>
    %302 = vector.extract_strided_slice %299 {offsets = [0, 64], sizes = [16, 32], strides = [1, 1]} : vector<16x96xf32> to vector<16x32xf32>
    %303 = vector.extract_strided_slice %300 {offsets = [0, 0], sizes = [16, 8], strides = [1, 1]} : vector<16x32xf32> to vector<16x8xf32>
    %304 = vector.extract_strided_slice %301 {offsets = [0, 0], sizes = [16, 8], strides = [1, 1]} : vector<16x32xf32> to vector<16x8xf32>
    "tpu.trace_start"() <{level = 10 : i32, message = "rd,sd->rs"}> : () -> ()
    %cst_107 = arith.constant dense<0.000000e+00> : vector<16x16xf32>
    %305 = tpu.matmul %303, %304, %cst_107 {dimension_numbers = #tpu.dot_dimension_numbers<[1], [1], [0], [0], [0, 0, 1, 0], [], []>} : vector<16x8xf32>, vector<16x8xf32>, vector<16x16xf32> -> vector<16x16xf32>
    "tpu.trace_stop"() : () -> ()
    %cst_108 = arith.constant 0.353553385 : f32
    %306 = vector.broadcast %cst_108 : f32 to vector<16x16xf32>
    %307 = arith.mulf %305, %306 : vector<16x16xf32>
    %308 = arith.addf %307, %1 : vector<16x16xf32>
    %cst_109 = arith.constant dense<0xFF800000> : vector<16xf32>
    %309 = vector.multi_reduction <maximumf>, %308, %cst_109 [1] : vector<16x16xf32> to vector<16xf32>
    %310 = vector.shape_cast %309 : vector<16xf32> to vector<16x1xf32>
    %311 = vector.broadcast %310 : vector<16x1xf32> to vector<16x16xf32>
    %312 = arith.subf %308, %311 : vector<16x16xf32>
    %313 = math.exp %312 : vector<16x16xf32>
    %cst_110 = arith.constant dense<0.000000e+00> : vector<16xf32>
    %314 = vector.multi_reduction <add>, %313, %cst_110 [1] : vector<16x16xf32> to vector<16xf32>
    %315 = vector.shape_cast %314 : vector<16xf32> to vector<16x1xf32>
    %316 = tpu.reciprocal %315 {approx = true} : vector<16x1xf32> -> vector<16x1xf32>
    %317 = vector.broadcast %316 : vector<16x1xf32> to vector<16x16xf32>
    %318 = arith.mulf %313, %317 : vector<16x16xf32>
    %319 = vector.extract_strided_slice %302 {offsets = [0, 0], sizes = [16, 8], strides = [1, 1]} : vector<16x32xf32> to vector<16x8xf32>
    %cst_111 = arith.constant dense<0.000000e+00> : vector<16x8xf32>
    %320 = tpu.matmul %318, %319, %cst_111 {dimension_numbers = #tpu.dot_dimension_numbers<[1], [0], [0], [1], [0, 0, 1, 1], [], []>} : vector<16x16xf32>, vector<16x8xf32>, vector<16x8xf32> -> vector<16x8xf32>
    %321 = vector.extract_strided_slice %300 {offsets = [0, 8], sizes = [16, 8], strides = [1, 1]} : vector<16x32xf32> to vector<16x8xf32>
    %322 = vector.extract_strided_slice %301 {offsets = [0, 8], sizes = [16, 8], strides = [1, 1]} : vector<16x32xf32> to vector<16x8xf32>
    "tpu.trace_start"() <{level = 10 : i32, message = "rd,sd->rs"}> : () -> ()
    %cst_112 = arith.constant dense<0.000000e+00> : vector<16x16xf32>
    %323 = tpu.matmul %321, %322, %cst_112 {dimension_numbers = #tpu.dot_dimension_numbers<[1], [1], [0], [0], [0, 0, 1, 0], [], []>} : vector<16x8xf32>, vector<16x8xf32>, vector<16x16xf32> -> vector<16x16xf32>
    "tpu.trace_stop"() : () -> ()
    %cst_113 = arith.constant 0.353553385 : f32
    %324 = vector.broadcast %cst_113 : f32 to vector<16x16xf32>
    %325 = arith.mulf %323, %324 : vector<16x16xf32>
    %326 = arith.addf %325, %1 : vector<16x16xf32>
    %cst_114 = arith.constant dense<0xFF800000> : vector<16xf32>
    %327 = vector.multi_reduction <maximumf>, %326, %cst_114 [1] : vector<16x16xf32> to vector<16xf32>
    %328 = vector.shape_cast %327 : vector<16xf32> to vector<16x1xf32>
    %329 = vector.broadcast %328 : vector<16x1xf32> to vector<16x16xf32>
    %330 = arith.subf %326, %329 : vector<16x16xf32>
    %331 = math.exp %330 : vector<16x16xf32>
    %cst_115 = arith.constant dense<0.000000e+00> : vector<16xf32>
    %332 = vector.multi_reduction <add>, %331, %cst_115 [1] : vector<16x16xf32> to vector<16xf32>
    %333 = vector.shape_cast %332 : vector<16xf32> to vector<16x1xf32>
    %334 = tpu.reciprocal %333 {approx = true} : vector<16x1xf32> -> vector<16x1xf32>
    %335 = vector.broadcast %334 : vector<16x1xf32> to vector<16x16xf32>
    %336 = arith.mulf %331, %335 : vector<16x16xf32>
    %337 = vector.extract_strided_slice %302 {offsets = [0, 8], sizes = [16, 8], strides = [1, 1]} : vector<16x32xf32> to vector<16x8xf32>
    %cst_116 = arith.constant dense<0.000000e+00> : vector<16x8xf32>
    %338 = tpu.matmul %336, %337, %cst_116 {dimension_numbers = #tpu.dot_dimension_numbers<[1], [0], [0], [1], [0, 0, 1, 1], [], []>} : vector<16x16xf32>, vector<16x8xf32>, vector<16x8xf32> -> vector<16x8xf32>
    %339 = vector.extract_strided_slice %300 {offsets = [0, 16], sizes = [16, 8], strides = [1, 1]} : vector<16x32xf32> to vector<16x8xf32>
    %340 = vector.extract_strided_slice %301 {offsets = [0, 16], sizes = [16, 8], strides = [1, 1]} : vector<16x32xf32> to vector<16x8xf32>
    "tpu.trace_start"() <{level = 10 : i32, message = "rd,sd->rs"}> : () -> ()
    %cst_117 = arith.constant dense<0.000000e+00> : vector<16x16xf32>
    %341 = tpu.matmul %339, %340, %cst_117 {dimension_numbers = #tpu.dot_dimension_numbers<[1], [1], [0], [0], [0, 0, 1, 0], [], []>} : vector<16x8xf32>, vector<16x8xf32>, vector<16x16xf32> -> vector<16x16xf32>
    "tpu.trace_stop"() : () -> ()
    %cst_118 = arith.constant 0.353553385 : f32
    %342 = vector.broadcast %cst_118 : f32 to vector<16x16xf32>
    %343 = arith.mulf %341, %342 : vector<16x16xf32>
    %344 = arith.addf %343, %1 : vector<16x16xf32>
    %cst_119 = arith.constant dense<0xFF800000> : vector<16xf32>
    %345 = vector.multi_reduction <maximumf>, %344, %cst_119 [1] : vector<16x16xf32> to vector<16xf32>
    %346 = vector.shape_cast %345 : vector<16xf32> to vector<16x1xf32>
    %347 = vector.broadcast %346 : vector<16x1xf32> to vector<16x16xf32>
    %348 = arith.subf %344, %347 : vector<16x16xf32>
    %349 = math.exp %348 : vector<16x16xf32>
    %cst_120 = arith.constant dense<0.000000e+00> : vector<16xf32>
    %350 = vector.multi_reduction <add>, %349, %cst_120 [1] : vector<16x16xf32> to vector<16xf32>
    %351 = vector.shape_cast %350 : vector<16xf32> to vector<16x1xf32>
    %352 = tpu.reciprocal %351 {approx = true} : vector<16x1xf32> -> vector<16x1xf32>
    %353 = vector.broadcast %352 : vector<16x1xf32> to vector<16x16xf32>
    %354 = arith.mulf %349, %353 : vector<16x16xf32>
    %355 = vector.extract_strided_slice %302 {offsets = [0, 16], sizes = [16, 8], strides = [1, 1]} : vector<16x32xf32> to vector<16x8xf32>
    %cst_121 = arith.constant dense<0.000000e+00> : vector<16x8xf32>
    %356 = tpu.matmul %354, %355, %cst_121 {dimension_numbers = #tpu.dot_dimension_numbers<[1], [0], [0], [1], [0, 0, 1, 1], [], []>} : vector<16x16xf32>, vector<16x8xf32>, vector<16x8xf32> -> vector<16x8xf32>
    %357 = vector.extract_strided_slice %300 {offsets = [0, 24], sizes = [16, 8], strides = [1, 1]} : vector<16x32xf32> to vector<16x8xf32>
    %358 = vector.extract_strided_slice %301 {offsets = [0, 24], sizes = [16, 8], strides = [1, 1]} : vector<16x32xf32> to vector<16x8xf32>
    "tpu.trace_start"() <{level = 10 : i32, message = "rd,sd->rs"}> : () -> ()
    %cst_122 = arith.constant dense<0.000000e+00> : vector<16x16xf32>
    %359 = tpu.matmul %357, %358, %cst_122 {dimension_numbers = #tpu.dot_dimension_numbers<[1], [1], [0], [0], [0, 0, 1, 0], [], []>} : vector<16x8xf32>, vector<16x8xf32>, vector<16x16xf32> -> vector<16x16xf32>
    "tpu.trace_stop"() : () -> ()
    %cst_123 = arith.constant 0.353553385 : f32
    %360 = vector.broadcast %cst_123 : f32 to vector<16x16xf32>
    %361 = arith.mulf %359, %360 : vector<16x16xf32>
    %362 = arith.addf %361, %1 : vector<16x16xf32>
    %cst_124 = arith.constant dense<0xFF800000> : vector<16xf32>
    %363 = vector.multi_reduction <maximumf>, %362, %cst_124 [1] : vector<16x16xf32> to vector<16xf32>
    %364 = vector.shape_cast %363 : vector<16xf32> to vector<16x1xf32>
    %365 = vector.broadcast %364 : vector<16x1xf32> to vector<16x16xf32>
    %366 = arith.subf %362, %365 : vector<16x16xf32>
    %367 = math.exp %366 : vector<16x16xf32>
    %cst_125 = arith.constant dense<0.000000e+00> : vector<16xf32>
    %368 = vector.multi_reduction <add>, %367, %cst_125 [1] : vector<16x16xf32> to vector<16xf32>
    %369 = vector.shape_cast %368 : vector<16xf32> to vector<16x1xf32>
    %370 = tpu.reciprocal %369 {approx = true} : vector<16x1xf32> -> vector<16x1xf32>
    %371 = vector.broadcast %370 : vector<16x1xf32> to vector<16x16xf32>
    %372 = arith.mulf %367, %371 : vector<16x16xf32>
    %373 = vector.extract_strided_slice %302 {offsets = [0, 24], sizes = [16, 8], strides = [1, 1]} : vector<16x32xf32> to vector<16x8xf32>
    %cst_126 = arith.constant dense<0.000000e+00> : vector<16x8xf32>
    %374 = tpu.matmul %372, %373, %cst_126 {dimension_numbers = #tpu.dot_dimension_numbers<[1], [0], [0], [1], [0, 0, 1, 1], [], []>} : vector<16x16xf32>, vector<16x8xf32>, vector<16x8xf32> -> vector<16x8xf32>
    %375 = tpu.concatenate %320, %338, %356, %374 in 1 : vector<16x8xf32>, vector<16x8xf32>, vector<16x8xf32>, vector<16x8xf32> -> vector<16x32xf32>
    %376 = vector.extract_strided_slice %293 {offsets = [0, 96], sizes = [32, 32], strides = [1, 1]} : vector<32x128xf32> to vector<32x32xf32>
    %cst_127 = arith.constant dense<0.000000e+00> : vector<16x32xf32>
    %377 = tpu.matmul %375, %376, %cst_127 {dimension_numbers = #tpu.dot_dimension_numbers<[1], [0], [0], [1], [0, 0, 1, 1], [], []>} : vector<16x32xf32>, vector<32x32xf32>, vector<16x32xf32> -> vector<16x32xf32>
    %378 = vector.extract_strided_slice %294 {offsets = [0, 96], sizes = [1, 32], strides = [1, 1]} : vector<1x128xf32> to vector<1x32xf32>
    %379 = vector.broadcast %378 : vector<1x32xf32> to vector<16x32xf32>
    %380 = arith.addf %377, %379 : vector<16x32xf32>
    %381 = arith.addf %291, %380 : vector<16x32xf32>
    %c3 = arith.constant 3 : index
    %c0_128 = arith.constant 0 : index
    %382 = vector.load %arg8[%c3, %c0_128] : memref<8x128xf32, #tpu.memory_space<vmem>>, vector<1x32xf32>
    %c3_129 = arith.constant 3 : index
    %c32_130 = arith.constant 32 : index
    %383 = vector.load %arg8[%c3_129, %c32_130] : memref<8x128xf32, #tpu.memory_space<vmem>>, vector<1x32xf32>
    %cst_131 = arith.constant dense<0.000000e+00> : vector<16xf32>
    %384 = vector.multi_reduction <add>, %381, %cst_131 [1] : vector<16x32xf32> to vector<16xf32>
    %385 = vector.shape_cast %384 : vector<16xf32> to vector<16x1xf32>
    %cst_132 = arith.constant 3.200000e+01 : f32
    %386 = vector.broadcast %cst_132 : f32 to vector<16x1xf32>
    %387 = arith.divf %385, %386 : vector<16x1xf32>
    %388 = vector.broadcast %387 : vector<16x1xf32> to vector<16x32xf32>
    %389 = arith.subf %381, %388 : vector<16x32xf32>
    %390 = vector.broadcast %387 : vector<16x1xf32> to vector<16x32xf32>
    %391 = arith.subf %381, %390 : vector<16x32xf32>
    %392 = arith.mulf %389, %391 : vector<16x32xf32>
    %cst_133 = arith.constant dense<0.000000e+00> : vector<16xf32>
    %393 = vector.multi_reduction <add>, %392, %cst_133 [1] : vector<16x32xf32> to vector<16xf32>
    %394 = vector.shape_cast %393 : vector<16xf32> to vector<16x1xf32>
    %cst_134 = arith.constant 3.200000e+01 : f32
    %395 = vector.broadcast %cst_134 : f32 to vector<16x1xf32>
    %396 = arith.divf %394, %395 : vector<16x1xf32>
    %397 = vector.broadcast %387 : vector<16x1xf32> to vector<16x32xf32>
    %398 = arith.subf %381, %397 : vector<16x32xf32>
    %cst_135 = arith.constant 9.99999974E-6 : f32
    %399 = vector.broadcast %cst_135 : f32 to vector<16x1xf32>
    %400 = arith.addf %396, %399 : vector<16x1xf32>
    %401 = math.rsqrt %400 : vector<16x1xf32>
    %402 = vector.broadcast %401 : vector<16x1xf32> to vector<16x32xf32>
    %403 = arith.mulf %398, %402 : vector<16x32xf32>
    %404 = vector.broadcast %382 : vector<1x32xf32> to vector<16x32xf32>
    %405 = arith.mulf %403, %404 : vector<16x32xf32>
    %406 = vector.broadcast %383 : vector<1x32xf32> to vector<16x32xf32>
    %407 = arith.addf %405, %406 : vector<16x32xf32>
    %c3_136 = arith.constant 3 : index
    %c0_137 = arith.constant 0 : index
    %c0_138 = arith.constant 0 : index
    %408 = vector.load %arg4[%c3_136, %c0_137, %c0_138] : memref<4x32x128xf32, #tpu.memory_space<vmem>>, vector<1x32x128xf32>
    %409 = vector.shape_cast %408 : vector<1x32x128xf32> to vector<32x128xf32>
    %c3_139 = arith.constant 3 : index
    %c0_140 = arith.constant 0 : index
    %410 = vector.load %arg5[%c3_139, %c0_140] : memref<4x128xf32, #tpu.memory_space<vmem>>, vector<1x128xf32>
    %411 = vector.extract_strided_slice %409 {offsets = [0, 0], sizes = [32, 32], strides = [1, 1]} : vector<32x128xf32> to vector<32x32xf32>
    %cst_141 = arith.constant dense<0.000000e+00> : vector<16x32xf32>
    %412 = tpu.matmul %407, %411, %cst_141 {dimension_numbers = #tpu.dot_dimension_numbers<[1], [0], [0], [1], [0, 0, 1, 1], [], []>} : vector<16x32xf32>, vector<32x32xf32>, vector<16x32xf32> -> vector<16x32xf32>
    %413 = vector.extract_strided_slice %410 {offsets = [0, 0], sizes = [1, 32], strides = [1, 1]} : vector<1x128xf32> to vector<1x32xf32>
    %414 = vector.broadcast %413 : vector<1x32xf32> to vector<16x32xf32>
    %415 = arith.addf %412, %414 : vector<16x32xf32>
    %416 = vector.extract_strided_slice %409 {offsets = [0, 32], sizes = [32, 64], strides = [1, 1]} : vector<32x128xf32> to vector<32x64xf32>
    %cst_142 = arith.constant dense<0.000000e+00> : vector<24x64xf32>
    %417 = tpu.matmul %14, %416, %cst_142 {dimension_numbers = #tpu.dot_dimension_numbers<[1], [0], [0], [1], [0, 0, 1, 1], [], []>} : vector<24x32xf32>, vector<32x64xf32>, vector<24x64xf32> -> vector<24x64xf32>
    %418 = vector.extract_strided_slice %410 {offsets = [0, 32], sizes = [1, 64], strides = [1, 1]} : vector<1x128xf32> to vector<1x64xf32>
    %419 = vector.broadcast %418 : vector<1x64xf32> to vector<24x64xf32>
    %420 = arith.addf %417, %419 : vector<24x64xf32>
    %421 = vector.extract_strided_slice %420 {offsets = [0, 0], sizes = [24, 32], strides = [1, 1]} : vector<24x64xf32> to vector<24x32xf32>
    %422 = vector.extract_strided_slice %420 {offsets = [0, 32], sizes = [24, 32], strides = [1, 1]} : vector<24x64xf32> to vector<24x32xf32>
    %423 = vector.extract_strided_slice %415 {offsets = [0, 0], sizes = [16, 8], strides = [1, 1]} : vector<16x32xf32> to vector<16x8xf32>
    %424 = vector.extract_strided_slice %421 {offsets = [0, 0], sizes = [24, 8], strides = [1, 1]} : vector<24x32xf32> to vector<24x8xf32>
    "tpu.trace_start"() <{level = 10 : i32, message = "rd,sd->rs"}> : () -> ()
    %cst_143 = arith.constant dense<0.000000e+00> : vector<16x24xf32>
    %425 = tpu.matmul %423, %424, %cst_143 {dimension_numbers = #tpu.dot_dimension_numbers<[1], [1], [0], [0], [0, 0, 1, 0], [], []>} : vector<16x8xf32>, vector<24x8xf32>, vector<16x24xf32> -> vector<16x24xf32>
    "tpu.trace_stop"() : () -> ()
    %cst_144 = arith.constant 0.353553385 : f32
    %426 = vector.broadcast %cst_144 : f32 to vector<16x24xf32>
    %427 = arith.mulf %425, %426 : vector<16x24xf32>
    %428 = arith.addf %427, %2 : vector<16x24xf32>
    %cst_145 = arith.constant dense<0xFF800000> : vector<16xf32>
    %429 = vector.multi_reduction <maximumf>, %428, %cst_145 [1] : vector<16x24xf32> to vector<16xf32>
    %430 = vector.shape_cast %429 : vector<16xf32> to vector<16x1xf32>
    %431 = vector.broadcast %430 : vector<16x1xf32> to vector<16x24xf32>
    %432 = arith.subf %428, %431 : vector<16x24xf32>
    %433 = math.exp %432 : vector<16x24xf32>
    %cst_146 = arith.constant dense<0.000000e+00> : vector<16xf32>
    %434 = vector.multi_reduction <add>, %433, %cst_146 [1] : vector<16x24xf32> to vector<16xf32>
    %435 = vector.shape_cast %434 : vector<16xf32> to vector<16x1xf32>
    %436 = tpu.reciprocal %435 {approx = true} : vector<16x1xf32> -> vector<16x1xf32>
    %437 = vector.broadcast %436 : vector<16x1xf32> to vector<16x24xf32>
    %438 = arith.mulf %433, %437 : vector<16x24xf32>
    %439 = vector.extract_strided_slice %422 {offsets = [0, 0], sizes = [24, 8], strides = [1, 1]} : vector<24x32xf32> to vector<24x8xf32>
    %cst_147 = arith.constant dense<0.000000e+00> : vector<16x8xf32>
    %440 = tpu.matmul %438, %439, %cst_147 {dimension_numbers = #tpu.dot_dimension_numbers<[1], [0], [0], [1], [0, 0, 1, 1], [], []>} : vector<16x24xf32>, vector<24x8xf32>, vector<16x8xf32> -> vector<16x8xf32>
    %441 = vector.extract_strided_slice %415 {offsets = [0, 8], sizes = [16, 8], strides = [1, 1]} : vector<16x32xf32> to vector<16x8xf32>
    %442 = vector.extract_strided_slice %421 {offsets = [0, 8], sizes = [24, 8], strides = [1, 1]} : vector<24x32xf32> to vector<24x8xf32>
    "tpu.trace_start"() <{level = 10 : i32, message = "rd,sd->rs"}> : () -> ()
    %cst_148 = arith.constant dense<0.000000e+00> : vector<16x24xf32>
    %443 = tpu.matmul %441, %442, %cst_148 {dimension_numbers = #tpu.dot_dimension_numbers<[1], [1], [0], [0], [0, 0, 1, 0], [], []>} : vector<16x8xf32>, vector<24x8xf32>, vector<16x24xf32> -> vector<16x24xf32>
    "tpu.trace_stop"() : () -> ()
    %cst_149 = arith.constant 0.353553385 : f32
    %444 = vector.broadcast %cst_149 : f32 to vector<16x24xf32>
    %445 = arith.mulf %443, %444 : vector<16x24xf32>
    %446 = arith.addf %445, %2 : vector<16x24xf32>
    %cst_150 = arith.constant dense<0xFF800000> : vector<16xf32>
    %447 = vector.multi_reduction <maximumf>, %446, %cst_150 [1] : vector<16x24xf32> to vector<16xf32>
    %448 = vector.shape_cast %447 : vector<16xf32> to vector<16x1xf32>
    %449 = vector.broadcast %448 : vector<16x1xf32> to vector<16x24xf32>
    %450 = arith.subf %446, %449 : vector<16x24xf32>
    %451 = math.exp %450 : vector<16x24xf32>
    %cst_151 = arith.constant dense<0.000000e+00> : vector<16xf32>
    %452 = vector.multi_reduction <add>, %451, %cst_151 [1] : vector<16x24xf32> to vector<16xf32>
    %453 = vector.shape_cast %452 : vector<16xf32> to vector<16x1xf32>
    %454 = tpu.reciprocal %453 {approx = true} : vector<16x1xf32> -> vector<16x1xf32>
    %455 = vector.broadcast %454 : vector<16x1xf32> to vector<16x24xf32>
    %456 = arith.mulf %451, %455 : vector<16x24xf32>
    %457 = vector.extract_strided_slice %422 {offsets = [0, 8], sizes = [24, 8], strides = [1, 1]} : vector<24x32xf32> to vector<24x8xf32>
    %cst_152 = arith.constant dense<0.000000e+00> : vector<16x8xf32>
    %458 = tpu.matmul %456, %457, %cst_152 {dimension_numbers = #tpu.dot_dimension_numbers<[1], [0], [0], [1], [0, 0, 1, 1], [], []>} : vector<16x24xf32>, vector<24x8xf32>, vector<16x8xf32> -> vector<16x8xf32>
    %459 = vector.extract_strided_slice %415 {offsets = [0, 16], sizes = [16, 8], strides = [1, 1]} : vector<16x32xf32> to vector<16x8xf32>
    %460 = vector.extract_strided_slice %421 {offsets = [0, 16], sizes = [24, 8], strides = [1, 1]} : vector<24x32xf32> to vector<24x8xf32>
    "tpu.trace_start"() <{level = 10 : i32, message = "rd,sd->rs"}> : () -> ()
    %cst_153 = arith.constant dense<0.000000e+00> : vector<16x24xf32>
    %461 = tpu.matmul %459, %460, %cst_153 {dimension_numbers = #tpu.dot_dimension_numbers<[1], [1], [0], [0], [0, 0, 1, 0], [], []>} : vector<16x8xf32>, vector<24x8xf32>, vector<16x24xf32> -> vector<16x24xf32>
    "tpu.trace_stop"() : () -> ()
    %cst_154 = arith.constant 0.353553385 : f32
    %462 = vector.broadcast %cst_154 : f32 to vector<16x24xf32>
    %463 = arith.mulf %461, %462 : vector<16x24xf32>
    %464 = arith.addf %463, %2 : vector<16x24xf32>
    %cst_155 = arith.constant dense<0xFF800000> : vector<16xf32>
    %465 = vector.multi_reduction <maximumf>, %464, %cst_155 [1] : vector<16x24xf32> to vector<16xf32>
    %466 = vector.shape_cast %465 : vector<16xf32> to vector<16x1xf32>
    %467 = vector.broadcast %466 : vector<16x1xf32> to vector<16x24xf32>
    %468 = arith.subf %464, %467 : vector<16x24xf32>
    %469 = math.exp %468 : vector<16x24xf32>
    %cst_156 = arith.constant dense<0.000000e+00> : vector<16xf32>
    %470 = vector.multi_reduction <add>, %469, %cst_156 [1] : vector<16x24xf32> to vector<16xf32>
    %471 = vector.shape_cast %470 : vector<16xf32> to vector<16x1xf32>
    %472 = tpu.reciprocal %471 {approx = true} : vector<16x1xf32> -> vector<16x1xf32>
    %473 = vector.broadcast %472 : vector<16x1xf32> to vector<16x24xf32>
    %474 = arith.mulf %469, %473 : vector<16x24xf32>
    %475 = vector.extract_strided_slice %422 {offsets = [0, 16], sizes = [24, 8], strides = [1, 1]} : vector<24x32xf32> to vector<24x8xf32>
    %cst_157 = arith.constant dense<0.000000e+00> : vector<16x8xf32>
    %476 = tpu.matmul %474, %475, %cst_157 {dimension_numbers = #tpu.dot_dimension_numbers<[1], [0], [0], [1], [0, 0, 1, 1], [], []>} : vector<16x24xf32>, vector<24x8xf32>, vector<16x8xf32> -> vector<16x8xf32>
    %477 = vector.extract_strided_slice %415 {offsets = [0, 24], sizes = [16, 8], strides = [1, 1]} : vector<16x32xf32> to vector<16x8xf32>
    %478 = vector.extract_strided_slice %421 {offsets = [0, 24], sizes = [24, 8], strides = [1, 1]} : vector<24x32xf32> to vector<24x8xf32>
    "tpu.trace_start"() <{level = 10 : i32, message = "rd,sd->rs"}> : () -> ()
    %cst_158 = arith.constant dense<0.000000e+00> : vector<16x24xf32>
    %479 = tpu.matmul %477, %478, %cst_158 {dimension_numbers = #tpu.dot_dimension_numbers<[1], [1], [0], [0], [0, 0, 1, 0], [], []>} : vector<16x8xf32>, vector<24x8xf32>, vector<16x24xf32> -> vector<16x24xf32>
    "tpu.trace_stop"() : () -> ()
    %cst_159 = arith.constant 0.353553385 : f32
    %480 = vector.broadcast %cst_159 : f32 to vector<16x24xf32>
    %481 = arith.mulf %479, %480 : vector<16x24xf32>
    %482 = arith.addf %481, %2 : vector<16x24xf32>
    %cst_160 = arith.constant dense<0xFF800000> : vector<16xf32>
    %483 = vector.multi_reduction <maximumf>, %482, %cst_160 [1] : vector<16x24xf32> to vector<16xf32>
    %484 = vector.shape_cast %483 : vector<16xf32> to vector<16x1xf32>
    %485 = vector.broadcast %484 : vector<16x1xf32> to vector<16x24xf32>
    %486 = arith.subf %482, %485 : vector<16x24xf32>
    %487 = math.exp %486 : vector<16x24xf32>
    %cst_161 = arith.constant dense<0.000000e+00> : vector<16xf32>
    %488 = vector.multi_reduction <add>, %487, %cst_161 [1] : vector<16x24xf32> to vector<16xf32>
    %489 = vector.shape_cast %488 : vector<16xf32> to vector<16x1xf32>
    %490 = tpu.reciprocal %489 {approx = true} : vector<16x1xf32> -> vector<16x1xf32>
    %491 = vector.broadcast %490 : vector<16x1xf32> to vector<16x24xf32>
    %492 = arith.mulf %487, %491 : vector<16x24xf32>
    %493 = vector.extract_strided_slice %422 {offsets = [0, 24], sizes = [24, 8], strides = [1, 1]} : vector<24x32xf32> to vector<24x8xf32>
    %cst_162 = arith.constant dense<0.000000e+00> : vector<16x8xf32>
    %494 = tpu.matmul %492, %493, %cst_162 {dimension_numbers = #tpu.dot_dimension_numbers<[1], [0], [0], [1], [0, 0, 1, 1], [], []>} : vector<16x24xf32>, vector<24x8xf32>, vector<16x8xf32> -> vector<16x8xf32>
    %495 = tpu.concatenate %440, %458, %476, %494 in 1 : vector<16x8xf32>, vector<16x8xf32>, vector<16x8xf32>, vector<16x8xf32> -> vector<16x32xf32>
    %496 = vector.extract_strided_slice %409 {offsets = [0, 96], sizes = [32, 32], strides = [1, 1]} : vector<32x128xf32> to vector<32x32xf32>
    %cst_163 = arith.constant dense<0.000000e+00> : vector<16x32xf32>
    %497 = tpu.matmul %495, %496, %cst_163 {dimension_numbers = #tpu.dot_dimension_numbers<[1], [0], [0], [1], [0, 0, 1, 1], [], []>} : vector<16x32xf32>, vector<32x32xf32>, vector<16x32xf32> -> vector<16x32xf32>
    %498 = vector.extract_strided_slice %410 {offsets = [0, 96], sizes = [1, 32], strides = [1, 1]} : vector<1x128xf32> to vector<1x32xf32>
    %499 = vector.broadcast %498 : vector<1x32xf32> to vector<16x32xf32>
    %500 = arith.addf %497, %499 : vector<16x32xf32>
    %501 = arith.addf %407, %500 : vector<16x32xf32>
    %c3_164 = arith.constant 3 : index
    %c64_165 = arith.constant 64 : index
    %502 = vector.load %arg8[%c3_164, %c64_165] : memref<8x128xf32, #tpu.memory_space<vmem>>, vector<1x32xf32>
    %c3_166 = arith.constant 3 : index
    %c96_167 = arith.constant 96 : index
    %503 = vector.load %arg8[%c3_166, %c96_167] : memref<8x128xf32, #tpu.memory_space<vmem>>, vector<1x32xf32>
    %cst_168 = arith.constant dense<0.000000e+00> : vector<16xf32>
    %504 = vector.multi_reduction <add>, %501, %cst_168 [1] : vector<16x32xf32> to vector<16xf32>
    %505 = vector.shape_cast %504 : vector<16xf32> to vector<16x1xf32>
    %cst_169 = arith.constant 3.200000e+01 : f32
    %506 = vector.broadcast %cst_169 : f32 to vector<16x1xf32>
    %507 = arith.divf %505, %506 : vector<16x1xf32>
    %508 = vector.broadcast %507 : vector<16x1xf32> to vector<16x32xf32>
    %509 = arith.subf %501, %508 : vector<16x32xf32>
    %510 = vector.broadcast %507 : vector<16x1xf32> to vector<16x32xf32>
    %511 = arith.subf %501, %510 : vector<16x32xf32>
    %512 = arith.mulf %509, %511 : vector<16x32xf32>
    %cst_170 = arith.constant dense<0.000000e+00> : vector<16xf32>
    %513 = vector.multi_reduction <add>, %512, %cst_170 [1] : vector<16x32xf32> to vector<16xf32>
    %514 = vector.shape_cast %513 : vector<16xf32> to vector<16x1xf32>
    %cst_171 = arith.constant 3.200000e+01 : f32
    %515 = vector.broadcast %cst_171 : f32 to vector<16x1xf32>
    %516 = arith.divf %514, %515 : vector<16x1xf32>
    %517 = vector.broadcast %507 : vector<16x1xf32> to vector<16x32xf32>
    %518 = arith.subf %501, %517 : vector<16x32xf32>
    %cst_172 = arith.constant 9.99999974E-6 : f32
    %519 = vector.broadcast %cst_172 : f32 to vector<16x1xf32>
    %520 = arith.addf %516, %519 : vector<16x1xf32>
    %521 = math.rsqrt %520 : vector<16x1xf32>
    %522 = vector.broadcast %521 : vector<16x1xf32> to vector<16x32xf32>
    %523 = arith.mulf %518, %522 : vector<16x32xf32>
    %524 = vector.broadcast %502 : vector<1x32xf32> to vector<16x32xf32>
    %525 = arith.mulf %523, %524 : vector<16x32xf32>
    %526 = vector.broadcast %503 : vector<1x32xf32> to vector<16x32xf32>
    %527 = arith.addf %525, %526 : vector<16x32xf32>
    %c1_173 = arith.constant 1 : index
    %c0_174 = arith.constant 0 : index
    %c0_175 = arith.constant 0 : index
    %528 = vector.load %arg6[%c1_173, %c0_174, %c0_175] : memref<2x32x64xf32, #tpu.memory_space<vmem>>, vector<1x32x64xf32>
    %529 = vector.shape_cast %528 : vector<1x32x64xf32> to vector<32x64xf32>
    %cst_176 = arith.constant dense<0.000000e+00> : vector<16x64xf32>
    %530 = tpu.matmul %527, %529, %cst_176 {dimension_numbers = #tpu.dot_dimension_numbers<[1], [0], [0], [1], [0, 0, 1, 1], [], []>} : vector<16x32xf32>, vector<32x64xf32>, vector<16x64xf32> -> vector<16x64xf32>
    %c5 = arith.constant 5 : index
    %c0_177 = arith.constant 0 : index
    %531 = vector.load %arg8[%c5, %c0_177] : memref<8x128xf32, #tpu.memory_space<vmem>>, vector<1x64xf32>
    %532 = vector.broadcast %531 : vector<1x64xf32> to vector<16x64xf32>
    %533 = arith.addf %530, %532 : vector<16x64xf32>
    %cst_178 = arith.constant 0.000000e+00 : f32
    %534 = vector.broadcast %cst_178 : f32 to vector<16x64xf32>
    %535 = arith.maximumf %533, %534 : vector<16x64xf32>
    %c1_179 = arith.constant 1 : index
    %c0_180 = arith.constant 0 : index
    %c0_181 = arith.constant 0 : index
    %536 = vector.load %arg7[%c1_179, %c0_180, %c0_181] : memref<2x64x32xf32, #tpu.memory_space<vmem>>, vector<1x64x32xf32>
    %537 = vector.shape_cast %536 : vector<1x64x32xf32> to vector<64x32xf32>
    %cst_182 = arith.constant dense<0.000000e+00> : vector<16x32xf32>
    %538 = tpu.matmul %535, %537, %cst_182 {dimension_numbers = #tpu.dot_dimension_numbers<[1], [0], [0], [1], [0, 0, 1, 1], [], []>} : vector<16x64xf32>, vector<64x32xf32>, vector<16x32xf32> -> vector<16x32xf32>
    %c4 = arith.constant 4 : index
    %c64_183 = arith.constant 64 : index
    %539 = vector.load %arg8[%c4, %c64_183] : memref<8x128xf32, #tpu.memory_space<vmem>>, vector<1x32xf32>
    %540 = vector.broadcast %539 : vector<1x32xf32> to vector<16x32xf32>
    %541 = arith.addf %538, %540 : vector<16x32xf32>
    %542 = arith.addf %527, %541 : vector<16x32xf32>
    %c4_184 = arith.constant 4 : index
    %c0_185 = arith.constant 0 : index
    %543 = vector.load %arg8[%c4_184, %c0_185] : memref<8x128xf32, #tpu.memory_space<vmem>>, vector<1x32xf32>
    %c4_186 = arith.constant 4 : index
    %c32_187 = arith.constant 32 : index
    %544 = vector.load %arg8[%c4_186, %c32_187] : memref<8x128xf32, #tpu.memory_space<vmem>>, vector<1x32xf32>
    %cst_188 = arith.constant dense<0.000000e+00> : vector<16xf32>
    %545 = vector.multi_reduction <add>, %542, %cst_188 [1] : vector<16x32xf32> to vector<16xf32>
    %546 = vector.shape_cast %545 : vector<16xf32> to vector<16x1xf32>
    %cst_189 = arith.constant 3.200000e+01 : f32
    %547 = vector.broadcast %cst_189 : f32 to vector<16x1xf32>
    %548 = arith.divf %546, %547 : vector<16x1xf32>
    %549 = vector.broadcast %548 : vector<16x1xf32> to vector<16x32xf32>
    %550 = arith.subf %542, %549 : vector<16x32xf32>
    %551 = vector.broadcast %548 : vector<16x1xf32> to vector<16x32xf32>
    %552 = arith.subf %542, %551 : vector<16x32xf32>
    %553 = arith.mulf %550, %552 : vector<16x32xf32>
    %cst_190 = arith.constant dense<0.000000e+00> : vector<16xf32>
    %554 = vector.multi_reduction <add>, %553, %cst_190 [1] : vector<16x32xf32> to vector<16xf32>
    %555 = vector.shape_cast %554 : vector<16xf32> to vector<16x1xf32>
    %cst_191 = arith.constant 3.200000e+01 : f32
    %556 = vector.broadcast %cst_191 : f32 to vector<16x1xf32>
    %557 = arith.divf %555, %556 : vector<16x1xf32>
    %558 = vector.broadcast %548 : vector<16x1xf32> to vector<16x32xf32>
    %559 = arith.subf %542, %558 : vector<16x32xf32>
    %cst_192 = arith.constant 9.99999974E-6 : f32
    %560 = vector.broadcast %cst_192 : f32 to vector<16x1xf32>
    %561 = arith.addf %557, %560 : vector<16x1xf32>
    %562 = math.rsqrt %561 : vector<16x1xf32>
    %563 = vector.broadcast %562 : vector<16x1xf32> to vector<16x32xf32>
    %564 = arith.mulf %559, %563 : vector<16x32xf32>
    %565 = vector.broadcast %543 : vector<1x32xf32> to vector<16x32xf32>
    %566 = arith.mulf %564, %565 : vector<16x32xf32>
    %567 = vector.broadcast %544 : vector<1x32xf32> to vector<16x32xf32>
    %568 = arith.addf %566, %567 : vector<16x32xf32>
    %c6 = arith.constant 6 : index
    %c0_193 = arith.constant 0 : index
    %569 = vector.load %arg8[%c6, %c0_193] : memref<8x128xf32, #tpu.memory_space<vmem>>, vector<1x32xf32>
    %c6_194 = arith.constant 6 : index
    %c32_195 = arith.constant 32 : index
    %570 = vector.load %arg8[%c6_194, %c32_195] : memref<8x128xf32, #tpu.memory_space<vmem>>, vector<1x32xf32>
    %cst_196 = arith.constant dense<0.000000e+00> : vector<16xf32>
    %571 = vector.multi_reduction <add>, %568, %cst_196 [1] : vector<16x32xf32> to vector<16xf32>
    %572 = vector.shape_cast %571 : vector<16xf32> to vector<16x1xf32>
    %cst_197 = arith.constant 3.200000e+01 : f32
    %573 = vector.broadcast %cst_197 : f32 to vector<16x1xf32>
    %574 = arith.divf %572, %573 : vector<16x1xf32>
    %575 = vector.broadcast %574 : vector<16x1xf32> to vector<16x32xf32>
    %576 = arith.subf %568, %575 : vector<16x32xf32>
    %577 = vector.broadcast %574 : vector<16x1xf32> to vector<16x32xf32>
    %578 = arith.subf %568, %577 : vector<16x32xf32>
    %579 = arith.mulf %576, %578 : vector<16x32xf32>
    %cst_198 = arith.constant dense<0.000000e+00> : vector<16xf32>
    %580 = vector.multi_reduction <add>, %579, %cst_198 [1] : vector<16x32xf32> to vector<16xf32>
    %581 = vector.shape_cast %580 : vector<16xf32> to vector<16x1xf32>
    %cst_199 = arith.constant 3.200000e+01 : f32
    %582 = vector.broadcast %cst_199 : f32 to vector<16x1xf32>
    %583 = arith.divf %581, %582 : vector<16x1xf32>
    %584 = vector.broadcast %574 : vector<16x1xf32> to vector<16x32xf32>
    %585 = arith.subf %568, %584 : vector<16x32xf32>
    %cst_200 = arith.constant 9.99999974E-6 : f32
    %586 = vector.broadcast %cst_200 : f32 to vector<16x1xf32>
    %587 = arith.addf %583, %586 : vector<16x1xf32>
    %588 = math.rsqrt %587 : vector<16x1xf32>
    %589 = vector.broadcast %588 : vector<16x1xf32> to vector<16x32xf32>
    %590 = arith.mulf %585, %589 : vector<16x32xf32>
    %591 = vector.broadcast %569 : vector<1x32xf32> to vector<16x32xf32>
    %592 = arith.mulf %590, %591 : vector<16x32xf32>
    %593 = vector.broadcast %570 : vector<1x32xf32> to vector<16x32xf32>
    %594 = arith.addf %592, %593 : vector<16x32xf32>
    %c0_201 = arith.constant 0 : index
    %c0_202 = arith.constant 0 : index
    %595 = vector.load %arg9[%c0_201, %c0_202] : memref<32x128xf32, #tpu.memory_space<vmem>>, vector<32x128xf32>
    %cst_203 = arith.constant dense<0.000000e+00> : vector<16x128xf32>
    %596 = tpu.matmul %594, %595, %cst_203 {dimension_numbers = #tpu.dot_dimension_numbers<[1], [0], [0], [1], [0, 0, 1, 1], [], []>} : vector<16x32xf32>, vector<32x128xf32>, vector<16x128xf32> -> vector<16x128xf32>
    %c7 = arith.constant 7 : index
    %c0_204 = arith.constant 0 : index
    %597 = vector.load %arg8[%c7, %c0_204] : memref<8x128xf32, #tpu.memory_space<vmem>>, vector<1x128xf32>
    %598 = vector.broadcast %597 : vector<1x128xf32> to vector<16x128xf32>
    %599 = arith.addf %596, %598 : vector<16x128xf32>
    %c0_205 = arith.constant 0 : index
    %c0_206 = arith.constant 0 : index
    %600 = vector.load %arg10[%c0_205, %c0_206] : memref<16x128xf32, #tpu.memory_space<vmem>>, vector<16x128xf32>
    tpu.vector_store %arg10[%c0_205, %c0_206], %599 {strides = array<i32>} : memref<16x128xf32, #tpu.memory_space<vmem>>, vector<16x128xf32>,
    return
  }
}

</mosaic_0001>

<bundles_post_ra>
// kernel: eq.15
= control target key start
LH: loop header
LB: loop body
LE: loop exit
PB: predicated region body
PF: predicated region fallthrough
CT: control target
= control target key end

     0   :  { %vm7_vm0 = vcmask 64512   ;;  %vm13_vm1 = vcmask 130112   ;;  %s39_s0 = inlined_call_operand.vmem [shape: s32[2,8], index: 0, kind: input, shape index: {}]   ;;  %s40_s1 = inlined_call_operand.vmem [shape: s32[16], index: 1, kind: output, shape index: {}]  }
   0x1   :  { %v4_v0 = vld [vmem:[%s39_s0] sm:$0x3]  ;;  %s22_s0 = smov 8  }
   0x2   :  { %5 = vst [vmem:[#allocation1] sm:$0x3] %v4_v0 }
   0x9   :  { %v10_v1 = vld [vmem:[#allocation1 + $0x1] sm:$0x1]   ;;  %v6_v2 = vld [vmem:[#allocation1] sm:$0x1]  }
   0xa   :  { %11 = vrot.lane.b32.xlu0 %v10_v1, %s22_s0  ;;  %8 = vst.msk [vmem:[#allocation0] sm:$0x1] %vm7_vm0, %v6_v2  }
  0x7c   :  { %v12_v3 = vpop.permute.xlu0 %11  }
  0x7d   :  { %14 = vst.msk [vmem:[#allocation0] sm:$0x1] %vm13_vm1, %v12_v3  }
  0x84   :  { %v18_v4 = vld [vmem:[#allocation0] sm:$0x1] }
  0x85   :  { %20 = vst [vmem:[%s40_s1] sm:$0x1] %v18_v4 }

// kernel: eq.25
= control target key start
LH: loop header
LB: loop body
LE: loop exit
PB: predicated region body
PF: predicated region fallthrough
CT: control target
= control target key end

     0   :  { %vm7_vm0 = vcmask 97280   ;;  %vm13_vm1 = vcmask 195680   ;;  %s39_s0 = inlined_call_operand.vmem [shape: s32[2,12], index: 0, kind: input, shape index: {}]   ;;  %s40_s1 = inlined_call_operand.vmem [shape: s32[24], index: 1, kind: output, shape index: {}]  }
   0x1   :  { %v4_v0 = vld [vmem:[%s39_s0] sm:$0x3]  ;;  %s22_s0 = smov 12  }
   0x2   :  { %5 = vst [vmem:[#allocation1] sm:$0x3] %v4_v0 }
   0x9   :  { %v10_v1 = vld [vmem:[#allocation1 + $0x1] sm:$0x1]   ;;  %v6_v2 = vld [vmem:[#allocation1] sm:$0x1]  }
   0xa   :  { %11 = vrot.lane.b32.xlu0 %v10_v1, %s22_s0  ;;  %8 = vst.msk [vmem:[#allocation0] sm:$0x1] %vm7_vm0, %v6_v2  }
  0x7c   :  { %v12_v3 = vpop.permute.xlu0 %11  }
  0x7d   :  { %14 = vst.msk [vmem:[#allocation0] sm:$0x1] %vm13_vm1, %v12_v3  }
  0x84   :  { %v18_v4 = vld [vmem:[#allocation0] sm:$0x1] }
  0x85   :  { %20 = vst [vmem:[%s40_s1] sm:$0x1] %v18_v4 }

// kernel: tile.18
= control target key start
LH: loop header
LB: loop body
LE: loop exit
PB: predicated region body
PF: predicated region fallthrough
CT: control target
= control target key end

     0   :  { %s154_s0 = inlined_call_operand.vmem [shape: f32[8,8], index: 0, kind: input, shape index: {}]   ;;  %s155_s1 = inlined_call_operand.vmem [shape: f32[2,8,2,8], index: 1, kind: output, shape index: {}]  }
   0x1   :  { %v4_v0 = vld [vmem:[%s154_s0] ss:$0 sm:$0xff]  ;;  %v51_v1 = vld [vmem:[%s154_s0 + $0x1] ss:$0 sm:$0xff]  ;;  %v54_v2 = vld [vmem:[%s154_s0 + $0x2] ss:$0 sm:$0xff] }
   0x2   :  { %5 = vst [vmem:[%s155_s1] sm:$0x3] %v4_v0  ;;  %50 = vst [vmem:[%s155_s1 + $0x10] sm:$0x3] %v4_v0  ;;  %v57_v3 = vld [vmem:[%s154_s0 + $0x3] ss:$0 sm:$0xff] }
   0x3   :  { %52 = vst [vmem:[%s155_s1 + $0x2] sm:$0x3] %v51_v1  ;;  %53 = vst [vmem:[%s155_s1 + $0x12] sm:$0x3] %v51_v1  ;;  %v60_v4 = vld [vmem:[%s154_s0 + $0x4] ss:$0 sm:$0xff] }
   0x4   :  { %55 = vst [vmem:[%s155_s1 + $0x4] sm:$0x3] %v54_v2  ;;  %56 = vst [vmem:[%s155_s1 + $0x14] sm:$0x3] %v54_v2  ;;  %v63_v5 = vld [vmem:[%s154_s0 + $0x5] ss:$0 sm:$0xff] }
   0x5   :  { %58 = vst [vmem:[%s155_s1 + $0x6] sm:$0x3] %v57_v3  ;;  %59 = vst [vmem:[%s155_s1 + $0x16] sm:$0x3] %v57_v3  ;;  %v66_v6 = vld [vmem:[%s154_s0 + $0x6] ss:$0 sm:$0xff] }
   0x6   :  { %61 = vst [vmem:[%s155_s1 + $0x8] sm:$0x3] %v60_v4  ;;  %62 = vst [vmem:[%s155_s1 + $0x18] sm:$0x3] %v60_v4  ;;  %v69_v7 = vld [vmem:[%s154_s0 + $0x7] ss:$0 sm:$0xff] }
   0x7   :  { %64 = vst [vmem:[%s155_s1 + $0xa] sm:$0x3] %v63_v5  ;;  %65 = vst [vmem:[%s155_s1 + $0x1a] sm:$0x3] %v63_v5 }
   0x8   :  { %67 = vst [vmem:[%s155_s1 + $0xc] sm:$0x3] %v66_v6  ;;  %68 = vst [vmem:[%s155_s1 + $0x1c] sm:$0x3] %v66_v6 }
   0x9   :  { %70 = vst [vmem:[%s155_s1 + $0xe] sm:$0x3] %v69_v7  ;;  %71 = vst [vmem:[%s155_s1 + $0x1e] sm:$0x3] %v69_v7 }

// kernel: tile.19
= control target key start
LH: loop header
LB: loop body
LE: loop exit
PB: predicated region body
PF: predicated region fallthrough
CT: control target
= control target key end

     0   :  { %vm82_vm0 = vcmask 1047556   ;;  %vm84_vm1 = vcmask 64512   ;;  %vm103_vm2 = vcmask 130112   ;;  %s225_s0 = inlined_call_operand.vmem [shape: f32[2,8,2,8], index: 0, kind: input, shape index: {}]   ;;  %s226_s1 = inlined_call_operand.vmem [shape: f32[16,16], index: 1, kind: output, shape index: {}]  }
   0x1   :  { %v138_v0 = vld [vmem:[%s225_s0 + $0xe] sm:$0x3]  ;;  %v139_v1 = vld [vmem:[%s225_s0 + $0xc] sm:$0x3]  ;;  %v140_v2 = vld [vmem:[%s225_s0 + $0xa] sm:$0x3] }
   0x2   :  { %48 = vst [vmem:[#allocation0 + $0x38] sm:$0x3] %v138_v0  ;;  %53 = vst [vmem:[#allocation0 + $0x30] sm:$0x3] %v139_v1  ;;  %v141_v3 = vld [vmem:[%s225_s0 + $0x8] sm:$0x3] }
   0x3   :  { %58 = vst [vmem:[#allocation0 + $0x28] sm:$0x3] %v140_v2  ;;  %v142_v4 = vld [vmem:[%s225_s0 + $0x6] sm:$0x3]  ;;  %v143_v5 = vld [vmem:[%s225_s0 + $0x4] sm:$0x3] }
   0x4   :  { %63 = vst [vmem:[#allocation0 + $0x20] sm:$0x3] %v141_v3  ;;  %68 = vst [vmem:[#allocation0 + $0x18] sm:$0x3] %v142_v4  ;;  %v144_v6 = vld [vmem:[%s225_s0 + $0x2] sm:$0x3] }
   0x5   :  { %73 = vst [vmem:[#allocation0 + $0x10] sm:$0x3] %v143_v5  ;;  %v78_v7 = vld [vmem:[%s225_s0] sm:$0x3]  ;;  %77 = vst [vmem:[#allocation0 + $0x8] sm:$0x3] %v144_v6 }
   0x6   :  { %79 = vst [vmem:[#allocation0] sm:$0x3] %v78_v7  ;;  %v130_v8 = vld [vmem:[%s225_s0 + $0x1e] sm:$0x3]  ;;  %v131_v9 = vld [vmem:[%s225_s0 + $0x1c] sm:$0x3] }
   0x7   :  { %v132_v10 = vld [vmem:[%s225_s0 + $0x1a] sm:$0x3]  ;;  %8 = vst [vmem:[#allocation0 + $0x78] sm:$0x3] %v130_v8  ;;  %13 = vst [vmem:[#allocation0 + $0x70] sm:$0x3] %v131_v9 }
   0x8   :  { %18 = vst [vmem:[#allocation0 + $0x68] sm:$0x3] %v132_v10  ;;  %v133_v11 = vld [vmem:[%s225_s0 + $0x18] sm:$0x3]  ;;  %v134_v12 = vld [vmem:[%s225_s0 + $0x16] sm:$0x3] }
   0x9   :  { %v135_v13 = vld [vmem:[%s225_s0 + $0x14] sm:$0x3]  ;;  %23 = vst [vmem:[#allocation0 + $0x60] sm:$0x3] %v133_v11  ;;  %28 = vst [vmem:[#allocation0 + $0x58] sm:$0x3] %v134_v12 }
   0xa   :  { %33 = vst [vmem:[#allocation0 + $0x50] sm:$0x3] %v135_v13  ;;  %v136_v14 = vld [vmem:[%s225_s0 + $0x12] sm:$0x3]  ;;  %v137_v15 = vld [vmem:[%s225_s0 + $0x10] sm:$0x3] }
   0xb   :  { %38 = vst [vmem:[#allocation0 + $0x48] sm:$0x3] %v136_v14  ;;  %43 = vst [vmem:[#allocation0 + $0x40] sm:$0x3] %v137_v15  ;;  %s148_s0 = smov 8  }
   0xc   :  { %v98_v16 = vld [vmem:[#allocation0 + $0x1] ss:$8 sm:$0xf0]   ;;  %v81_v17 = vld [vmem:[#allocation0] ss:$8 sm:$0xf0]  }
   0xd   :  { %v96_v18 = vld [vmem:[#allocation0 + $0x1] ss:$8 sm:$0xf]   ;;  %v80_v19 = vld [vmem:[#allocation0] ss:$8 sm:$0xf]  }
   0xe   :  { %v100_v20 = vsel %vm82_vm0, %v98_v16, %v96_v18  ;;  %v83_v21 = vsel %vm82_vm0, %v81_v17, %v80_v19 }
   0xf   :  { %101 = vrot.lane.b32.xlu0 %v100_v20, %s148_s0  ;;  %85 = vst.msk [vmem:[%s226_s1] sm:$0xff] %vm84_vm1, %v83_v21  }
  0x10   :  { %v108_v22 = vld [vmem:[#allocation0 + $0x41] ss:$8 sm:$0xf0]   ;;  %v89_v23 = vld [vmem:[#allocation0 + $0x40] ss:$8 sm:$0xf0]  }
  0x12   :  { %v106_v24 = vld [vmem:[#allocation0 + $0x41] ss:$8 sm:$0xf]   ;;  %v87_v25 = vld [vmem:[#allocation0 + $0x40] ss:$8 sm:$0xf]  }
  0x13   :  { %v110_v26 = vsel %vm82_vm0, %v108_v22, %v106_v24  ;;  %v91_v27 = vsel %vm82_vm0, %v89_v23, %v87_v25 }
  0x14   :  { %145 = vst.msk [vmem:[%s226_s1 + $0x8] sm:$0xff] %vm84_vm1, %v91_v27   ;;  %111 = vrot.lane.b32.xlu0 %v110_v26, %s148_s0 }
  0x81   :  { %v102_v28 = vpop.permute.xlu0 %101  }
  0x82   :  { %104 = vst.msk [vmem:[%s226_s1] sm:$0xff] %vm103_vm2, %v102_v28  }
  0x86   :  { %v112_v29 = vpop.permute.xlu0 %111  }
  0x87   :  { %146 = vst.msk [vmem:[%s226_s1 + $0x8] sm:$0xff] %vm103_vm2, %v112_v29  }

// kernel: decoder_vgg_trans_forward.1
= control target key start
LH: loop header
LB: loop body
LE: loop exit
PB: predicated region body
PF: predicated region fallthrough
CT: control target
= control target key end

     0   :  { %v6915_v0 = vmov 0   ;;  %v37_v19 = vlaneseq  ;;  %vm61_vm0 = vcmask 523264   ;;  %v6916_v22 = vmov 0.0   ;;  %s6918_s25 = smov 96   ;;  %s6919_s26 = smov 88   ;;  %s7987_s0 = inlined_call_operand.vmem [shape: s32[16,1], index: 0, kind: input, shape index: {}]   ;;  %s7988_s3 = inlined_call_operand.vmem [shape: f32[64,32], index: 3, kind: input, shape index: {}]   ;;  %s7989_s4 = inlined_call_operand.vmem [shape: f32[4,32,128], index: 4, kind: input, shape index: {}]   ;;  %s7990_s1 = inlined_call_operand.vmem [shape: f32[16,72], index: 1, kind: input, shape index: {}]   ;;  %s7991_s5 = inlined_call_operand.vmem [shape: f32[4,128], index: 5, kind: input, shape index: {}]   ;;  %s7992_s8 = inlined_call_operand.vmem [shape: f32[8,128], index: 8, kind: input, shape index: {}]   ;;  %s7993_s2 = inlined_call_operand.vmem [shape: f32[24,32], index: 2, kind: input, shape index: {}]   ;;  %s7994_s6 = inlined_call_operand.vmem [shape: f32[2,32,64], index: 6, kind: input, shape index: {}]   ;;  %s7995_s7 = inlined_call_operand.vmem [shape: f32[2,64,32], index: 7, kind: input, shape index: {}]   ;;  %s7996_s9 = inlined_call_operand.vmem [shape: f32[32,128], index: 9, kind: input, shape index: {}]   ;;  %s7997_s10 = inlined_call_operand.vmem [shape: f32[16,128], index: 10, kind: output, shape index: {}]  }
   0x1   :  { %6545 = vset.pattern.permute.xlu0 %v6915_v0  ;;  %v39_v1 = vld [vmem:[%s7987_s0] sm:$0xff]  ;;  %v54_v3 = vld [vmem:[%s7988_s3 + $0x8] sm:$0xff]  ;;  %v55_v4 = vld [vmem:[%s7988_s3 + $0x10] sm:$0xff]  ;;  %vm159_vm3 = vcmask 261120   ;;  %vm247_vm4 = vcmask 64512   ;;  %vm343_vm6 = vcmask 130048  }
   0x2   :  { %v53_v2 = vld [vmem:[%s7988_s3] sm:$0xff]  ;;  %42 = vperm.xlu0 %6545, %v39_v1   ;;  %v56_v5 = vld [vmem:[%s7988_s3 + $0x18] sm:$0xff]  ;;  %v40_v6 = vld [vmem:[%s7987_s0 + $0x8] sm:$0xff]  ;;  %v38_v20 = vand.u32 127, %v37_v19  ;;  %s6920_s27 = smov 64   ;;  %s6921_s28 = smov 80  }
   0x3   :  { %v6218_v7 = vpack.c.bf16 %v54_v3, %v53_v2  ;;  %v6222_v8 = vpack.c.bf16 %v56_v5, %v55_v4  ;;  %v57_v9 = vld [vmem:[%s7988_s3 + $0x20] sm:$0xff]  ;;  %v58_v10 = vld [vmem:[%s7988_s3 + $0x28] sm:$0xff]  ;;  %v59_v12 = vld [vmem:[%s7988_s3 + $0x30] sm:$0xff]  ;;  %s6922_s29 = smov 72   ;;  %s6923_s30 = smov 56   ;;  %vm1093_vm7 = vcmask 195584  }
   0x4   :  { %v6226_v11 = vpack.c.bf16 %v58_v10, %v57_v9  ;;  %v60_v13 = vld [vmem:[%s7988_s3 + $0x38] sm:$0xff]  ;;  %v7022_v14 = vld [vmem:[%s7989_s4] sm:$0xff]  ;;  %v7027_v15 = vld [vmem:[%s7989_s4 + $0x8] sm:$0xff]  ;;  %s6924_s0 = smov 112   ;;  %s6925_s11 = smov 104   ;;  %vm6933_vm8 = vmmov 0  }
   0x5   :  { %6219 = vmatprep.subr.bf16.mxu0 %v6218_v7  ;;  %v6586_v16 = vpack.i.bf16 %v7027_v15, %v7022_v14  ;;  %v6234_v17 = vpack.c.bf16 %v7027_v15, %v7022_v14  ;;  %v6230_v18 = vpack.c.bf16 %v60_v13, %v59_v12  ;;  %v7040_v26 = vld [vmem:[%s7989_s4 + $0x10] sm:$0xff]  ;;  %v7045_v27 = vld [vmem:[%s7989_s4 + $0x18] sm:$0xff]  ;;  %v7052_v32 = vld [vmem:[%s7990_s1] sm:$0xff]  ;;  %s6926_s12 = smov 48   ;;  %s6927_s13 = smov 32  }
   0x6   :  { %45 = vperm.xlu0 %6545, %v40_v6   ;;  %6221 = vmatpush3.bf16.msra.mxu0 %v6218_v7  ;;  %v6238_v28 = vpack.c.bf16 %v7045_v27, %v7040_v26  ;;  %v7057_v33 = vld [vmem:[%s7990_s1 + $0x8] sm:$0xff]  ;;  %v7072_v37 = vld [vmem:[%s7991_s5] ss:$0 sm:$0xff]  ;;  %s6917_s1 = smov 120   ;;  %vm7100_vm5 = vmpackc.low %vm247_vm4, %vm247_vm4  ;;  %s7998_s14 = smov 40  }
   0x7   :  { %6223 = vmatprep.subr.bf16.mxu0 %v6222_v8  ;;  %6235 = vmatprep.subr.bf16.mxu1 %v6234_v17  ;;  %s6929_s15 = smov 8   ;;  %s6930_s3 = smov 16  }
   0x8   :  { %6237 = vmatpush3.bf16.msra.mxu1 %v6234_v17  ;;  %s7999_s16 = smov 24  }
   0x9   :  { %6239 = vmatprep.subr.bf16.mxu1 %v6238_v28 }
   0xa   :  { %6225 = vmatpush3.bf16.msra.mxu0 %v6222_v8 }
   0xb   :  { %6227 = vmatprep.subr.bf16.mxu0 %v6226_v11 }
   0xc   :  { %6241 = vmatpush3.bf16.msra.mxu1 %v6238_v28 }
   0xe   :  { %6229 = vmatpush3.bf16.msra.mxu0 %v6226_v11 }
   0xf   :  { %6231 = vmatprep.subr.bf16.mxu0 %v6230_v18 }
  0x12   :  { %6233 = vmatpush3.bf16.msra.mxu0 %v6230_v18 }
  0x81   :  { %v43_v21 = vpop.permute.xlu0 %42 }
  0x82   :  { %vm47_vm1 = vcmp.eq.s32.totalorder %v43_v21, %v38_v20 }
  0x83   :  { %v5318_v23 = vsel %vm47_vm1, 1.0, %v6916_v22 }
  0x84   :  { %5766 = vmatprep.mubr.msk.f32.mxu0 %vm61_vm0, %v5318_v23 }
  0x85   :  { %v46_v24 = vpop.permute.xlu0 %45 }
  0x86   :  { %vm48_vm2 = vcmp.eq.s32.totalorder %v46_v24, %v38_v20 }
  0x87   :  { %v5319_v25 = vsel %vm48_vm2, 1.0, %v6916_v22 }
  0x88   :  { %5767 = vmatmul.mubr.msk.f32.vlgmr.msra.gmra.mrb[0].mxu0 %vm61_vm0, %v5319_v25 }
 0x15b   :  { %v5768_v29 = vpop.f32.mrb[0].mxu0 }
 0x15c   :  { %v144_v30 = vmul.f32 5.656854, %v5768_v29  ;;  %v134_v31 = vpop.f32.mrb[1].mxu0 }
 0x15d   :  { %v143_v34 = vmul.f32 5.656854, %v134_v31 }
 0x15e   :  { %v7063_v36 = vadd.f32 %v144_v30, %v7057_v33 }
 0x15f   :  { %v7060_v35 = vadd.f32 %v143_v34, %v7052_v32 }
 0x161   :  { %5777 = vmatprep.mubr.msk.f32.mxu1 %vm159_vm3, %v7060_v35 }
 0x162   :  { %5778 = vmatmul.mubr.msk.f32.vlgmr.msra.gmra.mrb[0].mxu1 %vm159_vm3, %v7063_v36 }
 0x235   :  { %v5779_v38 = vpop.f32.mrb[0].mxu1 }
 0x236   :  { %v7075_v39 = vadd.f32 %v5779_v38, %v7072_v37  ;;  %v232_v40 = vpop.f32.mrb[1].mxu1 }
 0x237   :  { %v7078_v41 = vadd.f32 %v7072_v37, %v232_v40 }
 0x239   :  { %453 = vrot.lane.b32.xlu0 %v7078_v41, %s6917_s1  ;;  %5784 = vmatprep.mubr.msk.f32.mxu1 %vm247_vm4, %v7078_v41  ;;  %v7086_v42 = vpack.i.bf16 %v7075_v39, %v7078_v41 }
 0x23b   :  { %6547 = vrot.lane.b32.xlu1 %v7086_v42, %s6918_s25 }
 0x23d   :  { %335 = vrot.lane.b32.xlu0 %v7052_v32, %s6918_s25 }
 0x23f   :  { %6552 = vrot.lane.b32.xlu1 %v7086_v42, %s6919_s26 }
 0x243   :  { %455 = vrot.lane.b32.xlu1 %v7075_v39, %s6917_s1 }
 0x247   :  { %337 = vrot.lane.b32.xlu1 %v7057_v33, %s6918_s25 }
 0x2ab   :  { %v454_v52 = vpop.permute.xlu0 %453 }
 0x2ad   :  { %v6548_v43 = vpop.permute.xlu1 %6547 }
 0x2ae   :  { %v6550_v44 = vunpack.i.h.bf16 %v6548_v43  ;;  %v6549_v45 = vunpack.i.l.bf16 %v6548_v43 }
 0x2af   :  { %v7118_v58 = vpop.permute.xlu0 %335 }
 0x2b0   :  { %v6242_v47 = vpack.c.bf16 %v6550_v44, %v6549_v45 }
 0x2b1   :  { %v6553_v48 = vpop.permute.xlu1 %6552 }
 0x2b2   :  { %v6555_v49 = vunpack.i.h.bf16 %v6553_v48  ;;  %v6554_v50 = vunpack.i.l.bf16 %v6553_v48  ;;  %6244 = vmatprep.subr.msk.bf16.mxu1 %vm7100_vm5, %v6242_v47 }
 0x2b3   :  { %6247 = vmatpush3.bf16.xpose.msk.msra.mxu1 %vm7100_vm5, %v6242_v47 }
 0x2b4   :  { %v6252_v51 = vpack.c.bf16 %v6555_v49, %v6554_v50 }
 0x2b5   :  { %v456_v53 = vpop.permute.xlu1 %455 }
 0x2b6   :  { %6254 = vmatprep.subr.msk.bf16.mxu1 %vm7100_vm5, %v6252_v51 }
 0x2b9   :  { %v7116_v55 = vpop.permute.xlu1 %337 }
 0x2ba   :  { %5785 = vmatmul.mubr.msk.f32.vlgmr.msra.gmra.mrb[2].mxu1 %vm247_vm4, %v7075_v39 }
 0x2bb   :  { %6257 = vmatpush3.bf16.xpose.msk.msra.mxu1 %vm7100_vm5, %v6252_v51  ;;  %5798 = vmatprep.mubr.msk.f32.mxu1 %vm247_vm4, %v454_v52 }
 0x2c2   :  { %5799 = vmatmul.mubr.msk.f32.vlgmr.msra.gmra.mrb[4].mxu1 %vm247_vm4, %v456_v53 }
 0x38d   :  { %v5786_v54 = vpop.f32.mrb[2].mxu1 }
 0x38e   :  { %v332_v56 = vmul.f32 0.35355338, %v5786_v54  ;;  %v322_v57 = vpop.f32.mrb[3].mxu1 }
 0x38f   :  { %v331_v59 = vmul.f32 0.35355338, %v322_v57 }
 0x390   :  { %v342_v60 = vadd.f32 %v7116_v55, %v332_v56 }
 0x391   :  { %v341_v61 = vadd.f32 %v7118_v58, %v331_v59 }
 0x392   :  { %v347_v62 = vsel %vm343_vm6, %v342_v60, -inf }
 0x393   :  { %348 = vmax.xlane.f32.xlu1 %v347_v62  ;;  %v344_v63 = vsel %vm343_vm6, %v341_v61, -inf }
 0x394   :  { %345 = vmax.xlane.f32.xlu0 %v344_v63 }
 0x395   :  { %v5800_v0 = vpop.f32.mrb[4].mxu1 }
 0x396   :  { %v535_v1 = vpop.f32.mrb[5].mxu1  ;;  %v545_v2 = vmul.f32 0.35355338, %v5800_v0 }
 0x397   :  { %v544_v3 = vmul.f32 0.35355338, %v535_v1 }
 0x398   :  { %v547_v6 = vadd.f32 %v545_v2, %v7116_v55 }
 0x399   :  { %v546_v4 = vadd.f32 %v544_v3, %v7118_v58 }
 0x39a   :  { %v551_v7 = vsel %vm343_vm6, %v547_v6, -inf }
 0x39b   :  { %v548_v5 = vsel %vm343_vm6, %v546_v4, -inf }
 0x39c   :  { %549 = vmax.xlane.f32.xlu0 %v548_v5 }
 0x3a0   :  { %552 = vmax.xlane.f32.xlu0 %v551_v7 }
 0x3a4   :  { %6557 = vrot.lane.b32.xlu1 %v7086_v42, %s6920_s27 }
 0x420   :  { %v349_v8 = vpop.xlane.xlu1 %348 }
 0x421   :  { %v351_v9 = vsub.f32 %v342_v60, %v349_v8  ;;  %v346_v10 = vpop.xlane.xlu0 %345 }
 0x422   :  { %v350_v11 = vsub.f32 %v341_v61, %v346_v10 }
 0x423   :  { %v354_v12 = vmul.f32 1.442695, %v351_v9 }
 0x424   :  { %v352_v13 = vmul.f32 1.442695, %v350_v11  ;;  %v6558_v17 = vpop.permute.xlu1 %6557 }
 0x425   :  { %6756 = vpow2.f32 %v354_v12  ;;  %v6560_v18 = vunpack.i.h.bf16 %v6558_v17  ;;  %v6559_v19 = vunpack.i.l.bf16 %v6558_v17 }
 0x426   :  { %6758 = vpow2.f32 %v352_v13 }
 0x427   :  { %v6248_v20 = vpack.c.bf16 %v6560_v18, %v6559_v19 }
 0x429   :  { %6249 = vmatprep.subr.bf16.mxu0 %v6248_v20  ;;  %v550_v21 = vpop.xlane.xlu0 %549 }
 0x42a   :  { %6251 = vmatpush3.bf16.msra.mxu0 %v6248_v20  ;;  %v554_v40 = vsub.f32 %v546_v4, %v550_v21 }
 0x42c   :  { %v556_v43 = vmul.f32 1.442695, %v554_v40 }
 0x42d   :  { %v553_v23 = vpop.xlane.xlu0 %552 }
 0x42e   :  { %v555_v24 = vsub.f32 %v547_v6, %v553_v23 }
 0x42f   :  { %v6757_v25 = vpop.eup %6756 }
 0x430   :  { %v6759_v28 = vpop.eup %6758  ;;  %v558_v29 = vmul.f32 1.442695, %v555_v24  ;;  %v359_v30 = vsel %vm343_vm6, %v6757_v25, 0.0 }
 0x431   :  { %360 = vadd.xlane.f32.xlu0 %v359_v30  ;;  %v356_v31 = vsel %vm343_vm6, %v6759_v28, 0.0 }
 0x432   :  { %6760 = vpow2.f32 %v558_v29  ;;  %357 = vadd.xlane.f32.xlu1 %v356_v31 }
 0x433   :  { %6762 = vpow2.f32 %v556_v43 }
 0x43c   :  { %v6761_v34 = vpop.eup %6760 }
 0x43d   :  { %v563_v38 = vsel %vm343_vm6, %v6761_v34, 0.0  ;;  %v6763_v44 = vpop.eup %6762 }
 0x43e   :  { %564 = vadd.xlane.f32.xlu0 %v563_v38  ;;  %v560_v45 = vsel %vm343_vm6, %v6763_v44, 0.0 }
 0x443   :  { %6567 = vrot.lane.b32.xlu1 %v7086_v42, %s6921_s28 }
 0x447   :  { %6572 = vrot.lane.b32.xlu1 %v7086_v42, %s6922_s29 }
 0x454   :  { %6562 = vrot.lane.b32.xlu0 %v7086_v42, %s6923_s30 }
 0x458   :  { %657 = vrot.lane.b32.xlu0 %v7078_v41, %s6924_s0 }
 0x45c   :  { %861 = vrot.lane.b32.xlu0 %v7078_v41, %s6925_s11 }
 0x46b   :  { %561 = vadd.xlane.f32.xlu1 %v560_v45 }
 0x47c   :  { %659 = vrot.lane.b32.xlu1 %v7075_v39, %s6924_s0 }
 0x480   :  { %863 = vrot.lane.b32.xlu1 %v7075_v39, %s6925_s11 }
 0x4be   :  { %v361_v47 = vpop.xlane.xlu0 %360 }
 0x4bf   :  { %6764 = vrcp.f32 %v361_v47  ;;  %v358_v48 = vpop.xlane.xlu1 %357 }
 0x4c0   :  { %6766 = vrcp.f32 %v358_v48 }
 0x4c3   :  { %v6568_v49 = vpop.permute.xlu1 %6567 }
 0x4c4   :  { %v6570_v60 = vunpack.i.h.bf16 %v6568_v49  ;;  %v6569_v61 = vunpack.i.l.bf16 %v6568_v49 }
 0x4c6   :  { %v6262_v2 = vpack.c.bf16 %v6570_v60, %v6569_v61 }
 0x4c7   :  { %v6573_v50 = vpop.permute.xlu1 %6572 }
 0x4c8   :  { %v6575_v51 = vunpack.i.h.bf16 %v6573_v50  ;;  %v6574_v52 = vunpack.i.l.bf16 %v6573_v50 }
 0x4c9   :  { %v6765_v41 = vpop.eup %6764 }
 0x4ca   :  { %v6767_v53 = vpop.eup %6766  ;;  %v6272_v54 = vpack.c.bf16 %v6575_v51, %v6574_v52  ;;  %v365_v59 = vmul.f32 %v6765_v41, %v6757_v25 }
 0x4cb   :  { %v565_v56 = vpop.xlane.xlu0 %564  ;;  %v364_v57 = vmul.f32 %v6767_v53, %v6759_v28 }
 0x4cc   :  { %6274 = vmatprep.subr.msk.bf16.mxu1 %vm7100_vm5, %v6272_v54  ;;  %6768 = vrcp.f32 %v565_v56 }
 0x4cd   :  { %5791 = vmatprep.mubr.msk.f32.mxu0 %vm343_vm6, %v364_v57  ;;  %6277 = vmatpush3.bf16.xpose.msk.msra.mxu1 %vm7100_vm5, %v6272_v54 }
 0x4ce   :  { %5792 = vmatmul.mubr.msk.f32.vlgmr.msra.gmra.mrb[2].mxu0 %vm343_vm6, %v365_v59 }
 0x4cf   :  { %v6563_v39 = vpop.permute.xlu0 %6562 }
 0x4d0   :  { %v6565_v62 = vunpack.i.h.bf16 %v6563_v39  ;;  %v6564_v63 = vunpack.i.l.bf16 %v6563_v39 }
 0x4d2   :  { %v6258_v0 = vpack.c.bf16 %v6565_v62, %v6564_v63 }
 0x4d3   :  { %v658_v1 = vpop.permute.xlu0 %657 }
 0x4d4   :  { %6259 = vmatprep.subr.bf16.mxu0 %v6258_v0 }
 0x4d5   :  { %6261 = vmatpush3.bf16.msra.mxu0 %v6258_v0 }
 0x4d6   :  { %6264 = vmatprep.subr.msk.bf16.mxu0 %vm7100_vm5, %v6262_v2  ;;  %v6769_v7 = vpop.eup %6768 }
 0x4d7   :  { %v862_v3 = vpop.permute.xlu0 %861  ;;  %v569_v10 = vmul.f32 %v6769_v7, %v6761_v34 }
 0x4d8   :  { %5826 = vmatprep.mubr.msk.f32.mxu1 %vm247_vm4, %v862_v3 }
 0x4f8   :  { %v562_v4 = vpop.xlane.xlu1 %561 }
 0x4f9   :  { %6770 = vrcp.f32 %v562_v4 }
 0x4fc   :  { %v660_v5 = vpop.permute.xlu1 %659 }
 0x500   :  { %v864_v6 = vpop.permute.xlu1 %863 }
 0x501   :  { %5827 = vmatmul.mubr.msk.f32.vlgmr.msra.gmra.mrb[6].mxu1 %vm247_vm4, %v864_v6 }
 0x503   :  { %v6771_v8 = vpop.eup %6770 }
 0x504   :  { %v568_v9 = vmul.f32 %v6771_v8, %v6763_v44 }
 0x506   :  { %5805 = vmatprep.mubr.msk.f32.mxu0 %vm343_vm6, %v568_v9 }
 0x507   :  { %5806 = vmatmul.mubr.msk.f32.vlgmr.msra.gmra.mrb[4].mxu0 %vm343_vm6, %v569_v10 }
 0x508   :  { %6267 = vmatpush3.bf16.xpose.msk.msra.mxu0 %vm7100_vm5, %v6262_v2  ;;  %5812 = vmatprep.mubr.msk.f32.mxu0 %vm247_vm4, %v658_v1  ;;  %v6591_v2 = vpack.i.bf16 %v7045_v27, %v7040_v26 }
 0x50f   :  { %5813 = vmatmul.mubr.msk.f32.vlgmr.msra.gmra.mrb[6].mxu0 %vm247_vm4, %v660_v5 }
 0x5a1   :  { %v7164_v11 = vpop.f32.mrb[2].mxu0 }
 0x5a2   :  { %v7166_v12 = vpop.f32.mrb[3].mxu0 }
 0x5d4   :  { %v5828_v13 = vpop.f32.mrb[6].mxu1 }
 0x5d5   :  { %v943_v17 = vpop.f32.mrb[7].mxu1  ;;  %v953_v31 = vmul.f32 0.35355338, %v5828_v13 }
 0x5d6   :  { %v952_v24 = vmul.f32 0.35355338, %v943_v17 }
 0x5d7   :  { %v955_v43 = vadd.f32 %v953_v31, %v7116_v55 }
 0x5d8   :  { %v954_v38 = vadd.f32 %v952_v24, %v7118_v58 }
 0x5d9   :  { %v959_v44 = vsel %vm343_vm6, %v955_v43, -inf }
 0x5da   :  { %v5807_v18 = vpop.f32.mrb[4].mxu0  ;;  %v956_v40 = vsel %vm343_vm6, %v954_v38, -inf }
 0x5db   :  { %v648_v19 = vpop.f32.mrb[5].mxu0 }
 0x5e2   :  { %v5814_v20 = vpop.f32.mrb[6].mxu0 }
 0x5e3   :  { %v749_v21 = vmul.f32 0.35355338, %v5814_v20  ;;  %v739_v23 = vpop.f32.mrb[7].mxu0 }
 0x5e4   :  { %v748_v25 = vmul.f32 0.35355338, %v739_v23 }
 0x5e5   :  { %v751_v28 = vadd.f32 %v749_v21, %v7116_v55 }
 0x5e6   :  { %v750_v29 = vadd.f32 %v748_v25, %v7118_v58 }
 0x5e7   :  { %v755_v30 = vsel %vm343_vm6, %v751_v28, -inf }
 0x5e8   :  { %756 = vmax.xlane.f32.xlu1 %v755_v30  ;;  %v752_v34 = vsel %vm343_vm6, %v750_v29, -inf }
 0x5e9   :  { %753 = vmax.xlane.f32.xlu0 %v752_v34 }
 0x5ed   :  { %957 = vmax.xlane.f32.xlu0 %v956_v40 }
 0x5f1   :  { %960 = vmax.xlane.f32.xlu0 %v959_v44 }
 0x675   :  { %v757_v48 = vpop.xlane.xlu1 %756 }
 0x676   :  { %v754_v45 = vpop.xlane.xlu0 %753  ;;  %v759_v51 = vsub.f32 %v751_v28, %v757_v48 }
 0x677   :  { %v758_v47 = vsub.f32 %v750_v29, %v754_v45 }
 0x678   :  { %v762_v56 = vmul.f32 1.442695, %v759_v51 }
 0x679   :  { %v760_v52 = vmul.f32 1.442695, %v758_v47 }
 0x67a   :  { %v958_v49 = vpop.xlane.xlu0 %957 }
 0x67b   :  { %v962_v50 = vsub.f32 %v954_v38, %v958_v49 }
 0x67d   :  { %v964_v41 = vmul.f32 1.442695, %v962_v50 }
 0x67e   :  { %v961_v53 = vpop.xlane.xlu0 %960 }
 0x67f   :  { %6772 = vpow2.f32 %v964_v41  ;;  %v963_v54 = vsub.f32 %v955_v43, %v961_v53 }
 0x680   :  { %6774 = vpow2.f32 %v760_v52 }
 0x681   :  { %v966_v57 = vmul.f32 1.442695, %v963_v54 }
 0x683   :  { %6776 = vpow2.f32 %v966_v57 }
 0x684   :  { %6778 = vpow2.f32 %v762_v56 }
 0x689   :  { %v6773_v59 = vpop.eup %6772 }
 0x68a   :  { %v968_v39 = vsel %vm343_vm6, %v6773_v59, 0.0  ;;  %v6775_v60 = vpop.eup %6774 }
 0x68b   :  { %969 = vadd.xlane.f32.xlu1 %v968_v39  ;;  %v764_v62 = vsel %vm343_vm6, %v6775_v60, 0.0 }
 0x68d   :  { %v6777_v61 = vpop.eup %6776 }
 0x68e   :  { %v971_v63 = vsel %vm343_vm6, %v6777_v61, 0.0  ;;  %v6779_v0 = vpop.eup %6778 }
 0x68f   :  { %765 = vadd.xlane.f32.xlu1 %v764_v62  ;;  %972 = vadd.xlane.f32.xlu0 %v971_v63  ;;  %v767_v1 = vsel %vm343_vm6, %v6779_v0, 0.0 }
 0x693   :  { %768 = vadd.xlane.f32.xlu0 %v767_v1 }
 0x6a0   :  { %6577 = vrot.lane.b32.xlu1 %v7086_v42, %s6926_s12 }
 0x6a4   :  { %6587 = vrot.lane.b32.xlu1 %v6586_v16, %s6927_s13 }
 0x6a8   :  { %6592 = vrot.lane.b32.xlu1 %v6591_v2, %s6927_s13 }
 0x6a9   :  { %6582 = vrot.lane.b32.xlu0 %v7086_v42, %s7998_s14 }
 0x6ac   :  { %1069 = vrot.lane.b32.xlu1 %v5807_v18, %s6929_s15 }
 0x6ad   :  { %1067 = vrot.lane.b32.xlu0 %v648_v19, %s6929_s15 }
 0x718   :  { %v970_v3 = vpop.xlane.xlu1 %969 }
 0x71c   :  { %v766_v4 = vpop.xlane.xlu1 %765  ;;  %v973_v5 = vpop.xlane.xlu0 %972 }
 0x71d   :  { %6780 = vrcp.f32 %v766_v4 }
 0x71e   :  { %6782 = vrcp.f32 %v970_v3 }
 0x720   :  { %v6578_v14 = vpop.permute.xlu1 %6577  ;;  %v769_v15 = vpop.xlane.xlu0 %768 }
 0x721   :  { %v6580_v16 = vunpack.i.h.bf16 %v6578_v14  ;;  %v6579_v26 = vunpack.i.l.bf16 %v6578_v14  ;;  %6784 = vrcp.f32 %v769_v15 }
 0x722   :  { %6786 = vrcp.f32 %v973_v5 }
 0x723   :  { %v6268_v27 = vpack.c.bf16 %v6580_v16, %v6579_v26  ;;  %v5355_v26 = vld [vmem:[%s7989_s4 + $0x38] sm:$0xff] }
 0x724   :  { %v6583_v6 = vpop.permute.xlu0 %6582  ;;  %v6588_v23 = vpop.permute.xlu1 %6587 }
 0x725   :  { %v6585_v7 = vunpack.i.h.bf16 %v6583_v6  ;;  %v6584_v42 = vunpack.i.l.bf16 %v6583_v6  ;;  %6269 = vmatprep.subr.bf16.mxu0 %v6268_v27  ;;  %v6590_v25 = vunpack.i.h.bf16 %v6588_v23  ;;  %v6589_v28 = vunpack.i.l.bf16 %v6588_v23  ;;  %v5352_v6 = vld [vmem:[%s7989_s4 + $0x20] sm:$0xff] }
 0x726   :  { %6271 = vmatpush3.bf16.msra.mxu0 %v6268_v27 }
 0x727   :  { %v6781_v8 = vpop.eup %6780  ;;  %v6278_v9 = vpack.c.bf16 %v6585_v7, %v6584_v42  ;;  %v6282_v31 = vpack.c.bf16 %v6590_v25, %v6589_v28  ;;  %v5353_v7 = vld [vmem:[%s7989_s4 + $0x28] sm:$0xff]  ;;  %v7238_v42 = vld [vmem:[%s7992_s8] ss:$0 sm:$0xff] }
 0x728   :  { %v772_v10 = vmul.f32 %v6781_v8, %v6775_v60  ;;  %v6783_v13 = vpop.eup %6782  ;;  %v6593_v24 = vpop.permute.xlu1 %6592  ;;  %v7240_v8 = vpack.i.bf16 %v5353_v7, %v5352_v6 }
 0x729   :  { %6279 = vmatprep.subr.bf16.mxu0 %v6278_v9  ;;  %v976_v20 = vmul.f32 %v6783_v13, %v6773_v59  ;;  %v6595_v29 = vunpack.i.h.bf16 %v6593_v24  ;;  %v6594_v30 = vunpack.i.l.bf16 %v6593_v24  ;;  %v1068_v47 = vpop.permute.xlu0 %1067 }
 0x72a   :  { %5819 = vmatprep.mubr.msk.f32.mxu0 %vm343_vm6, %v772_v10  ;;  %v1089_v50 = vsel %vm247_vm4, %v7166_v12, %v1068_v47  ;;  %v6290_v10 = vpack.c.bf16 %v5353_v7, %v5352_v6 }
 0x72b   :  { %v6785_v17 = vpop.eup %6784  ;;  %v6286_v34 = vpack.c.bf16 %v6595_v29, %v6594_v30 }
 0x72c   :  { %v773_v18 = vmul.f32 %v6785_v17, %v6779_v0  ;;  %v6787_v19 = vpop.eup %6786  ;;  %v1070_v45 = vpop.permute.xlu1 %1069  ;;  %6291 = vmatprep.subr.bf16.mxu1 %v6290_v10  ;;  %v7252_v17 = vld [vmem:[%s7991_s5 + $0x1] ss:$0 sm:$0xff] }
 0x72d   :  { %v977_v21 = vmul.f32 %v6787_v19, %v6777_v61  ;;  %v1090_v52 = vsel %vm247_vm4, %v7164_v11, %v1070_v45  ;;  %6293 = vmatpush3.bf16.msra.mxu1 %v6290_v10 }
 0x72e   :  { %5820 = vmatmul.mubr.msk.f32.vlgmr.msra.gmra.mrb[8].mxu0 %vm343_vm6, %v773_v18 }
 0x72f   :  { %6281 = vmatpush3.bf16.msra.mxu0 %v6278_v9  ;;  %5833 = vmatprep.mubr.msk.f32.mxu0 %vm343_vm6, %v976_v20  ;;  %v6932_v9 = vmov 0.0|0.0  }
 0x730   :  { %6283 = vmatprep.subr.bf16.mxu0 %v6282_v31 }
 0x732   :  { %5834 = vmatmul.mubr.msk.f32.vlgmr.msra.gmra.mrb[10].mxu0 %vm343_vm6, %v977_v21 }
 0x733   :  { %6285 = vmatpush3.bf16.msra.mxu0 %v6282_v31 }
 0x734   :  { %6287 = vmatprep.subr.bf16.mxu0 %v6286_v34 }
 0x737   :  { %6289 = vmatpush3.bf16.msra.mxu0 %v6286_v34 }
 0x738   :  { %6298 = vmatprep.subr.bf16.mxu0 %v6932_v9 }
 0x801   :  { %v5821_v38 = vpop.f32.mrb[8].mxu0 }
 0x802   :  { %1077 = vrot.lane.b32.xlu1 %v5821_v38, %s6930_s3  ;;  %v852_v40 = vpop.f32.mrb[9].mxu0 }
 0x803   :  { %1075 = vrot.lane.b32.xlu0 %v852_v40, %s6930_s3 }
 0x805   :  { %v5835_v43 = vpop.f32.mrb[10].mxu0 }
 0x806   :  { %1085 = vrot.lane.b32.xlu1 %v5835_v43, %s7999_s16  ;;  %v1056_v44 = vpop.f32.mrb[11].mxu0  ;;  %v147_v43 = vld [vmem:[%s7993_s2] sm:$0xff] }
 0x807   :  { %1083 = vrot.lane.b32.xlu0 %v1056_v44, %s7999_s16 }
 0x80b   :  { %1113 = vrot.lane.b32.xlu0 %v7072_v37, %s6927_s13 }
 0x874   :  { %v1078_v48 = vpop.permute.xlu1 %1077 }
 0x875   :  { %v1076_v49 = vpop.permute.xlu0 %1075  ;;  %v1092_v54 = vsel %vm343_vm6, %v1090_v52, %v1078_v48 }
 0x876   :  { %v1091_v41 = vsel %vm343_vm6, %v1089_v50, %v1076_v49 }
 0x878   :  { %v1086_v51 = vpop.permute.xlu1 %1085 }
 0x879   :  { %v1084_v53 = vpop.permute.xlu0 %1083  ;;  %v1095_v37 = vsel %vm1093_vm7, %v1092_v54, %v1086_v51  ;;  %v148_v51 = vld [vmem:[%s7993_s2 + $0x8] sm:$0xff]  ;;  %v149_v54 = vld [vmem:[%s7993_s2 + $0x10] sm:$0xff] }
 0x87a   :  { %v1094_v56 = vsel %vm1093_vm7, %v1091_v41, %v1084_v53 }
 0x87b   :  { %5844 = vmatprep.mubr.msk.f32.mxu0 %vm159_vm3, %v1094_v56 }
 0x87c   :  { %5845 = vmatmul.mubr.msk.f32.vlgmr.msra.gmra.mrb[12].mxu0 %vm159_vm3, %v1095_v37 }
 0x87d   :  { %v1114_v57 = vpop.permute.xlu0 %1113  ;;  %5866 = vmatprep.mubr.msk.f32.mxu0 %vm6933_vm8, %v6916_v22 }
 0x94f   :  { %v5846_v59 = vpop.f32.mrb[12].mxu0 }
 0x950   :  { %v1194_v12 = vadd.f32 %v5846_v59, %v1114_v57  ;;  %v1188_v39 = vpop.f32.mrb[13].mxu0 }
 0x951   :  { %v1189_v60 = vadd.f32 %v1188_v39, %v1114_v57 }
 0x952   :  { %v1198_v11 = vadd.f32 %v1194_v12, %v7063_v36 }
 0x953   :  { %v1197_v61 = vadd.f32 %v1189_v60, %v7060_v35  ;;  %v5354_v35 = vld [vmem:[%s7989_s4 + $0x30] sm:$0xff] }
 0x954   :  { %v1203_v62 = vsel %vm159_vm3, %v1198_v11, 0.0  ;;  %v7225_v27 = vpack.i.bf16 %v5355_v26, %v5354_v35  ;;  %v6294_v13 = vpack.c.bf16 %v5355_v26, %v5354_v35 }
 0x955   :  { %1204 = vadd.xlane.f32.xlu0 %v1203_v62  ;;  %v1200_v63 = vsel %vm159_vm3, %v1197_v61, 0.0 }
 0x956   :  { %1201 = vadd.xlane.f32.xlu1 %v1200_v63  ;;  %6295 = vmatprep.subr.bf16.mxu1 %v6294_v13 }
 0x957   :  { %6297 = vmatpush3.bf16.msra.mxu1 %v6294_v13 }
 0x9e2   :  { %v1205_v0 = vpop.xlane.xlu0 %1204 }
 0x9e3   :  { %v1208_v1 = vmul.f32 0.03125, %v1205_v0  ;;  %v1202_v2 = vpop.xlane.xlu1 %1201 }
 0x9e4   :  { %v1207_v3 = vmul.f32 0.03125, %v1202_v2 }
 0x9e5   :  { %v1210_v4 = vsub.f32 %v1198_v11, %v1208_v1 }
 0x9e6   :  { %v1209_v5 = vsub.f32 %v1197_v61, %v1207_v3 }
 0x9e7   :  { %v1212_v14 = vmul.f32 %v1210_v4, %v1210_v4 }
 0x9e8   :  { %v1211_v15 = vmul.f32 %v1209_v5, %v1209_v5 }
 0x9e9   :  { %v1216_v16 = vsel %vm159_vm3, %v1212_v14, 0.0 }
 0x9ea   :  { %1217 = vadd.xlane.f32.xlu1 %v1216_v16  ;;  %v1213_v36 = vsel %vm159_vm3, %v1211_v15, 0.0 }
 0x9eb   :  { %1214 = vadd.xlane.f32.xlu0 %v1213_v36 }
 0x9fb   :  { %6602 = vrot.lane.b32.xlu1 %v7225_v27, %s6918_s25 }
 0x9ff   :  { %1234 = vrot.lane.b32.xlu1 %v7238_v42, %s6918_s25 }
 0xa01   :  { %6597 = vrot.lane.b32.xlu0 %v7240_v8, %s6918_s25 }
 0xa05   :  { %1347 = vrot.lane.b32.xlu0 %v7252_v17, %s6918_s25 }
 0xa77   :  { %v1218_v18 = vpop.xlane.xlu1 %1217 }
 0xa78   :  { %v1220_v19 = vmul.f32 0.03125, %v1218_v18  ;;  %v1215_v20 = vpop.xlane.xlu0 %1214 }
 0xa79   :  { %v1219_v21 = vmul.f32 0.03125, %v1215_v20 }
 0xa7a   :  { %v1222_v23 = vadd.f32 1e-05, %v1220_v19 }
 0xa7b   :  { %v1221_v24 = vadd.f32 1e-05, %v1219_v21  ;;  %v6603_v25 = vpop.permute.xlu1 %6602 }
 0xa7c   :  { %6788 = vrsqrt.f32 %v1222_v23  ;;  %v6598_v28 = vpop.permute.xlu0 %6597  ;;  %v6605_v29 = vunpack.i.h.bf16 %v6603_v25  ;;  %v6604_v34 = vunpack.i.l.bf16 %v6603_v25 }
 0xa7d   :  { %6790 = vrsqrt.f32 %v1221_v24  ;;  %v6600_v30 = vunpack.i.h.bf16 %v6598_v28  ;;  %v6599_v31 = vunpack.i.l.bf16 %v6598_v28 }
 0xa7e   :  { %v6302_v40 = vpack.c.bf16 %v6605_v29, %v6604_v34 }
 0xa7f   :  { %v6299_v38 = vpack.c.bf16 %v6600_v30, %v6599_v31  ;;  %v1235_v50 = vpop.permute.xlu1 %1234 }
 0xa80   :  { %v1348_v57 = vpop.permute.xlu0 %1347 }
 0xa81   :  { %6300 = vmatpush3.bf16.msra.mxu0 %v6299_v38 }
 0xa82   :  { %6301 = vmatprep.subr.bf16.mxu0 %v6932_v9 }
 0xa85   :  { %6303 = vmatpush3.bf16.msra.mxu0 %v6302_v40 }
 0xa86   :  { %v6789_v44 = vpop.eup %6788 }
 0xa87   :  { %v6791_v45 = vpop.eup %6790  ;;  %v1226_v47 = vmul.f32 %v6789_v44, %v1210_v4 }
 0xa88   :  { %5867 = vmatmul.mubr.msk.f32.vlgmr.msra.gmra.mrb[14].mxu0 %vm159_vm3, %v147_v43  ;;  %v1225_v48 = vmul.f32 %v6791_v45, %v1209_v5 }
 0xa89   :  { %v1232_v49 = vmul.f32 %v7238_v42, %v1226_v47  ;;  %5869 = vmatprep.mubr.msk.f32.mxu0 %vm6933_vm8, %v6916_v22 }
 0xa8a   :  { %v1231_v52 = vmul.f32 %v7238_v42, %v1225_v48 }
 0xa8b   :  { %v7271_v53 = vadd.f32 %v1235_v50, %v1232_v49 }
 0xa8c   :  { %v7268_v41 = vadd.f32 %v1235_v50, %v1231_v52  ;;  %5870 = vmatmul.mubr.msk.f32.gmra.mrb[16].mxu0 %vm159_vm3, %v148_v51 }
 0xa8d   :  { %5872 = vmatprep.mubr.msk.f32.mxu0 %vm6933_vm8, %v6916_v22 }
 0xa8e   :  { %5855 = vmatprep.mubr.msk.f32.mxu1 %vm159_vm3, %v7268_v41 }
 0xa8f   :  { %5856 = vmatmul.mubr.msk.f32.vlgmr.msra.gmra.mrb[8].mxu1 %vm159_vm3, %v7271_v53 }
 0xa90   :  { %5873 = vmatmul.mubr.msk.f32.gmra.mrb[18].mxu0 %vm159_vm3, %v149_v54 }
 0xb5b   :  { %v1425_v56 = vpop.f32.mrb[14].mxu0 }
 0xb5c   :  { %v5868_v37 = vpop.f32.mrb[15].mxu0  ;;  %v1426_v12 = vadd.f32 %v1425_v56, %v1348_v57 }
 0xb5f   :  { %v1430_v59 = vpop.f32.mrb[16].mxu0 }
 0xb60   :  { %v1431_v39 = vadd.f32 %v1430_v59, %v1348_v57  ;;  %v5871_v60 = vpop.f32.mrb[17].mxu0 }
 0xb62   :  { %v5857_v11 = vpop.f32.mrb[8].mxu1  ;;  %v7283_v61 = vpack.i.bf16 %v1431_v39, %v1426_v12  ;;  %v6304_v62 = vpack.c.bf16 %v1431_v39, %v1426_v12 }
 0xb63   :  { %v1321_v63 = vpop.f32.mrb[9].mxu1  ;;  %v1435_v0 = vpop.f32.mrb[18].mxu0  ;;  %v7305_v4 = vadd.f32 %v5857_v11, %v7252_v17 }
 0xb64   :  { %v7286_v1 = vadd.f32 %v7252_v17, %v1321_v63  ;;  %v7288_v2 = vadd.f32 %v1435_v0, %v1348_v57  ;;  %6607 = vrot.lane.b32.xlu1 %v7283_v61, %s6917_s1  ;;  %6306 = vmatprep.subr.msk.bf16.mxu1 %vm7100_vm5, %v6304_v62  ;;  %v5874_v3 = vpop.f32.mrb[19].mxu0 }
 0xb65   :  { %6309 = vmatpush3.bf16.xpose.msk.msra.mxu1 %vm7100_vm5, %v6304_v62 }
 0xb66   :  { %5881 = vmatprep.mubr.msk.f32.mxu1 %vm247_vm4, %v7286_v1  ;;  %1659 = vrot.lane.b32.xlu0 %v7288_v2, %s6917_s1 }
 0xb67   :  { %5879 = vmatprep.subr.msk.mxu1 %vm247_vm4, %v7288_v2 }
 0xb68   :  { %6612 = vrot.lane.b32.xlu1 %v7283_v61, %s6924_s0 }
 0xb6a   :  { %1651 = vrot.lane.b32.xlu0 %v7286_v1, %s6917_s1 }
 0xb6c   :  { %1653 = vrot.lane.b32.xlu1 %v7305_v4, %s6917_s1 }
 0xb6d   :  { %5880 = vmatpush3.xpose.msk.msra.mxu1 %vm247_vm4, %v7288_v2 }
 0xb6e   :  { %1870 = vrot.lane.b32.xlu0 %v7288_v2, %s6924_s0 }
 0xb70   :  { %1862 = vrot.lane.b32.xlu1 %v7286_v1, %s6924_s0  ;;  %5882 = vmatmul.mubr.msk.f32.vlgmr.msra.gmra.mrb[10].mxu1 %vm247_vm4, %v7305_v4 }
 0xb72   :  { %1864 = vrot.lane.b32.xlu0 %v7305_v4, %s6924_s0 }
 0xb74   :  { %1531 = vrot.lane.b32.xlu1 %v7052_v32, %s6921_s28 }
 0xb76   :  { %1533 = vrot.lane.b32.xlu0 %v7057_v33, %s6921_s28 }
 0xbd6   :  { %v6608_v5 = vpop.permute.xlu1 %6607 }
 0xbd7   :  { %v6610_v14 = vunpack.i.h.bf16 %v6608_v5  ;;  %v6609_v15 = vunpack.i.l.bf16 %v6608_v5 }
 0xbd8   :  { %v1660_v16 = vpop.permute.xlu0 %1659 }
 0xbd9   :  { %v6314_v36 = vpack.c.bf16 %v6610_v14, %v6609_v15 }
 0xbda   :  { %v6613_v35 = vpop.permute.xlu1 %6612 }
 0xbdb   :  { %6316 = vmatprep.subr.msk.bf16.mxu0 %vm7100_vm5, %v6314_v36  ;;  %v6615_v32 = vunpack.i.h.bf16 %v6613_v35  ;;  %v6614_v6 = vunpack.i.l.bf16 %v6613_v35 }
 0xbdc   :  { %6319 = vmatpush3.bf16.xpose.msk.msra.mxu0 %vm7100_vm5, %v6314_v36  ;;  %v1652_v26 = vpop.permute.xlu0 %1651 }
 0xbdd   :  { %5897 = vmatprep.subr.msk.mxu0 %vm247_vm4, %v1660_v16  ;;  %5899 = vmatprep.mubr.msk.f32.mxu0 %vm247_vm4, %v1652_v26  ;;  %v6324_v7 = vpack.c.bf16 %v6615_v32, %v6614_v6 }
 0xbde   :  { %v1654_v33 = vpop.permute.xlu1 %1653 }
 0xbe0   :  { %v1871_v13 = vpop.permute.xlu0 %1870 }
 0xbe2   :  { %v1863_v10 = vpop.permute.xlu1 %1862 }
 0xbe4   :  { %5898 = vmatpush3.xpose.msk.msra.mxu0 %vm247_vm4, %v1660_v16  ;;  %v1865_v18 = vpop.permute.xlu0 %1864 }
 0xbe5   :  { %6326 = vmatprep.subr.msk.bf16.mxu0 %vm7100_vm5, %v6324_v7 }
 0xbe6   :  { %v7343_v24 = vpop.permute.xlu1 %1531 }
 0xbe7   :  { %5900 = vmatmul.mubr.msk.f32.vlgmr.msra.gmra.mrb[20].mxu0 %vm247_vm4, %v1654_v33 }
 0xbe8   :  { %6329 = vmatpush3.bf16.xpose.msk.msra.mxu0 %vm7100_vm5, %v6324_v7  ;;  %5917 = vmatprep.mubr.msk.f32.mxu0 %vm247_vm4, %v1863_v10  ;;  %v7341_v20 = vpop.permute.xlu0 %1533 }
 0xbe9   :  { %5915 = vmatprep.subr.msk.mxu0 %vm247_vm4, %v1871_v13 }
 0xbf0   :  { %5916 = vmatpush3.xpose.msk.msra.mxu0 %vm247_vm4, %v1871_v13 }
 0xbf3   :  { %5918 = vmatmul.mubr.msk.f32.vlgmr.msra.gmra.mrb[22].mxu0 %vm247_vm4, %v1865_v18 }
 0xc43   :  { %v5883_v19 = vpop.f32.mrb[10].mxu1 }
 0xc44   :  { %v1530_v21 = vmul.f32 0.35355338, %v5883_v19  ;;  %v1520_v23 = vpop.f32.mrb[11].mxu1 }
 0xc45   :  { %v1529_v25 = vmul.f32 0.35355338, %v1520_v23 }
 0xc46   :  { %v1538_v28 = vadd.f32 %v7341_v20, %v1530_v21 }
 0xc47   :  { %v1537_v29 = vadd.f32 %v7343_v24, %v1529_v25 }
 0xc48   :  { %v1542_v30 = vsel %vm1093_vm7, %v1538_v28, -inf }
 0xc49   :  { %1543 = vmax.xlane.f32.xlu0 %v1542_v30  ;;  %v1539_v31 = vsel %vm1093_vm7, %v1537_v29, -inf }
 0xc4a   :  { %1540 = vmax.xlane.f32.xlu1 %v1539_v31 }
 0xcba   :  { %v5901_v34 = vpop.f32.mrb[20].mxu0 }
 0xcbb   :  { %v1747_v38 = vmul.f32 0.35355338, %v5901_v34  ;;  %v1737_v40 = vpop.f32.mrb[21].mxu0 }
 0xcbc   :  { %v1746_v43 = vmul.f32 0.35355338, %v1737_v40 }
 0xcbd   :  { %v1749_v44 = vadd.f32 %v1747_v38, %v7341_v20 }
 0xcbe   :  { %v1748_v45 = vadd.f32 %v1746_v43, %v7343_v24 }
 0xcbf   :  { %v1753_v47 = vsel %vm1093_vm7, %v1749_v44, -inf }
 0xcc0   :  { %1754 = vmax.xlane.f32.xlu1 %v1753_v47  ;;  %v1750_v48 = vsel %vm1093_vm7, %v1748_v45, -inf }
 0xcc1   :  { %1751 = vmax.xlane.f32.xlu0 %v1750_v48 }
 0xcc6   :  { %v5919_v49 = vpop.f32.mrb[22].mxu0 }
 0xcc7   :  { %v1958_v50 = vmul.f32 0.35355338, %v5919_v49  ;;  %v1948_v51 = vpop.f32.mrb[23].mxu0 }
 0xcc8   :  { %v1957_v52 = vmul.f32 0.35355338, %v1948_v51 }
 0xcc9   :  { %v1960_v54 = vadd.f32 %v1958_v50, %v7341_v20 }
 0xcca   :  { %v1959_v56 = vadd.f32 %v1957_v52, %v7343_v24 }
 0xccb   :  { %v1964_v37 = vsel %vm1093_vm7, %v1960_v54, -inf }
 0xccc   :  { %1965 = vmax.xlane.f32.xlu1 %v1964_v37  ;;  %v1961_v57 = vsel %vm1093_vm7, %v1959_v56, -inf }
 0xccd   :  { %1962 = vmax.xlane.f32.xlu0 %v1961_v57 }
 0xcd6   :  { %v1544_v12 = vpop.xlane.xlu0 %1543 }
 0xcd7   :  { %v1541_v59 = vpop.xlane.xlu1 %1540  ;;  %v1546_v60 = vsub.f32 %v1538_v28, %v1544_v12 }
 0xcd8   :  { %v1545_v39 = vsub.f32 %v1537_v29, %v1541_v59 }
 0xcd9   :  { %v1549_v62 = vmul.f32 1.442695, %v1546_v60 }
 0xcda   :  { %v1547_v11 = vmul.f32 1.442695, %v1545_v39 }
 0xcdc   :  { %6792 = vpow2.f32 %v1547_v11 }
 0xcdd   :  { %1565 = vrot.lane.b32.xlu1 %v7288_v2, %s6918_s25  ;;  %6794 = vpow2.f32 %v1549_v62 }
 0xce1   :  { %6622 = vrot.lane.b32.xlu1 %v7283_v61, %s6919_s26 }
 0xce3   :  { %6617 = vrot.lane.b32.xlu0 %v7283_v61, %s6918_s25 }
 0xce5   :  { %6627 = vrot.lane.b32.xlu1 %v7283_v61, %s6921_s28 }
 0xce6   :  { %v6793_v63 = vpop.eup %6792 }
 0xce7   :  { %1776 = vrot.lane.b32.xlu0 %v7288_v2, %s6919_s26  ;;  %v6795_v0 = vpop.eup %6794  ;;  %v1551_v3 = vsel %vm1093_vm7, %v6793_v63, 0.0 }
 0xce8   :  { %v1554_v5 = vsel %vm1093_vm7, %v6795_v0, 0.0 }
 0xd06   :  { %1552 = vadd.xlane.f32.xlu0 %v1551_v3 }
 0xd09   :  { %1555 = vadd.xlane.f32.xlu1 %v1554_v5 }
 0xd4d   :  { %v1755_v14 = vpop.xlane.xlu1 %1754 }
 0xd4e   :  { %v1757_v15 = vsub.f32 %v1749_v44, %v1755_v14  ;;  %v1752_v16 = vpop.xlane.xlu0 %1751 }
 0xd4f   :  { %v1756_v36 = vsub.f32 %v1748_v45, %v1752_v16 }
 0xd50   :  { %v1760_v35 = vmul.f32 1.442695, %v1757_v15 }
 0xd51   :  { %v1758_v26 = vmul.f32 1.442695, %v1756_v36 }
 0xd52   :  { %6796 = vpow2.f32 %v1760_v35 }
 0xd53   :  { %6798 = vpow2.f32 %v1758_v26 }
 0xd59   :  { %v1966_v32 = vpop.xlane.xlu1 %1965 }
 0xd5a   :  { %v1968_v6 = vsub.f32 %v1960_v54, %v1966_v32  ;;  %v1963_v33 = vpop.xlane.xlu0 %1962 }
 0xd5b   :  { %v1967_v7 = vsub.f32 %v1959_v56, %v1963_v33 }
 0xd5c   :  { %v7369_v10 = vpop.eup %6796  ;;  %v1971_v13 = vmul.f32 1.442695, %v1968_v6 }
 0xd5d   :  { %v6799_v18 = vpop.eup %6798  ;;  %v1969_v19 = vmul.f32 1.442695, %v1967_v7  ;;  %v1566_v21 = vpop.permute.xlu1 %1565  ;;  %v1765_v23 = vsel %vm1093_vm7, %v7369_v10, 0.0 }
 0xd5e   :  { %6800 = vpow2.f32 %v1971_v13  ;;  %1766 = vadd.xlane.f32.xlu1 %v1765_v23  ;;  %v6618_v25 = vpop.permute.xlu0 %6617  ;;  %v1762_v28 = vsel %vm1093_vm7, %v6799_v18, 0.0 }
 0xd5f   :  { %6802 = vpow2.f32 %v1969_v19  ;;  %v6620_v29 = vunpack.i.h.bf16 %v6618_v25  ;;  %v6619_v30 = vunpack.i.l.bf16 %v6618_v25  ;;  %1763 = vadd.xlane.f32.xlu0 %v1762_v28 }
 0xd61   :  { %v6623_v31 = vpop.permute.xlu1 %6622  ;;  %v6310_v34 = vpack.c.bf16 %v6620_v29, %v6619_v30 }
 0xd62   :  { %v6625_v38 = vunpack.i.h.bf16 %v6623_v31  ;;  %v6624_v40 = vunpack.i.l.bf16 %v6623_v31  ;;  %v1777_v49 = vpop.permute.xlu0 %1776 }
 0xd63   :  { %6311 = vmatprep.subr.bf16.mxu1 %v6310_v34 }
 0xd64   :  { %6313 = vmatpush3.bf16.msra.mxu1 %v6310_v34  ;;  %v6320_v43 = vpack.c.bf16 %v6625_v38, %v6624_v40 }
 0xd65   :  { %5888 = vmatprep.subr.mxu1 %v1566_v21  ;;  %v6628_v50 = vpop.permute.xlu1 %6627 }
 0xd66   :  { %v6630_v57 = vunpack.i.h.bf16 %v6628_v50  ;;  %v6629_v59 = vunpack.i.l.bf16 %v6628_v50 }
 0xd68   :  { %v6801_v44 = vpop.eup %6800  ;;  %5889 = vmatpush3.msra.mxu1 %v1566_v21  ;;  %v6330_v12 = vpack.c.bf16 %v6630_v57, %v6629_v59 }
 0xd69   :  { %v6803_v45 = vpop.eup %6802  ;;  %6321 = vmatprep.subr.bf16.mxu1 %v6320_v43  ;;  %v1976_v47 = vsel %vm1093_vm7, %v6801_v44, 0.0 }
 0xd6a   :  { %1977 = vadd.xlane.f32.xlu1 %v1976_v47  ;;  %v1973_v48 = vsel %vm1093_vm7, %v6803_v45, 0.0 }
 0xd6b   :  { %1974 = vadd.xlane.f32.xlu0 %v1973_v48 }
 0xd7b   :  { %6632 = vrot.lane.b32.xlu1 %v7283_v61, %s6925_s11 }
 0xd7f   :  { %2073 = vrot.lane.b32.xlu1 %v7286_v1, %s6925_s11 }
 0xd81   :  { %1987 = vrot.lane.b32.xlu0 %v7288_v2, %s6921_s28 }
 0xd85   :  { %2081 = vrot.lane.b32.xlu0 %v7288_v2, %s6925_s11 }
 0xd89   :  { %2075 = vrot.lane.b32.xlu0 %v7305_v4, %s6925_s11 }
 0xd93   :  { %v1553_v51 = vpop.xlane.xlu0 %1552 }
 0xd94   :  { %6804 = vrcp.f32 %v1553_v51 }
 0xd96   :  { %v1556_v52 = vpop.xlane.xlu1 %1555 }
 0xd97   :  { %6806 = vrcp.f32 %v1556_v52 }
 0xd9e   :  { %v6805_v54 = vpop.eup %6804 }
 0xd9f   :  { %v1559_v56 = vmul.f32 %v6805_v54, %v6793_v63 }
 0xda1   :  { %v6807_v37 = vpop.eup %6806  ;;  %5890 = vmatprep.mubr.msk.f32.mxu1 %vm1093_vm7, %v1559_v56 }
 0xda2   :  { %v1560_v1 = vmul.f32 %v6807_v37, %v6795_v0 }
 0xda4   :  { %5891 = vmatmul.mubr.msk.f32.vlgmr.msra.gmra.mrb[12].mxu1 %vm1093_vm7, %v1560_v1 }
 0xda5   :  { %6323 = vmatpush3.bf16.msra.mxu1 %v6320_v43 }
 0xda6   :  { %5906 = vmatprep.subr.mxu1 %v1777_v49 }
 0xda9   :  { %5907 = vmatpush3.msra.mxu1 %v1777_v49 }
 0xdaa   :  { %6331 = vmatprep.subr.bf16.mxu1 %v6330_v12 }
 0xdeb   :  { %v1767_v4 = vpop.xlane.xlu1 %1766 }
 0xdec   :  { %6808 = vrcp.f32 %v1767_v4  ;;  %v1764_v39 = vpop.xlane.xlu0 %1763 }
 0xded   :  { %6810 = vrcp.f32 %v1764_v39 }
 0xdf6   :  { %v6809_v60 = vpop.eup %6808 }
 0xdf7   :  { %v6811_v11 = vpop.eup %6810  ;;  %v1978_v62 = vpop.xlane.xlu1 %1977  ;;  %v1771_v0 = vmul.f32 %v6809_v60, %v7369_v10 }
 0xdf8   :  { %6812 = vrcp.f32 %v1978_v62  ;;  %v1975_v63 = vpop.xlane.xlu0 %1974  ;;  %v1770_v3 = vmul.f32 %v6811_v11, %v6799_v18 }
 0xdf9   :  { %6814 = vrcp.f32 %v1975_v63 }
 0xdfa   :  { %5908 = vmatprep.mubr.msk.f32.mxu1 %vm1093_vm7, %v1770_v3 }
 0xdfb   :  { %v6633_v5 = vpop.permute.xlu1 %6632  ;;  %5909 = vmatmul.mubr.msk.f32.vlgmr.msra.gmra.mrb[14].mxu1 %vm1093_vm7, %v1771_v0 }
 0xdfc   :  { %v6635_v14 = vunpack.i.h.bf16 %v6633_v5  ;;  %v6634_v15 = vunpack.i.l.bf16 %v6633_v5  ;;  %6333 = vmatpush3.bf16.msra.mxu1 %v6330_v12  ;;  %v1988_v16 = vpop.permute.xlu0 %1987 }
 0xdfd   :  { %5924 = vmatprep.subr.mxu1 %v1988_v16 }
 0xdfe   :  { %v6334_v36 = vpack.c.bf16 %v6635_v14, %v6634_v15 }
 0xdff   :  { %v2074_v33 = vpop.permute.xlu1 %2073 }
 0xe00   :  { %5925 = vmatpush3.msra.mxu1 %v1988_v16  ;;  %v2082_v7 = vpop.permute.xlu0 %2081 }
 0xe01   :  { %6336 = vmatprep.subr.msk.bf16.mxu1 %vm7100_vm5, %v6334_v36 }
 0xe02   :  { %v6813_v35 = vpop.eup %6812 }
 0xe03   :  { %v6815_v26 = vpop.eup %6814  ;;  %v1982_v6 = vmul.f32 %v6813_v35, %v6801_v44 }
 0xe04   :  { %v1981_v32 = vmul.f32 %v6815_v26, %v6803_v45  ;;  %v2076_v10 = vpop.permute.xlu0 %2075 }
 0xe06   :  { %5926 = vmatprep.mubr.msk.f32.mxu1 %vm1093_vm7, %v1981_v32 }
 0xe07   :  { %5927 = vmatmul.mubr.msk.f32.vlgmr.msra.gmra.mrb[16].mxu1 %vm1093_vm7, %v1982_v6 }
 0xe08   :  { %6339 = vmatpush3.bf16.xpose.msk.msra.mxu1 %vm7100_vm5, %v6334_v36  ;;  %5935 = vmatprep.mubr.msk.f32.mxu1 %vm247_vm4, %v2074_v33 }
 0xe09   :  { %5933 = vmatprep.subr.msk.mxu1 %vm247_vm4, %v2082_v7 }
 0xe10   :  { %5934 = vmatpush3.xpose.msk.msra.mxu1 %vm247_vm4, %v2082_v7 }
 0xe13   :  { %5936 = vmatmul.mubr.msk.f32.vlgmr.msra.gmra.mrb[18].mxu1 %vm247_vm4, %v2076_v10 }
 0xe77   :  { %v7401_v13 = vpop.f32.mrb[12].mxu1 }
 0xe78   :  { %v7403_v18 = vpop.f32.mrb[13].mxu1 }
 0xece   :  { %v5910_v19 = vpop.f32.mrb[14].mxu1 }
 0xecf   :  { %v1853_v21 = vpop.f32.mrb[15].mxu1 }
 0xeda   :  { %v5928_v23 = vpop.f32.mrb[16].mxu1 }
 0xedb   :  { %v2064_v25 = vpop.f32.mrb[17].mxu1 }
 0xee6   :  { %v5937_v28 = vpop.f32.mrb[18].mxu1 }
 0xee7   :  { %v2169_v29 = vmul.f32 0.35355338, %v5937_v28  ;;  %v2159_v30 = vpop.f32.mrb[19].mxu1 }
 0xee8   :  { %v2168_v31 = vmul.f32 0.35355338, %v2159_v30 }
 0xee9   :  { %v2171_v34 = vadd.f32 %v2169_v29, %v7341_v20 }
 0xeea   :  { %v2170_v38 = vadd.f32 %v2168_v31, %v7343_v24 }
 0xeeb   :  { %v2175_v40 = vsel %vm1093_vm7, %v2171_v34, -inf }
 0xeec   :  { %2176 = vmax.xlane.f32.xlu0 %v2175_v40  ;;  %v2172_v43 = vsel %vm1093_vm7, %v2170_v38, -inf }
 0xeed   :  { %2173 = vmax.xlane.f32.xlu1 %v2172_v43 }
 0xf79   :  { %v2177_v44 = vpop.xlane.xlu0 %2176 }
 0xf7a   :  { %v2179_v45 = vsub.f32 %v2171_v34, %v2177_v44  ;;  %v2174_v47 = vpop.xlane.xlu1 %2173 }
 0xf7b   :  { %v2178_v48 = vsub.f32 %v2170_v38, %v2174_v47 }
 0xf7c   :  { %v2182_v49 = vmul.f32 1.442695, %v2179_v45 }
 0xf7d   :  { %v2180_v50 = vmul.f32 1.442695, %v2178_v48 }
 0xf7e   :  { %6816 = vpow2.f32 %v2182_v49 }
 0xf7f   :  { %6818 = vpow2.f32 %v2180_v50 }
 0xf88   :  { %v6817_v51 = vpop.eup %6816 }
 0xf89   :  { %v6819_v52 = vpop.eup %6818  ;;  %v2187_v54 = vsel %vm1093_vm7, %v6817_v51, 0.0 }
 0xf8a   :  { %2188 = vadd.xlane.f32.xlu1 %v2187_v54  ;;  %v2184_v56 = vsel %vm1093_vm7, %v6819_v52, 0.0 }
 0xf8b   :  { %2185 = vadd.xlane.f32.xlu0 %v2184_v56  ;;  %v2456_v56 = vld [vmem:[%s7994_s6 + $0x10] sm:$0xff] }
 0xf9b   :  { %2198 = vrot.lane.b32.xlu1 %v7288_v2, %s6922_s29 }
 0xf9f   :  { %6642 = vrot.lane.b32.xlu1 %v7240_v8, %s6927_s13 }
 0xfa1   :  { %6637 = vrot.lane.b32.xlu0 %v7283_v61, %s6922_s29 }
 0xfa3   :  { %2286 = vrot.lane.b32.xlu1 %v1853_v21, %s6929_s15 }
 0xfa5   :  { %6647 = vrot.lane.b32.xlu0 %v7225_v27, %s6927_s13 }
 0xfa7   :  { %2294 = vrot.lane.b32.xlu1 %v2064_v25, %s6930_s3 }
 0xfa9   :  { %2288 = vrot.lane.b32.xlu0 %v5910_v19, %s6929_s15 }
 0xfad   :  { %2296 = vrot.lane.b32.xlu0 %v5928_v23, %s6930_s3 }
0x1017   :  { %v2189_v37 = vpop.xlane.xlu1 %2188 }
0x1018   :  { %6820 = vrcp.f32 %v2189_v37  ;;  %v2186_v2 = vpop.xlane.xlu0 %2185  ;;  %v2457_v37 = vld [vmem:[%s7994_s6 + $0x18] sm:$0xff] }
0x1019   :  { %6822 = vrcp.f32 %v2186_v2  ;;  %v2546_v2 = vld [vmem:[%s7995_s7] sm:$0xff] }
0x101b   :  { %v2199_v12 = vpop.permute.xlu1 %2198 }
0x101c   :  { %v6638_v1 = vpop.permute.xlu0 %6637 }
0x101d   :  { %v6640_v8 = vunpack.i.h.bf16 %v6638_v1  ;;  %v6639_v57 = vunpack.i.l.bf16 %v6638_v1  ;;  %v2547_v1 = vld [vmem:[%s7995_s7 + $0x8] sm:$0xff] }
0x101f   :  { %v6340_v59 = vpack.c.bf16 %v6640_v8, %v6639_v57  ;;  %v6643_v60 = vpop.permute.xlu1 %6642  ;;  %v2548_v8 = vld [vmem:[%s7995_s7 + $0x10] sm:$0xff]  ;;  %v6360_v57 = vpack.c.bf16 %v2547_v1, %v2546_v2 }
0x1020   :  { %v6648_v11 = vpop.permute.xlu0 %6647  ;;  %v6645_v62 = vunpack.i.h.bf16 %v6643_v60  ;;  %v6644_v63 = vunpack.i.l.bf16 %v6643_v60 }
0x1021   :  { %6341 = vmatprep.subr.bf16.mxu0 %v6340_v59  ;;  %v6650_v3 = vunpack.i.h.bf16 %v6648_v11  ;;  %v6649_v0 = vunpack.i.l.bf16 %v6648_v11 }
0x1022   :  { %v6821_v61 = vpop.eup %6820  ;;  %6343 = vmatpush3.bf16.msra.mxu0 %v6340_v59  ;;  %v6344_v5 = vpack.c.bf16 %v6645_v62, %v6644_v63  ;;  %v2549_v59 = vld [vmem:[%s7995_s7 + $0x18] sm:$0xff] }
0x1023   :  { %v6823_v4 = vpop.eup %6822  ;;  %5942 = vmatprep.subr.mxu0 %v2199_v12  ;;  %v2193_v39 = vmul.f32 %v6821_v61, %v6817_v51  ;;  %v6348_v14 = vpack.c.bf16 %v6650_v3, %v6649_v0  ;;  %v2287_v35 = vpop.permute.xlu1 %2286  ;;  %v2454_v51 = vld [vmem:[%s7994_s6] sm:$0xff]  ;;  %v6364_v61 = vpack.c.bf16 %v2549_v59, %v2548_v8  ;;  %v7518_v8 = vld [vmem:[%s7989_s4 + $0x50] sm:$0xff] }
0x1024   :  { %v2192_v27 = vmul.f32 %v6823_v4, %v6819_v52  ;;  %v2289_v36 = vpop.permute.xlu0 %2288  ;;  %v2308_v6 = vsel %vm247_vm4, %v7403_v18, %v2287_v35  ;;  %v2455_v52 = vld [vmem:[%s7994_s6 + $0x8] sm:$0xff] }
0x1025   :  { %v2309_v7 = vsel %vm247_vm4, %v7401_v13, %v2289_v36  ;;  %v6352_v54 = vpack.c.bf16 %v2455_v52, %v2454_v51  ;;  %v2551_v4 = vld [vmem:[%s7995_s7 + $0x28] sm:$0xff] }
0x1026   :  { %5943 = vmatpush3.msra.mxu0 %v2199_v12  ;;  %5944 = vmatprep.mubr.msk.f32.mxu0 %vm1093_vm7, %v2192_v27  ;;  %v2550_v12 = vld [vmem:[%s7995_s7 + $0x20] sm:$0xff] }
0x1027   :  { %5945 = vmatmul.mubr.msk.f32.vlgmr.msra.gmra.mrb[24].mxu0 %vm1093_vm7, %v2193_v39  ;;  %6345 = vmatprep.subr.bf16.mxu0 %v6344_v5  ;;  %v2295_v32 = vpop.permute.xlu1 %2294  ;;  %v6368_v27 = vpack.c.bf16 %v2551_v4, %v2550_v12 }
0x1028   :  { %6347 = vmatpush3.bf16.msra.mxu0 %v6344_v5  ;;  %v2297_v26 = vpop.permute.xlu0 %2296  ;;  %v2310_v10 = vsel %vm343_vm6, %v2308_v6, %v2295_v32  ;;  %6353 = vmatprep.subr.bf16.mxu1 %v6352_v54 }
0x1029   :  { %6349 = vmatprep.subr.bf16.mxu0 %v6348_v14  ;;  %v2311_v21 = vsel %vm343_vm6, %v2309_v7, %v2297_v26  ;;  %6355 = vmatpush3.bf16.msra.mxu1 %v6352_v54  ;;  %v2553_v7 = vld [vmem:[%s7995_s7 + $0x38] sm:$0xff] }
0x102c   :  { %6351 = vmatpush3.bf16.msra.mxu0 %v6348_v14 }
0x102d   :  { %6361 = vmatprep.subr.bf16.mxu0 %v6360_v57 }
0x10fa   :  { %v5946_v15 = vpop.f32.mrb[24].mxu0 }
0x10fb   :  { %2304 = vrot.lane.b32.xlu0 %v5946_v15, %s7999_s16  ;;  %v2275_v16 = vpop.f32.mrb[25].mxu0 }
0x10fc   :  { %2302 = vrot.lane.b32.xlu1 %v2275_v16, %s7999_s16 }
0x1100   :  { %2326 = vrot.lane.b32.xlu1 %v7252_v17, %s6927_s13 }
0x116d   :  { %v2305_v33 = vpop.permute.xlu0 %2304 }
0x116e   :  { %v2303_v19 = vpop.permute.xlu1 %2302  ;;  %v2313_v17 = vsel %vm1093_vm7, %v2311_v21, %v2305_v33  ;;  %v2552_v33 = vld [vmem:[%s7995_s7 + $0x30] sm:$0xff]  ;;  %v5393_v21 = vld [vmem:[%s7992_s8 + $0x2] ss:$0 sm:$0xff] }
0x116f   :  { %v2312_v23 = vsel %vm1093_vm7, %v2310_v10, %v2303_v19  ;;  %v6372_v10 = vpack.c.bf16 %v2553_v7, %v2552_v33  ;;  %v5396_v19 = vld [vmem:[%s7992_s8 + $0x1] ss:$0 sm:$0xff] }
0x1170   :  { %5955 = vmatprep.mubr.msk.f32.mxu0 %vm159_vm3, %v2312_v23 }
0x1171   :  { %5956 = vmatmul.mubr.msk.f32.vlgmr.msra.gmra.mrb[26].mxu0 %vm159_vm3, %v2313_v17 }
0x1172   :  { %v2327_v25 = vpop.permute.xlu1 %2326  ;;  %6363 = vmatpush3.bf16.msra.mxu0 %v6360_v57  ;;  %v7523_v57 = vld [vmem:[%s7989_s4 + $0x58] sm:$0xff] }
0x1173   :  { %6365 = vmatprep.subr.bf16.mxu0 %v6364_v61  ;;  %v6380_v59 = vpack.c.bf16 %v7523_v57, %v7518_v8 }
0x1176   :  { %6367 = vmatpush3.bf16.msra.mxu0 %v6364_v61  ;;  %v6696_v61 = vpack.i.bf16 %v7523_v57, %v7518_v8 }
0x1177   :  { %6369 = vmatprep.subr.bf16.mxu0 %v6368_v27 }
0x117a   :  { %6371 = vmatpush3.bf16.msra.mxu0 %v6368_v27 }
0x117b   :  { %6373 = vmatprep.subr.bf16.mxu0 %v6372_v10 }
0x117e   :  { %6375 = vmatpush3.bf16.msra.mxu0 %v6372_v10 }
0x1244   :  { %v5957_v28 = vpop.f32.mrb[26].mxu0 }
0x1245   :  { %v2407_v18 = vadd.f32 %v5957_v28, %v2327_v25  ;;  %v2401_v29 = vpop.f32.mrb[27].mxu0 }
0x1246   :  { %v2402_v30 = vadd.f32 %v2401_v29, %v2327_v25 }
0x1247   :  { %v2411_v13 = vadd.f32 %v2407_v18, %v7271_v53 }
0x1248   :  { %v2410_v31 = vadd.f32 %v2402_v30, %v7268_v41 }
0x1249   :  { %v2416_v34 = vsel %vm159_vm3, %v2411_v13, 0.0 }
0x124a   :  { %2417 = vadd.xlane.f32.xlu1 %v2416_v34  ;;  %v2413_v38 = vsel %vm159_vm3, %v2410_v31, 0.0 }
0x124b   :  { %2414 = vadd.xlane.f32.xlu0 %v2413_v38 }
0x125b   :  { %2444 = vrot.lane.b32.xlu1 %v7238_v42, %s6920_s27 }
0x125f   :  { %2560 = vrot.lane.b32.xlu1 %v5396_v19, %s6920_s27 }
0x12d7   :  { %v2418_v40 = vpop.xlane.xlu1 %2417 }
0x12d8   :  { %v2420_v43 = vmul.f32 0.03125, %v2418_v40  ;;  %v2415_v44 = vpop.xlane.xlu0 %2414 }
0x12d9   :  { %v2419_v45 = vmul.f32 0.03125, %v2415_v44 }
0x12da   :  { %v2422_v47 = vsub.f32 %v2411_v13, %v2420_v43 }
0x12db   :  { %v2421_v48 = vsub.f32 %v2410_v31, %v2419_v45  ;;  %v2445_v5 = vpop.permute.xlu1 %2444 }
0x12dc   :  { %v2424_v50 = vmul.f32 %v2422_v47, %v2422_v47 }
0x12dd   :  { %v2423_v49 = vmul.f32 %v2421_v48, %v2421_v48 }
0x12de   :  { %v2428_v41 = vsel %vm159_vm3, %v2424_v50, 0.0 }
0x12df   :  { %v2425_v53 = vsel %vm159_vm3, %v2423_v49, 0.0  ;;  %v2561_v30 = vpop.permute.xlu1 %2560 }
0x12e0   :  { %2426 = vadd.xlane.f32.xlu0 %v2425_v53 }
0x12e4   :  { %2429 = vadd.xlane.f32.xlu0 %v2428_v41 }
0x12fa   :  { %2449 = vrot.lane.b32.xlu0 %v7238_v42, %s6927_s13  ;;  %v6356_v42 = vpack.c.bf16 %v2457_v37, %v2456_v56  ;;  %v7503_v37 = vld [vmem:[%s7989_s4 + $0x40] sm:$0xff] }
0x12fc   :  { %6357 = vmatprep.subr.bf16.mxu1 %v6356_v42 }
0x12fd   :  { %6359 = vmatpush3.bf16.msra.mxu1 %v6356_v42  ;;  %v7508_v42 = vld [vmem:[%s7989_s4 + $0x48] sm:$0xff] }
0x12fe   :  { %v6691_v2 = vpack.i.bf16 %v7508_v42, %v7503_v37  ;;  %v6376_v1 = vpack.c.bf16 %v7508_v42, %v7503_v37 }
0x1300   :  { %6377 = vmatprep.subr.bf16.mxu1 %v6376_v1 }
0x136d   :  { %v2427_v39 = vpop.xlane.xlu0 %2426 }
0x136e   :  { %v2431_v60 = vmul.f32 0.03125, %v2427_v39 }
0x1370   :  { %v2433_v11 = vadd.f32 1e-05, %v2431_v60 }
0x1371   :  { %v2430_v62 = vpop.xlane.xlu0 %2429 }
0x1372   :  { %6824 = vrsqrt.f32 %v2433_v11  ;;  %v2432_v63 = vmul.f32 0.03125, %v2430_v62 }
0x1374   :  { %v2434_v3 = vadd.f32 1e-05, %v2432_v63 }
0x1375   :  { %v2450_v15 = vpop.permute.xlu0 %2449 }
0x1376   :  { %6826 = vrsqrt.f32 %v2434_v3 }
0x137c   :  { %v6825_v0 = vpop.eup %6824 }
0x137d   :  { %v2437_v14 = vmul.f32 %v6825_v0, %v2421_v48 }
0x137f   :  { %v2447_v16 = vmul.f32 %v2445_v5, %v2437_v14 }
0x1380   :  { %v6827_v36 = vpop.eup %6826 }
0x1381   :  { %v2438_v35 = vmul.f32 %v6827_v36, %v2422_v47  ;;  %v2452_v26 = vadd.f32 %v2450_v15, %v2447_v16 }
0x1383   :  { %v2448_v32 = vmul.f32 %v2445_v5, %v2438_v35  ;;  %5966 = vmatprep.mubr.msk.f32.mxu1 %vm159_vm3, %v2452_v26  ;;  %v7540_v35 = vld [vmem:[%s7991_s5 + $0x2] ss:$0 sm:$0xff] }
0x1385   :  { %v2453_v6 = vadd.f32 %v2450_v15, %v2448_v32 }
0x1387   :  { %5967 = vmatmul.mubr.msk.f32.vlgmr.msra.gmra.mrb[20].mxu1 %vm159_vm3, %v2453_v6 }
0x1388   :  { %6379 = vmatpush3.bf16.msra.mxu1 %v6376_v1 }
0x1389   :  { %6381 = vmatprep.subr.bf16.mxu1 %v6380_v59 }
0x138c   :  { %6383 = vmatpush3.bf16.msra.mxu1 %v6380_v59 }
0x145a   :  { %v5968_v23 = vpop.f32.mrb[20].mxu1 }
0x145b   :  { %v2541_v17 = vadd.f32 %v5968_v23, %v5393_v21  ;;  %v2535_v25 = vpop.f32.mrb[21].mxu1 }
0x145c   :  { %v2536_v28 = vadd.f32 %v5393_v21, %v2535_v25 }
0x145d   :  { %v2545_v29 = vmax.f32 %v2541_v17, 0.0 }
0x145e   :  { %v2544_v18 = vmax.f32 %v2536_v28, 0.0 }
0x1460   :  { %5985 = vmatprep.mubr.msk.f32.mxu0 %vm61_vm0, %v2544_v18 }
0x1461   :  { %5986 = vmatmul.mubr.msk.f32.vlgmr.msra.gmra.mrb[28].mxu0 %vm61_vm0, %v2545_v29 }
0x1534   :  { %v5987_v13 = vpop.f32.mrb[28].mxu0 }
0x1535   :  { %v2641_v31 = vadd.f32 %v5987_v13, %v2561_v30  ;;  %v2635_v34 = vpop.f32.mrb[29].mxu0 }
0x1536   :  { %v2636_v38 = vadd.f32 %v2635_v34, %v2561_v30 }
0x1537   :  { %v2645_v40 = vadd.f32 %v2641_v31, %v2453_v6 }
0x1538   :  { %v2644_v43 = vadd.f32 %v2636_v38, %v2452_v26 }
0x1539   :  { %v2649_v44 = vsel %vm159_vm3, %v2645_v40, 0.0 }
0x153a   :  { %2650 = vadd.xlane.f32.xlu0 %v2649_v44  ;;  %v2646_v45 = vsel %vm159_vm3, %v2644_v43, 0.0 }
0x153b   :  { %2647 = vadd.xlane.f32.xlu1 %v2646_v45 }
0x15c7   :  { %v2651_v47 = vpop.xlane.xlu0 %2650 }
0x15c8   :  { %v2653_v48 = vmul.f32 0.03125, %v2651_v47  ;;  %v2648_v49 = vpop.xlane.xlu1 %2647 }
0x15c9   :  { %v2652_v53 = vmul.f32 0.03125, %v2648_v49 }
0x15ca   :  { %v2655_v50 = vsub.f32 %v2645_v40, %v2653_v48 }
0x15cb   :  { %v2654_v41 = vsub.f32 %v2644_v43, %v2652_v53 }
0x15cc   :  { %v2657_v51 = vmul.f32 %v2655_v50, %v2655_v50 }
0x15cd   :  { %v2656_v52 = vmul.f32 %v2654_v41, %v2654_v41 }
0x15ce   :  { %v2661_v54 = vsel %vm159_vm3, %v2657_v51, 0.0 }
0x15cf   :  { %2662 = vadd.xlane.f32.xlu1 %v2661_v54  ;;  %v2658_v56 = vsel %vm159_vm3, %v2656_v52, 0.0 }
0x15d0   :  { %2659 = vadd.xlane.f32.xlu0 %v2658_v56 }
0x15e6   :  { %2674 = vrot.lane.b32.xlu0 %v5396_v19, %s6918_s25 }
0x165c   :  { %v2663_v12 = vpop.xlane.xlu1 %2662 }
0x165d   :  { %v2665_v4 = vmul.f32 0.03125, %v2663_v12  ;;  %v2660_v27 = vpop.xlane.xlu0 %2659 }
0x165e   :  { %v2664_v39 = vmul.f32 0.03125, %v2660_v27 }
0x165f   :  { %v2667_v60 = vadd.f32 1e-05, %v2665_v4 }
0x1660   :  { %v2666_v11 = vadd.f32 1e-05, %v2664_v39 }
0x1661   :  { %6828 = vrsqrt.f32 %v2667_v60  ;;  %v2675_v5 = vpop.permute.xlu0 %2674 }
0x1662   :  { %6830 = vrsqrt.f32 %v2666_v11 }
0x166b   :  { %v6829_v62 = vpop.eup %6828 }
0x166c   :  { %v6831_v63 = vpop.eup %6830  ;;  %v2671_v3 = vmul.f32 %v6829_v62, %v2655_v50 }
0x166d   :  { %v2670_v0 = vmul.f32 %v6831_v63, %v2654_v41 }
0x166e   :  { %v2673_v14 = vmul.f32 %v5396_v19, %v2671_v3 }
0x166f   :  { %v2672_v15 = vmul.f32 %v5396_v19, %v2670_v0 }
0x1670   :  { %v7531_v36 = vadd.f32 %v2675_v5, %v2673_v14 }
0x1671   :  { %v7529_v16 = vadd.f32 %v2675_v5, %v2672_v15 }
0x1673   :  { %5996 = vmatprep.mubr.msk.f32.mxu1 %vm159_vm3, %v7529_v16 }
0x1674   :  { %5997 = vmatmul.mubr.msk.f32.vlgmr.msra.gmra.mrb[22].mxu1 %vm159_vm3, %v7531_v36 }
0x1747   :  { %v5998_v26 = vpop.f32.mrb[22].mxu1 }
0x1748   :  { %v7543_v32 = vadd.f32 %v5998_v26, %v7540_v35  ;;  %v2761_v6 = vpop.f32.mrb[23].mxu1 }
0x1749   :  { %v7546_v33 = vadd.f32 %v7540_v35, %v2761_v6 }
0x174b   :  { %6003 = vmatprep.mubr.msk.f32.mxu1 %vm247_vm4, %v7546_v33  ;;  %v7552_v7 = vpack.i.bf16 %v7543_v32, %v7546_v33 }
0x174d   :  { %6652 = vrot.lane.b32.xlu1 %v7552_v7, %s6918_s25 }
0x17bf   :  { %v6653_v10 = vpop.permute.xlu1 %6652 }
0x17c0   :  { %v6655_v19 = vunpack.i.h.bf16 %v6653_v10  ;;  %v6654_v21 = vunpack.i.l.bf16 %v6653_v10 }
0x17c2   :  { %v6384_v23 = vpack.c.bf16 %v6655_v19, %v6654_v21 }
0x17c4   :  { %6386 = vmatprep.subr.msk.bf16.mxu1 %vm7100_vm5, %v6384_v23 }
0x17c5   :  { %6389 = vmatpush3.bf16.xpose.msk.msra.mxu1 %vm7100_vm5, %v6384_v23 }
0x17cc   :  { %6004 = vmatmul.mubr.msk.f32.vlgmr.msra.gmra.mrb[24].mxu1 %vm247_vm4, %v7543_v32 }
0x189f   :  { %v6005_v17 = vpop.f32.mrb[24].mxu1 }
0x18a0   :  { %v2860_v25 = vmul.f32 0.35355338, %v6005_v17  ;;  %v2850_v28 = vpop.f32.mrb[25].mxu1 }
0x18a1   :  { %v2859_v18 = vmul.f32 0.35355338, %v2850_v28 }
0x18a2   :  { %v2862_v29 = vadd.f32 %v2860_v25, %v7116_v55 }
0x18a3   :  { %v2861_v30 = vadd.f32 %v2859_v18, %v7118_v58 }
0x18a4   :  { %v2866_v13 = vsel %vm343_vm6, %v2862_v29, -inf }
0x18a5   :  { %2867 = vmax.xlane.f32.xlu0 %v2866_v13  ;;  %v2863_v31 = vsel %vm343_vm6, %v2861_v30, -inf }
0x18a6   :  { %2864 = vmax.xlane.f32.xlu1 %v2863_v31 }
0x1932   :  { %v2868_v34 = vpop.xlane.xlu0 %2867 }
0x1933   :  { %v2870_v38 = vsub.f32 %v2862_v29, %v2868_v34  ;;  %v2865_v40 = vpop.xlane.xlu1 %2864 }
0x1934   :  { %v2869_v43 = vsub.f32 %v2861_v30, %v2865_v40 }
0x1935   :  { %v2873_v44 = vmul.f32 1.442695, %v2870_v38 }
0x1936   :  { %v2871_v45 = vmul.f32 1.442695, %v2869_v43 }
0x1937   :  { %6832 = vpow2.f32 %v2873_v44 }
0x1938   :  { %6834 = vpow2.f32 %v2871_v45 }
0x1941   :  { %v6833_v47 = vpop.eup %6832 }
0x1942   :  { %v6835_v48 = vpop.eup %6834  ;;  %v2878_v49 = vsel %vm343_vm6, %v6833_v47, 0.0 }
0x1943   :  { %2879 = vadd.xlane.f32.xlu1 %v2878_v49  ;;  %v2875_v53 = vsel %vm343_vm6, %v6835_v48, 0.0 }
0x1944   :  { %2876 = vadd.xlane.f32.xlu0 %v2875_v53 }
0x1954   :  { %6662 = vrot.lane.b32.xlu1 %v7552_v7, %s6919_s26 }
0x1958   :  { %2972 = vrot.lane.b32.xlu1 %v7546_v33, %s6917_s1 }
0x195a   :  { %6657 = vrot.lane.b32.xlu0 %v7552_v7, %s6920_s27 }
0x195e   :  { %2974 = vrot.lane.b32.xlu0 %v7543_v32, %s6917_s1 }
0x19d0   :  { %v2880_v50 = vpop.xlane.xlu1 %2879 }
0x19d1   :  { %6836 = vrcp.f32 %v2880_v50  ;;  %v2877_v41 = vpop.xlane.xlu0 %2876 }
0x19d2   :  { %6838 = vrcp.f32 %v2877_v41 }
0x19d4   :  { %v6663_v51 = vpop.permute.xlu1 %6662 }
0x19d5   :  { %v6658_v52 = vpop.permute.xlu0 %6657  ;;  %v6665_v54 = vunpack.i.h.bf16 %v6663_v51  ;;  %v6664_v56 = vunpack.i.l.bf16 %v6663_v51 }
0x19d6   :  { %v6660_v1 = vunpack.i.h.bf16 %v6658_v52  ;;  %v6659_v59 = vunpack.i.l.bf16 %v6658_v52 }
0x19d7   :  { %v6394_v4 = vpack.c.bf16 %v6665_v54, %v6664_v56 }
0x19d8   :  { %v6390_v12 = vpack.c.bf16 %v6660_v1, %v6659_v59  ;;  %v2973_v62 = vpop.permute.xlu1 %2972 }
0x19d9   :  { %v2975_v63 = vpop.permute.xlu0 %2974 }
0x19da   :  { %6391 = vmatprep.subr.bf16.mxu0 %v6390_v12 }
0x19db   :  { %v6837_v27 = vpop.eup %6836  ;;  %6393 = vmatpush3.bf16.msra.mxu0 %v6390_v12 }
0x19dc   :  { %v6839_v39 = vpop.eup %6838  ;;  %6396 = vmatprep.subr.msk.bf16.mxu0 %vm7100_vm5, %v6394_v4  ;;  %v2884_v11 = vmul.f32 %v6837_v27, %v6833_v47 }
0x19dd   :  { %v2883_v60 = vmul.f32 %v6839_v39, %v6835_v48 }
0x19df   :  { %6010 = vmatprep.mubr.msk.f32.mxu0 %vm343_vm6, %v2883_v60 }
0x19e0   :  { %6011 = vmatmul.mubr.msk.f32.vlgmr.msra.gmra.mrb[30].mxu0 %vm343_vm6, %v2884_v11 }
0x19e1   :  { %6017 = vmatprep.mubr.msk.f32.mxu0 %vm247_vm4, %v2973_v62 }
0x19e4   :  { %6399 = vmatpush3.bf16.xpose.msk.msra.mxu0 %vm7100_vm5, %v6394_v4 }
0x19eb   :  { %6018 = vmatmul.mubr.msk.f32.vlgmr.msra.gmra.mrb[32].mxu0 %vm247_vm4, %v2975_v63 }
0x1ab3   :  { %v7584_v3 = vpop.f32.mrb[30].mxu0 }
0x1ab4   :  { %v7586_v0 = vpop.f32.mrb[31].mxu0 }
0x1abe   :  { %v6019_v5 = vpop.f32.mrb[32].mxu0 }
0x1abf   :  { %v3064_v14 = vmul.f32 0.35355338, %v6019_v5  ;;  %v3054_v15 = vpop.f32.mrb[33].mxu0 }
0x1ac0   :  { %v3063_v26 = vmul.f32 0.35355338, %v3054_v15 }
0x1ac1   :  { %v3066_v6 = vadd.f32 %v3064_v14, %v7116_v55 }
0x1ac2   :  { %v3065_v10 = vadd.f32 %v3063_v26, %v7118_v58 }
0x1ac3   :  { %v3070_v19 = vsel %vm343_vm6, %v3066_v6, -inf }
0x1ac4   :  { %3071 = vmax.xlane.f32.xlu0 %v3070_v19  ;;  %v3067_v21 = vsel %vm343_vm6, %v3065_v10, -inf }
0x1ac5   :  { %3068 = vmax.xlane.f32.xlu1 %v3067_v21 }
0x1b51   :  { %v3072_v23 = vpop.xlane.xlu0 %3071 }
0x1b52   :  { %v3074_v17 = vsub.f32 %v3066_v6, %v3072_v23  ;;  %v3069_v25 = vpop.xlane.xlu1 %3068 }
0x1b53   :  { %v3073_v28 = vsub.f32 %v3065_v10, %v3069_v25 }
0x1b54   :  { %v3077_v18 = vmul.f32 1.442695, %v3074_v17 }
0x1b55   :  { %v3075_v29 = vmul.f32 1.442695, %v3073_v28 }
0x1b56   :  { %6840 = vpow2.f32 %v3077_v18 }
0x1b57   :  { %6842 = vpow2.f32 %v3075_v29 }
0x1b60   :  { %v6841_v30 = vpop.eup %6840 }
0x1b61   :  { %v6843_v13 = vpop.eup %6842  ;;  %v3082_v31 = vsel %vm343_vm6, %v6841_v30, 0.0 }
0x1b62   :  { %3083 = vadd.xlane.f32.xlu1 %v3082_v31  ;;  %v3079_v34 = vsel %vm343_vm6, %v6843_v13, 0.0 }
0x1b63   :  { %3080 = vadd.xlane.f32.xlu0 %v3079_v34 }
0x1b73   :  { %6672 = vrot.lane.b32.xlu1 %v7552_v7, %s6921_s28 }
0x1b77   :  { %3176 = vrot.lane.b32.xlu1 %v7546_v33, %s6924_s0 }
0x1b79   :  { %6667 = vrot.lane.b32.xlu0 %v7552_v7, %s6923_s30  ;;  %s8003_s30 = smov 40  }
0x1b7d   :  { %3178 = vrot.lane.b32.xlu0 %v7543_v32, %s6924_s0 }
0x1bef   :  { %v3084_v38 = vpop.xlane.xlu1 %3083 }
0x1bf0   :  { %6844 = vrcp.f32 %v3084_v38  ;;  %v3081_v40 = vpop.xlane.xlu0 %3080 }
0x1bf1   :  { %6846 = vrcp.f32 %v3081_v40 }
0x1bf3   :  { %v6673_v43 = vpop.permute.xlu1 %6672 }
0x1bf4   :  { %v6668_v44 = vpop.permute.xlu0 %6667  ;;  %v6675_v45 = vunpack.i.h.bf16 %v6673_v43  ;;  %v6674_v47 = vunpack.i.l.bf16 %v6673_v43 }
0x1bf5   :  { %v6670_v48 = vunpack.i.h.bf16 %v6668_v44  ;;  %v6669_v49 = vunpack.i.l.bf16 %v6668_v44 }
0x1bf6   :  { %v6404_v50 = vpack.c.bf16 %v6675_v45, %v6674_v47 }
0x1bf7   :  { %v6400_v53 = vpack.c.bf16 %v6670_v48, %v6669_v49  ;;  %v3177_v56 = vpop.permute.xlu1 %3176 }
0x1bf8   :  { %v3179_v1 = vpop.permute.xlu0 %3178 }
0x1bf9   :  { %6401 = vmatprep.subr.bf16.mxu1 %v6400_v53 }
0x1bfa   :  { %v6845_v41 = vpop.eup %6844  ;;  %6403 = vmatpush3.bf16.msra.mxu1 %v6400_v53 }
0x1bfb   :  { %v6847_v51 = vpop.eup %6846  ;;  %6406 = vmatprep.subr.msk.bf16.mxu1 %vm7100_vm5, %v6404_v50  ;;  %v3088_v54 = vmul.f32 %v6845_v41, %v6841_v30 }
0x1bfc   :  { %v3087_v52 = vmul.f32 %v6847_v51, %v6843_v13 }
0x1bfe   :  { %6024 = vmatprep.mubr.msk.f32.mxu1 %vm343_vm6, %v3087_v52 }
0x1bff   :  { %6025 = vmatmul.mubr.msk.f32.vlgmr.msra.gmra.mrb[26].mxu1 %vm343_vm6, %v3088_v54 }
0x1c00   :  { %6031 = vmatprep.mubr.msk.f32.mxu1 %vm247_vm4, %v3177_v56 }
0x1c03   :  { %6409 = vmatpush3.bf16.xpose.msk.msra.mxu1 %vm7100_vm5, %v6404_v50 }
0x1c0a   :  { %6032 = vmatmul.mubr.msk.f32.vlgmr.msra.gmra.mrb[28].mxu1 %vm247_vm4, %v3179_v1 }
0x1cd2   :  { %v7610_v59 = vpop.f32.mrb[26].mxu1 }
0x1cd3   :  { %v7612_v12 = vpop.f32.mrb[27].mxu1 }
0x1cdd   :  { %v6033_v4 = vpop.f32.mrb[28].mxu1 }
0x1cde   :  { %v3268_v27 = vmul.f32 0.35355338, %v6033_v4  ;;  %v3258_v39 = vpop.f32.mrb[29].mxu1 }
0x1cdf   :  { %v3267_v60 = vmul.f32 0.35355338, %v3258_v39 }
0x1ce0   :  { %v3270_v11 = vadd.f32 %v3268_v27, %v7116_v55 }
0x1ce1   :  { %v3269_v62 = vadd.f32 %v3267_v60, %v7118_v58 }
0x1ce2   :  { %v3274_v63 = vsel %vm343_vm6, %v3270_v11, -inf }
0x1ce3   :  { %3275 = vmax.xlane.f32.xlu0 %v3274_v63  ;;  %v3271_v5 = vsel %vm343_vm6, %v3269_v62, -inf }
0x1ce4   :  { %3272 = vmax.xlane.f32.xlu1 %v3271_v5 }
0x1d70   :  { %v3276_v14 = vpop.xlane.xlu0 %3275 }
0x1d71   :  { %v3278_v15 = vsub.f32 %v3270_v11, %v3276_v14  ;;  %v3273_v26 = vpop.xlane.xlu1 %3272 }
0x1d72   :  { %v3277_v6 = vsub.f32 %v3269_v62, %v3273_v26 }
0x1d73   :  { %v3281_v10 = vmul.f32 1.442695, %v3278_v15 }
0x1d74   :  { %v3279_v19 = vmul.f32 1.442695, %v3277_v6 }
0x1d75   :  { %6848 = vpow2.f32 %v3281_v10 }
0x1d76   :  { %6850 = vpow2.f32 %v3279_v19 }
0x1d7f   :  { %v6849_v21 = vpop.eup %6848 }
0x1d80   :  { %v6851_v23 = vpop.eup %6850  ;;  %v3286_v17 = vsel %vm343_vm6, %v6849_v21, 0.0 }
0x1d81   :  { %3287 = vadd.xlane.f32.xlu1 %v3286_v17  ;;  %v3283_v25 = vsel %vm343_vm6, %v6851_v23, 0.0 }
0x1d82   :  { %3284 = vadd.xlane.f32.xlu0 %v3283_v25 }
0x1d92   :  { %6682 = vrot.lane.b32.xlu1 %v7552_v7, %s6922_s29 }
0x1d96   :  { %3380 = vrot.lane.b32.xlu1 %v7546_v33, %s6925_s11 }
0x1d98   :  { %6677 = vrot.lane.b32.xlu0 %v7552_v7, %s6926_s12  ;;  %s8004_s12 = smov 24  }
0x1d9c   :  { %3382 = vrot.lane.b32.xlu0 %v7543_v32, %s6925_s11 }
0x1e0e   :  { %v3288_v28 = vpop.xlane.xlu1 %3287 }
0x1e0f   :  { %6852 = vrcp.f32 %v3288_v28  ;;  %v3285_v18 = vpop.xlane.xlu0 %3284 }
0x1e10   :  { %6854 = vrcp.f32 %v3285_v18 }
0x1e12   :  { %v6683_v29 = vpop.permute.xlu1 %6682 }
0x1e13   :  { %v6678_v30 = vpop.permute.xlu0 %6677  ;;  %v6685_v13 = vunpack.i.h.bf16 %v6683_v29  ;;  %v6684_v31 = vunpack.i.l.bf16 %v6683_v29 }
0x1e14   :  { %v6680_v34 = vunpack.i.h.bf16 %v6678_v30  ;;  %v6679_v38 = vunpack.i.l.bf16 %v6678_v30 }
0x1e15   :  { %v6414_v43 = vpack.c.bf16 %v6685_v13, %v6684_v31 }
0x1e16   :  { %v6410_v40 = vpack.c.bf16 %v6680_v34, %v6679_v38  ;;  %v3381_v47 = vpop.permute.xlu1 %3380 }
0x1e17   :  { %v3383_v48 = vpop.permute.xlu0 %3382 }
0x1e18   :  { %6411 = vmatprep.subr.bf16.mxu0 %v6410_v40 }
0x1e19   :  { %v6853_v33 = vpop.eup %6852  ;;  %6413 = vmatpush3.bf16.msra.mxu0 %v6410_v40 }
0x1e1a   :  { %v6855_v44 = vpop.eup %6854  ;;  %6416 = vmatprep.subr.msk.bf16.mxu0 %vm7100_vm5, %v6414_v43  ;;  %v3292_v45 = vmul.f32 %v6853_v33, %v6849_v21 }
0x1e1b   :  { %v3291_v32 = vmul.f32 %v6855_v44, %v6851_v23 }
0x1e1d   :  { %6038 = vmatprep.mubr.msk.f32.mxu0 %vm343_vm6, %v3291_v32 }
0x1e1e   :  { %6039 = vmatmul.mubr.msk.f32.vlgmr.msra.gmra.mrb[34].mxu0 %vm343_vm6, %v3292_v45 }
0x1e1f   :  { %6045 = vmatprep.mubr.msk.f32.mxu0 %vm247_vm4, %v3381_v47 }
0x1e22   :  { %6419 = vmatpush3.bf16.xpose.msk.msra.mxu0 %vm7100_vm5, %v6414_v43 }
0x1e29   :  { %6046 = vmatmul.mubr.msk.f32.vlgmr.msra.gmra.mrb[36].mxu0 %vm247_vm4, %v3383_v48 }
0x1ef1   :  { %v6040_v49 = vpop.f32.mrb[34].mxu0 }
0x1ef2   :  { %v3371_v53 = vpop.f32.mrb[35].mxu0 }
0x1efc   :  { %v6047_v50 = vpop.f32.mrb[36].mxu0 }
0x1efd   :  { %v3472_v41 = vmul.f32 0.35355338, %v6047_v50  ;;  %v3462_v51 = vpop.f32.mrb[37].mxu0 }
0x1efe   :  { %v3471_v52 = vmul.f32 0.35355338, %v3462_v51 }
0x1eff   :  { %v3474_v54 = vadd.f32 %v3472_v41, %v7116_v55 }
0x1f00   :  { %v3473_v56 = vadd.f32 %v3471_v52, %v7118_v58 }
0x1f01   :  { %v3478_v1 = vsel %vm343_vm6, %v3474_v54, -inf }
0x1f02   :  { %3479 = vmax.xlane.f32.xlu0 %v3478_v1  ;;  %v3475_v4 = vsel %vm343_vm6, %v3473_v56, -inf }
0x1f03   :  { %3476 = vmax.xlane.f32.xlu1 %v3475_v4 }
0x1f8f   :  { %v3480_v27 = vpop.xlane.xlu0 %3479 }
0x1f90   :  { %v3482_v39 = vsub.f32 %v3474_v54, %v3480_v27  ;;  %v3477_v60 = vpop.xlane.xlu1 %3476 }
0x1f91   :  { %v3481_v11 = vsub.f32 %v3473_v56, %v3477_v60 }
0x1f92   :  { %v3485_v62 = vmul.f32 1.442695, %v3482_v39 }
0x1f93   :  { %v3483_v63 = vmul.f32 1.442695, %v3481_v11  ;;  %v5436_v11 = vld [vmem:[%s7989_s4 + $0x78] sm:$0xff] }
0x1f94   :  { %6856 = vpow2.f32 %v3485_v62 }
0x1f95   :  { %6858 = vpow2.f32 %v3483_v63  ;;  %v5433_v63 = vld [vmem:[%s7989_s4 + $0x60] sm:$0xff] }
0x1f9e   :  { %v6857_v5 = vpop.eup %6856 }
0x1f9f   :  { %v6859_v14 = vpop.eup %6858  ;;  %v3490_v55 = vsel %vm343_vm6, %v6857_v5, 0.0 }
0x1fa0   :  { %3491 = vadd.xlane.f32.xlu1 %v3490_v55  ;;  %v3487_v58 = vsel %vm343_vm6, %v6859_v14, 0.0 }
0x1fa1   :  { %3488 = vadd.xlane.f32.xlu0 %v3487_v58 }
0x1fb1   :  { %6692 = vrot.lane.b32.xlu1 %v6691_v2, %s6927_s13 }
0x1fb5   :  { %6697 = vrot.lane.b32.xlu1 %v6696_v61, %s6927_s13 }
0x1fb7   :  { %6687 = vrot.lane.b32.xlu0 %v7552_v7, %s8003_s30 }
0x1fb9   :  { %3588 = vrot.lane.b32.xlu1 %v7610_v59, %s6929_s15 }
0x1fbb   :  { %3586 = vrot.lane.b32.xlu0 %v7612_v12, %s6929_s15 }
0x1fbd   :  { %3596 = vrot.lane.b32.xlu1 %v6040_v49, %s6930_s3 }
0x1fbf   :  { %3594 = vrot.lane.b32.xlu0 %v3371_v53, %s6930_s3 }
0x202d   :  { %v3492_v37 = vpop.xlane.xlu1 %3491 }
0x202e   :  { %6860 = vrcp.f32 %v3492_v37  ;;  %v3489_v42 = vpop.xlane.xlu0 %3488 }
0x202f   :  { %6862 = vrcp.f32 %v3489_v42  ;;  %v7713_v42 = vld [vmem:[%s7991_s5 + $0x3] ss:$0 sm:$0xff] }
0x2031   :  { %v6693_v2 = vpop.permute.xlu1 %6692 }
0x2032   :  { %v6695_v8 = vunpack.i.h.bf16 %v6693_v2  ;;  %v6694_v57 = vunpack.i.l.bf16 %v6693_v2  ;;  %v6688_v61 = vpop.permute.xlu0 %6687 }
0x2033   :  { %v6690_v15 = vunpack.i.h.bf16 %v6688_v61  ;;  %v6689_v7 = vunpack.i.l.bf16 %v6688_v61 }
0x2034   :  { %v6424_v26 = vpack.c.bf16 %v6695_v8, %v6694_v57 }
0x2035   :  { %v6420_v6 = vpack.c.bf16 %v6690_v15, %v6689_v7  ;;  %v6698_v59 = vpop.permute.xlu1 %6697 }
0x2036   :  { %v6700_v10 = vunpack.i.h.bf16 %v6698_v59  ;;  %v6699_v19 = vunpack.i.l.bf16 %v6698_v59  ;;  %v3587_v30 = vpop.permute.xlu0 %3586 }
0x2037   :  { %6421 = vmatprep.subr.bf16.mxu1 %v6420_v6  ;;  %v3608_v34 = vsel %vm247_vm4, %v7586_v0, %v3587_v30 }
0x2038   :  { %v6861_v12 = vpop.eup %6860  ;;  %6423 = vmatpush3.bf16.msra.mxu1 %v6420_v6  ;;  %v6428_v25 = vpack.c.bf16 %v6700_v10, %v6699_v19 }
0x2039   :  { %v6863_v21 = vpop.eup %6862  ;;  %6425 = vmatprep.subr.bf16.mxu1 %v6424_v26  ;;  %v3496_v17 = vmul.f32 %v6861_v12, %v6857_v5  ;;  %v3589_v29 = vpop.permute.xlu1 %3588  ;;  %v5434_v5 = vld [vmem:[%s7989_s4 + $0x68] sm:$0xff] }
0x203a   :  { %v3495_v23 = vmul.f32 %v6863_v21, %v6859_v14  ;;  %v3595_v31 = vpop.permute.xlu0 %3594  ;;  %v3609_v40 = vsel %vm247_vm4, %v7584_v3, %v3589_v29  ;;  %v7702_v14 = vld [vmem:[%s7992_s8 + $0x3] ss:$0 sm:$0xff]  ;;  %v7704_v55 = vpack.i.bf16 %v5434_v5, %v5433_v63  ;;  %v6432_v58 = vpack.c.bf16 %v5434_v5, %v5433_v63 }
0x203b   :  { %v3610_v43 = vsel %vm343_vm6, %v3608_v34, %v3595_v31  ;;  %v6913_v34 = vld [vmem:[%s7993_s2 + $0x8] sm:$0xff] }
0x203c   :  { %6052 = vmatprep.mubr.msk.f32.mxu1 %vm343_vm6, %v3495_v23  ;;  %6433 = vmatprep.subr.bf16.mxu0 %v6432_v58 }
0x203d   :  { %6053 = vmatmul.mubr.msk.f32.vlgmr.msra.gmra.mrb[30].mxu1 %vm343_vm6, %v3496_v17  ;;  %v3597_v13 = vpop.permute.xlu1 %3596  ;;  %6435 = vmatpush3.bf16.msra.mxu0 %v6432_v58 }
0x203e   :  { %6427 = vmatpush3.bf16.msra.mxu1 %v6424_v26  ;;  %v3611_v44 = vsel %vm343_vm6, %v3609_v40, %v3597_v13  ;;  %v6914_v40 = vld [vmem:[%s7993_s2 + $0x10] sm:$0xff] }
0x203f   :  { %6429 = vmatprep.subr.bf16.mxu1 %v6428_v25 }
0x2042   :  { %6431 = vmatpush3.bf16.msra.mxu1 %v6428_v25 }
0x2043   :  { %6440 = vmatprep.subr.bf16.mxu1 %v6932_v9 }
0x2110   :  { %v6054_v28 = vpop.f32.mrb[30].mxu1 }
0x2111   :  { %3604 = vrot.lane.b32.xlu1 %v6054_v28, %s8004_s12  ;;  %v3575_v18 = vpop.f32.mrb[31].mxu1 }
0x2112   :  { %3602 = vrot.lane.b32.xlu0 %v3575_v18, %s8004_s12  ;;  %v6912_v18 = vld [vmem:[%s7993_s2] sm:$0xff] }
0x2116   :  { %3631 = vrot.lane.b32.xlu0 %v7540_v35, %s6927_s13 }
0x2183   :  { %v3605_v38 = vpop.permute.xlu1 %3604 }
0x2184   :  { %v3603_v33 = vpop.permute.xlu0 %3602  ;;  %v3613_v35 = vsel %vm1093_vm7, %v3611_v44, %v3605_v38 }
0x2185   :  { %v3612_v32 = vsel %vm1093_vm7, %v3610_v43, %v3603_v33 }
0x2186   :  { %6063 = vmatprep.mubr.msk.f32.mxu1 %vm159_vm3, %v3612_v32 }
0x2187   :  { %6064 = vmatmul.mubr.msk.f32.vlgmr.msra.gmra.mrb[32].mxu1 %vm159_vm3, %v3613_v35 }
0x2188   :  { %6085 = vmatprep.mubr.msk.f32.mxu1 %vm6933_vm8, %v6916_v22  ;;  %v3632_v0 = vpop.permute.xlu0 %3631 }
0x225a   :  { %v6065_v45 = vpop.f32.mrb[32].mxu1 }
0x225b   :  { %v3712_v47 = vadd.f32 %v6065_v45, %v3632_v0  ;;  %v3706_v3 = vpop.f32.mrb[33].mxu1 }
0x225c   :  { %v3707_v48 = vadd.f32 %v3706_v3, %v3632_v0 }
0x225d   :  { %v3716_v49 = vadd.f32 %v3712_v47, %v7531_v36 }
0x225e   :  { %v3715_v53 = vadd.f32 %v3707_v48, %v7529_v16  ;;  %v5435_v16 = vld [vmem:[%s7989_s4 + $0x70] sm:$0xff] }
0x225f   :  { %v3721_v50 = vsel %vm159_vm3, %v3716_v49, 0.0  ;;  %v7689_v62 = vpack.i.bf16 %v5436_v11, %v5435_v16  ;;  %v6436_v37 = vpack.c.bf16 %v5436_v11, %v5435_v16 }
0x2260   :  { %3722 = vadd.xlane.f32.xlu0 %v3721_v50  ;;  %v3718_v41 = vsel %vm159_vm3, %v3715_v53, 0.0 }
0x2261   :  { %3719 = vadd.xlane.f32.xlu1 %v3718_v41  ;;  %6437 = vmatprep.subr.bf16.mxu0 %v6436_v37 }
0x2262   :  { %6439 = vmatpush3.bf16.msra.mxu0 %v6436_v37 }
0x22ed   :  { %v3723_v51 = vpop.xlane.xlu0 %3722 }
0x22ee   :  { %v3725_v52 = vmul.f32 0.03125, %v3723_v51  ;;  %v3720_v54 = vpop.xlane.xlu1 %3719 }
0x22ef   :  { %v3724_v56 = vmul.f32 0.03125, %v3720_v54 }
0x22f0   :  { %v3727_v1 = vsub.f32 %v3716_v49, %v3725_v52 }
0x22f1   :  { %v3726_v4 = vsub.f32 %v3715_v53, %v3724_v56 }
0x22f2   :  { %v3729_v27 = vmul.f32 %v3727_v1, %v3727_v1 }
0x22f3   :  { %v3728_v39 = vmul.f32 %v3726_v4, %v3726_v4 }
0x22f4   :  { %v3733_v60 = vsel %vm159_vm3, %v3729_v27, 0.0 }
0x22f5   :  { %3734 = vadd.xlane.f32.xlu1 %v3733_v60  ;;  %v3730_v36 = vsel %vm159_vm3, %v3728_v39, 0.0 }
0x22f6   :  { %3731 = vadd.xlane.f32.xlu0 %v3730_v36 }
0x2306   :  { %6707 = vrot.lane.b32.xlu1 %v7689_v62, %s6918_s25 }
0x230a   :  { %3751 = vrot.lane.b32.xlu1 %v7702_v14, %s6918_s25 }
0x230c   :  { %6702 = vrot.lane.b32.xlu0 %v7704_v55, %s6918_s25 }
0x2310   :  { %3864 = vrot.lane.b32.xlu0 %v7713_v42, %s6918_s25 }
0x2382   :  { %v3735_v2 = vpop.xlane.xlu1 %3734 }
0x2383   :  { %v3737_v8 = vmul.f32 0.03125, %v3735_v2  ;;  %v3732_v57 = vpop.xlane.xlu0 %3731 }
0x2384   :  { %v3736_v61 = vmul.f32 0.03125, %v3732_v57 }
0x2385   :  { %v3739_v15 = vadd.f32 1e-05, %v3737_v8 }
0x2386   :  { %v3738_v7 = vadd.f32 1e-05, %v3736_v61  ;;  %v6708_v26 = vpop.permute.xlu1 %6707 }
0x2387   :  { %6864 = vrsqrt.f32 %v3739_v15  ;;  %v6703_v6 = vpop.permute.xlu0 %6702  ;;  %v6710_v59 = vunpack.i.h.bf16 %v6708_v26  ;;  %v6709_v12 = vunpack.i.l.bf16 %v6708_v26 }
0x2388   :  { %6866 = vrsqrt.f32 %v3738_v7  ;;  %v6705_v10 = vunpack.i.h.bf16 %v6703_v6  ;;  %v6704_v19 = vunpack.i.l.bf16 %v6703_v6 }
0x2389   :  { %v6444_v23 = vpack.c.bf16 %v6710_v59, %v6709_v12 }
0x238a   :  { %v6441_v21 = vpack.c.bf16 %v6705_v10, %v6704_v19  ;;  %v3752_v13 = vpop.permute.xlu1 %3751 }
0x238b   :  { %v3865_v44 = vpop.permute.xlu0 %3864 }
0x238c   :  { %6442 = vmatpush3.bf16.msra.mxu1 %v6441_v21 }
0x238d   :  { %6443 = vmatprep.subr.bf16.mxu1 %v6932_v9 }
0x2390   :  { %6445 = vmatpush3.bf16.msra.mxu1 %v6444_v23 }
0x2391   :  { %v6865_v17 = vpop.eup %6864 }
0x2392   :  { %v6867_v25 = vpop.eup %6866  ;;  %v3743_v28 = vmul.f32 %v6865_v17, %v3727_v1 }
0x2393   :  { %6086 = vmatmul.mubr.msk.f32.vlgmr.msra.gmra.mrb[34].mxu1 %vm159_vm3, %v6912_v18  ;;  %v3742_v29 = vmul.f32 %v6867_v25, %v3726_v4 }
0x2394   :  { %v3749_v30 = vmul.f32 %v7702_v14, %v3743_v28  ;;  %6088 = vmatprep.mubr.msk.f32.mxu1 %vm6933_vm8, %v6916_v22 }
0x2395   :  { %v3748_v31 = vmul.f32 %v7702_v14, %v3742_v29 }
0x2396   :  { %v7732_v38 = vadd.f32 %v3752_v13, %v3749_v30 }
0x2397   :  { %v7726_v9 = vadd.f32 %v3752_v13, %v3748_v31  ;;  %6089 = vmatmul.mubr.msk.f32.gmra.mrb[36].mxu1 %vm159_vm3, %v6913_v34 }
0x2398   :  { %6091 = vmatprep.mubr.msk.f32.mxu1 %vm6933_vm8, %v6916_v22 }
0x2399   :  { %6074 = vmatprep.mubr.msk.f32.mxu0 %vm159_vm3, %v7726_v9 }
0x239a   :  { %6075 = vmatmul.mubr.msk.f32.vlgmr.msra.gmra.mrb[38].mxu0 %vm159_vm3, %v7732_v38 }
0x239b   :  { %6092 = vmatmul.mubr.msk.f32.gmra.mrb[38].mxu1 %vm159_vm3, %v6914_v40 }
0x2466   :  { %v3933_v43 = vpop.f32.mrb[34].mxu1 }
0x2467   :  { %v6087_v33 = vpop.f32.mrb[35].mxu1  ;;  %v3934_v35 = vadd.f32 %v3933_v43, %v3865_v44 }
0x246a   :  { %v3938_v32 = vpop.f32.mrb[36].mxu1 }
0x246b   :  { %v3939_v0 = vadd.f32 %v3938_v32, %v3865_v44  ;;  %v6090_v45 = vpop.f32.mrb[37].mxu1 }
0x246d   :  { %v6076_v22 = vpop.f32.mrb[38].mxu0  ;;  %v7744_v47 = vpack.i.bf16 %v3939_v0, %v3934_v35  ;;  %v6446_v3 = vpack.c.bf16 %v3939_v0, %v3934_v35 }
0x246e   :  { %v3838_v48 = vpop.f32.mrb[39].mxu0  ;;  %v3943_v49 = vpop.f32.mrb[38].mxu1  ;;  %v7764_v51 = vadd.f32 %v6076_v22, %v7713_v42 }
0x246f   :  { %v7747_v53 = vadd.f32 %v7713_v42, %v3838_v48  ;;  %v7749_v50 = vadd.f32 %v3943_v49, %v3865_v44  ;;  %6712 = vrot.lane.b32.xlu1 %v7744_v47, %s6917_s1  ;;  %6448 = vmatprep.subr.msk.bf16.mxu0 %vm7100_vm5, %v6446_v3  ;;  %v6093_v41 = vpop.f32.mrb[39].mxu1 }
0x2470   :  { %6451 = vmatpush3.bf16.xpose.msk.msra.mxu0 %vm7100_vm5, %v6446_v3 }
0x2471   :  { %6100 = vmatprep.mubr.msk.f32.mxu0 %vm247_vm4, %v7747_v53  ;;  %4161 = vrot.lane.b32.xlu0 %v7749_v50, %s6917_s1 }
0x2472   :  { %6098 = vmatprep.subr.msk.mxu0 %vm247_vm4, %v7749_v50 }
0x2473   :  { %4153 = vrot.lane.b32.xlu1 %v7747_v53, %s6917_s1 }
0x2475   :  { %4155 = vrot.lane.b32.xlu0 %v7764_v51, %s6917_s1 }
0x2478   :  { %6099 = vmatpush3.xpose.msk.msra.mxu0 %vm247_vm4, %v7749_v50 }
0x247b   :  { %6101 = vmatmul.mubr.msk.f32.vlgmr.msra.gmra.mrb[40].mxu0 %vm247_vm4, %v7764_v51 }
0x24e1   :  { %v6713_v52 = vpop.permute.xlu1 %6712 }
0x24e2   :  { %v6715_v54 = vunpack.i.h.bf16 %v6713_v52  ;;  %v6714_v56 = vunpack.i.l.bf16 %v6713_v52 }
0x24e3   :  { %v4162_v27 = vpop.permute.xlu0 %4161 }
0x24e4   :  { %v6456_v1 = vpack.c.bf16 %v6715_v54, %v6714_v56 }
0x24e5   :  { %v4154_v4 = vpop.permute.xlu1 %4153 }
0x24e6   :  { %6458 = vmatprep.subr.msk.bf16.mxu0 %vm7100_vm5, %v6456_v1  ;;  %6118 = vmatprep.mubr.msk.f32.mxu0 %vm247_vm4, %v4154_v4 }
0x24e7   :  { %6461 = vmatpush3.bf16.xpose.msk.msra.mxu0 %vm7100_vm5, %v6456_v1  ;;  %v4156_v39 = vpop.permute.xlu0 %4155 }
0x24e8   :  { %6116 = vmatprep.subr.msk.mxu0 %vm247_vm4, %v4162_v27 }
0x24ef   :  { %6117 = vmatpush3.xpose.msk.msra.mxu0 %vm247_vm4, %v4162_v27 }
0x24f2   :  { %6119 = vmatmul.mubr.msk.f32.vlgmr.msra.gmra.mrb[42].mxu0 %vm247_vm4, %v4156_v39 }
0x254e   :  { %v6102_v60 = vpop.f32.mrb[40].mxu0 }
0x254f   :  { %v4038_v36 = vmul.f32 0.35355338, %v6102_v60  ;;  %v4028_v16 = vpop.f32.mrb[41].mxu0 }
0x2550   :  { %v4037_v11 = vmul.f32 0.35355338, %v4028_v16 }
0x2551   :  { %v4040_v63 = vadd.f32 %v4038_v36, %v7341_v20 }
0x2552   :  { %v4039_v5 = vadd.f32 %v4037_v11, %v7343_v24 }
0x2553   :  { %v4044_v58 = vsel %vm1093_vm7, %v4040_v63, -inf }
0x2554   :  { %4045 = vmax.xlane.f32.xlu0 %v4044_v58  ;;  %v4041_v37 = vsel %vm1093_vm7, %v4039_v5, -inf }
0x2555   :  { %4042 = vmax.xlane.f32.xlu1 %v4041_v37 }
0x25c5   :  { %v6120_v2 = vpop.f32.mrb[42].mxu0 }
0x25c6   :  { %v4249_v8 = vmul.f32 0.35355338, %v6120_v2  ;;  %v4239_v57 = vpop.f32.mrb[43].mxu0 }
0x25c7   :  { %v4248_v61 = vmul.f32 0.35355338, %v4239_v57 }
0x25c8   :  { %v4251_v15 = vadd.f32 %v4249_v8, %v7341_v20 }
0x25c9   :  { %v4250_v7 = vadd.f32 %v4248_v61, %v7343_v24 }
0x25ca   :  { %v4255_v26 = vsel %vm1093_vm7, %v4251_v15, -inf }
0x25cb   :  { %4256 = vmax.xlane.f32.xlu1 %v4255_v26  ;;  %v4252_v6 = vsel %vm1093_vm7, %v4250_v7, -inf }
0x25cc   :  { %4253 = vmax.xlane.f32.xlu0 %v4252_v6 }
0x25dc   :  { %4067 = vrot.lane.b32.xlu1 %v7749_v50, %s6918_s25 }
0x25e0   :  { %6722 = vrot.lane.b32.xlu1 %v7744_v47, %s6919_s26 }
0x25e1   :  { %v4046_v10 = vpop.xlane.xlu0 %4045 }
0x25e2   :  { %6717 = vrot.lane.b32.xlu0 %v7744_v47, %s6918_s25  ;;  %v4043_v59 = vpop.xlane.xlu1 %4042  ;;  %v4048_v12 = vsub.f32 %v4040_v63, %v4046_v10 }
0x25e3   :  { %v4047_v19 = vsub.f32 %v4039_v5, %v4043_v59 }
0x25e4   :  { %v4051_v23 = vmul.f32 1.442695, %v4048_v12 }
0x25e5   :  { %v4049_v21 = vmul.f32 1.442695, %v4047_v19 }
0x25e7   :  { %6868 = vpow2.f32 %v4049_v21 }
0x25e8   :  { %6870 = vpow2.f32 %v4051_v23 }
0x25f1   :  { %v6869_v17 = vpop.eup %6868 }
0x25f2   :  { %v6871_v25 = vpop.eup %6870  ;;  %v4053_v28 = vsel %vm1093_vm7, %v6869_v17, 0.0 }
0x25f3   :  { %v4056_v18 = vsel %vm1093_vm7, %v6871_v25, 0.0 }
0x2601   :  { %4054 = vadd.xlane.f32.xlu0 %v4053_v28 }
0x2604   :  { %4057 = vadd.xlane.f32.xlu1 %v4056_v18 }
0x2658   :  { %v4257_v29 = vpop.xlane.xlu1 %4256 }
0x2659   :  { %v4259_v30 = vsub.f32 %v4251_v15, %v4257_v29  ;;  %v4254_v13 = vpop.xlane.xlu0 %4253 }
0x265a   :  { %v4258_v31 = vsub.f32 %v4250_v7, %v4254_v13 }
0x265b   :  { %v4262_v34 = vmul.f32 1.442695, %v4259_v30 }
0x265c   :  { %v4260_v40 = vmul.f32 1.442695, %v4258_v31  ;;  %v4068_v43 = vpop.permute.xlu1 %4067 }
0x265d   :  { %6872 = vpow2.f32 %v4262_v34  ;;  %v6718_v33 = vpop.permute.xlu0 %6717 }
0x265e   :  { %6874 = vpow2.f32 %v4260_v40  ;;  %v6720_v44 = vunpack.i.h.bf16 %v6718_v33  ;;  %v6719_v32 = vunpack.i.l.bf16 %v6718_v33 }
0x2660   :  { %v6452_v35 = vpack.c.bf16 %v6720_v44, %v6719_v32  ;;  %v6723_v0 = vpop.permute.xlu1 %6722 }
0x2661   :  { %v6725_v45 = vunpack.i.h.bf16 %v6723_v0  ;;  %v6724_v22 = vunpack.i.l.bf16 %v6723_v0 }
0x2662   :  { %6453 = vmatprep.subr.bf16.mxu1 %v6452_v35 }
0x2663   :  { %6455 = vmatpush3.bf16.msra.mxu1 %v6452_v35  ;;  %v6462_v3 = vpack.c.bf16 %v6725_v45, %v6724_v22 }
0x2664   :  { %6107 = vmatprep.subr.mxu1 %v4068_v43 }
0x2667   :  { %v6873_v48 = vpop.eup %6872  ;;  %6108 = vmatpush3.msra.mxu1 %v4068_v43 }
0x2668   :  { %v6875_v49 = vpop.eup %6874  ;;  %6463 = vmatprep.subr.bf16.mxu1 %v6462_v3  ;;  %v4267_v41 = vsel %vm1093_vm7, %v6873_v48, 0.0 }
0x2669   :  { %4268 = vadd.xlane.f32.xlu1 %v4267_v41  ;;  %v4264_v52 = vsel %vm1093_vm7, %v6875_v49, 0.0 }
0x266a   :  { %4265 = vadd.xlane.f32.xlu0 %v4264_v52 }
0x267a   :  { %6727 = vrot.lane.b32.xlu1 %v7744_v47, %s6924_s0 }
0x267e   :  { %4364 = vrot.lane.b32.xlu1 %v7747_v53, %s6924_s0 }
0x2680   :  { %4278 = vrot.lane.b32.xlu0 %v7749_v50, %s6919_s26 }
0x2684   :  { %4372 = vrot.lane.b32.xlu0 %v7749_v50, %s6924_s0 }
0x2688   :  { %4366 = vrot.lane.b32.xlu0 %v7764_v51, %s6924_s0 }
0x268e   :  { %v4055_v54 = vpop.xlane.xlu0 %4054 }
0x268f   :  { %6876 = vrcp.f32 %v4055_v54 }
0x2691   :  { %v4058_v56 = vpop.xlane.xlu1 %4057 }
0x2692   :  { %6878 = vrcp.f32 %v4058_v56 }
0x2699   :  { %v6877_v1 = vpop.eup %6876 }
0x269a   :  { %v4061_v4 = vmul.f32 %v6877_v1, %v6869_v17 }
0x269c   :  { %v6879_v27 = vpop.eup %6878  ;;  %6109 = vmatprep.mubr.msk.f32.mxu1 %vm1093_vm7, %v4061_v4 }
0x269d   :  { %v4062_v39 = vmul.f32 %v6879_v27, %v6871_v25 }
0x269f   :  { %6110 = vmatmul.mubr.msk.f32.vlgmr.msra.gmra.mrb[40].mxu1 %vm1093_vm7, %v4062_v39 }
0x26a0   :  { %6465 = vmatpush3.bf16.msra.mxu1 %v6462_v3 }
0x26f6   :  { %v4269_v60 = vpop.xlane.xlu1 %4268 }
0x26f7   :  { %6880 = vrcp.f32 %v4269_v60  ;;  %v4266_v36 = vpop.xlane.xlu0 %4265 }
0x26f8   :  { %6882 = vrcp.f32 %v4266_v36 }
0x26fa   :  { %v6728_v16 = vpop.permute.xlu1 %6727 }
0x26fb   :  { %v6730_v11 = vunpack.i.h.bf16 %v6728_v16  ;;  %v6729_v63 = vunpack.i.l.bf16 %v6728_v16  ;;  %v4279_v5 = vpop.permute.xlu0 %4278 }
0x26fc   :  { %6125 = vmatprep.subr.mxu1 %v4279_v5 }
0x26fd   :  { %v6466_v58 = vpack.c.bf16 %v6730_v11, %v6729_v63  ;;  %6126 = vmatpush3.msra.mxu1 %v4279_v5 }
0x26fe   :  { %v4365_v61 = vpop.permute.xlu1 %4364 }
0x26ff   :  { %6468 = vmatprep.subr.msk.bf16.mxu1 %vm7100_vm5, %v6466_v58  ;;  %v4373_v15 = vpop.permute.xlu0 %4372 }
0x2701   :  { %v6881_v37 = vpop.eup %6880 }
0x2702   :  { %v6883_v2 = vpop.eup %6882  ;;  %v4273_v57 = vmul.f32 %v6881_v37, %v6873_v48 }
0x2703   :  { %v4272_v8 = vmul.f32 %v6883_v2, %v6875_v49  ;;  %v4367_v7 = vpop.permute.xlu0 %4366 }
0x2705   :  { %6127 = vmatprep.mubr.msk.f32.mxu1 %vm1093_vm7, %v4272_v8 }
0x2706   :  { %6128 = vmatmul.mubr.msk.f32.vlgmr.msra.gmra.mrb[42].mxu1 %vm1093_vm7, %v4273_v57 }
0x2707   :  { %6471 = vmatpush3.bf16.xpose.msk.msra.mxu1 %vm7100_vm5, %v6466_v58  ;;  %6136 = vmatprep.mubr.msk.f32.mxu1 %vm247_vm4, %v4365_v61 }
0x2708   :  { %6134 = vmatprep.subr.msk.mxu1 %vm247_vm4, %v4373_v15 }
0x270f   :  { %6135 = vmatpush3.xpose.msk.msra.mxu1 %vm247_vm4, %v4373_v15 }
0x2712   :  { %6137 = vmatmul.mubr.msk.f32.vlgmr.msra.gmra.mrb[44].mxu1 %vm247_vm4, %v4367_v7 }
0x2772   :  { %v7822_v26 = vpop.f32.mrb[40].mxu1 }
0x2773   :  { %v7824_v6 = vpop.f32.mrb[41].mxu1 }
0x27d9   :  { %v7826_v59 = vpop.f32.mrb[42].mxu1 }
0x27da   :  { %v7828_v10 = vpop.f32.mrb[43].mxu1 }
0x27e5   :  { %v6138_v19 = vpop.f32.mrb[44].mxu1 }
0x27e6   :  { %v4460_v12 = vmul.f32 0.35355338, %v6138_v19  ;;  %v4450_v21 = vpop.f32.mrb[45].mxu1 }
0x27e7   :  { %v4459_v23 = vmul.f32 0.35355338, %v4450_v21 }
0x27e8   :  { %v4462_v17 = vadd.f32 %v4460_v12, %v7341_v20 }
0x27e9   :  { %v4461_v25 = vadd.f32 %v4459_v23, %v7343_v24 }
0x27ea   :  { %v4466_v28 = vsel %vm1093_vm7, %v4462_v17, -inf }
0x27eb   :  { %4467 = vmax.xlane.f32.xlu0 %v4466_v28  ;;  %v4463_v18 = vsel %vm1093_vm7, %v4461_v25, -inf }
0x27ec   :  { %4464 = vmax.xlane.f32.xlu1 %v4463_v18 }
0x2878   :  { %v4468_v29 = vpop.xlane.xlu0 %4467 }
0x2879   :  { %v4470_v30 = vsub.f32 %v4462_v17, %v4468_v29  ;;  %v4465_v13 = vpop.xlane.xlu1 %4464 }
0x287a   :  { %v4469_v31 = vsub.f32 %v4461_v25, %v4465_v13 }
0x287b   :  { %v4473_v34 = vmul.f32 1.442695, %v4470_v30 }
0x287c   :  { %v4471_v40 = vmul.f32 1.442695, %v4469_v31 }
0x287d   :  { %6884 = vpow2.f32 %v4473_v34 }
0x287e   :  { %6886 = vpow2.f32 %v4471_v40 }
0x2887   :  { %v6885_v43 = vpop.eup %6884 }
0x2888   :  { %v6887_v33 = vpop.eup %6886  ;;  %v4478_v44 = vsel %vm1093_vm7, %v6885_v43, 0.0 }
0x2889   :  { %4479 = vadd.xlane.f32.xlu1 %v4478_v44  ;;  %v4475_v32 = vsel %vm1093_vm7, %v6887_v33, 0.0 }
0x288a   :  { %4476 = vadd.xlane.f32.xlu0 %v4475_v32 }
0x289a   :  { %4489 = vrot.lane.b32.xlu1 %v7749_v50, %s6921_s28 }
0x289e   :  { %6737 = vrot.lane.b32.xlu1 %v7744_v47, %s6925_s11 }
0x28a0   :  { %6732 = vrot.lane.b32.xlu0 %v7744_v47, %s6921_s28 }
0x28a2   :  { %4575 = vrot.lane.b32.xlu1 %v7747_v53, %s6925_s11 }
0x28a4   :  { %4583 = vrot.lane.b32.xlu0 %v7749_v50, %s6925_s11 }
0x28a8   :  { %4577 = vrot.lane.b32.xlu0 %v7764_v51, %s6925_s11 }
0x2916   :  { %v4480_v35 = vpop.xlane.xlu1 %4479 }
0x2917   :  { %6888 = vrcp.f32 %v4480_v35  ;;  %v4477_v0 = vpop.xlane.xlu0 %4476 }
0x2918   :  { %6890 = vrcp.f32 %v4477_v0 }
0x291a   :  { %v4490_v45 = vpop.permute.xlu1 %4489 }
0x291b   :  { %v6733_v22 = vpop.permute.xlu0 %6732 }
0x291c   :  { %v6735_v3 = vunpack.i.h.bf16 %v6733_v22  ;;  %v6734_v48 = vunpack.i.l.bf16 %v6733_v22 }
0x291e   :  { %v6472_v49 = vpack.c.bf16 %v6735_v3, %v6734_v48  ;;  %v6738_v41 = vpop.permute.xlu1 %6737 }
0x291f   :  { %v6740_v52 = vunpack.i.h.bf16 %v6738_v41  ;;  %v6739_v54 = vunpack.i.l.bf16 %v6738_v41  ;;  %v4584_v39 = vpop.permute.xlu0 %4583 }
0x2920   :  { %6473 = vmatprep.subr.bf16.mxu0 %v6472_v49 }
0x2921   :  { %v6889_v53 = vpop.eup %6888  ;;  %6475 = vmatpush3.bf16.msra.mxu0 %v6472_v49  ;;  %v6476_v51 = vpack.c.bf16 %v6740_v52, %v6739_v54 }
0x2922   :  { %v6891_v56 = vpop.eup %6890  ;;  %6143 = vmatprep.subr.mxu0 %v4490_v45  ;;  %v4484_v4 = vmul.f32 %v6889_v53, %v6885_v43  ;;  %v4576_v27 = vpop.permute.xlu1 %4575 }
0x2923   :  { %v4483_v1 = vmul.f32 %v6891_v56, %v6887_v33  ;;  %v4578_v60 = vpop.permute.xlu0 %4577 }
0x2925   :  { %6144 = vmatpush3.msra.mxu0 %v4490_v45  ;;  %6145 = vmatprep.mubr.msk.f32.mxu0 %vm1093_vm7, %v4483_v1 }
0x2926   :  { %6146 = vmatmul.mubr.msk.f32.vlgmr.msra.gmra.mrb[44].mxu0 %vm1093_vm7, %v4484_v4  ;;  %6478 = vmatprep.subr.msk.bf16.mxu0 %vm7100_vm5, %v6476_v51 }
0x2927   :  { %6154 = vmatprep.mubr.msk.f32.mxu0 %vm247_vm4, %v4576_v27 }
0x292c   :  { %6481 = vmatpush3.bf16.xpose.msk.msra.mxu0 %vm7100_vm5, %v6476_v51 }
0x292d   :  { %6152 = vmatprep.subr.msk.mxu0 %vm247_vm4, %v4584_v39 }
0x2934   :  { %6153 = vmatpush3.xpose.msk.msra.mxu0 %vm247_vm4, %v4584_v39 }
0x2937   :  { %6155 = vmatmul.mubr.msk.f32.vlgmr.msra.gmra.mrb[46].mxu0 %vm247_vm4, %v4578_v60 }
0x29f9   :  { %v6147_v36 = vpop.f32.mrb[44].mxu0 }
0x29fa   :  { %v4566_v16 = vpop.f32.mrb[45].mxu0 }
0x2a0a   :  { %v6156_v11 = vpop.f32.mrb[46].mxu0 }
0x2a0b   :  { %v4671_v63 = vmul.f32 0.35355338, %v6156_v11  ;;  %v4661_v5 = vpop.f32.mrb[47].mxu0 }
0x2a0c   :  { %v4670_v58 = vmul.f32 0.35355338, %v4661_v5 }
0x2a0d   :  { %v4673_v37 = vadd.f32 %v4671_v63, %v7341_v20 }
0x2a0e   :  { %v4672_v2 = vadd.f32 %v4670_v58, %v7343_v24 }
0x2a0f   :  { %v4677_v46 = vsel %vm1093_vm7, %v4673_v37, -inf }
0x2a10   :  { %4678 = vmax.xlane.f32.xlu0 %v4677_v46  ;;  %v4674_v8 = vsel %vm1093_vm7, %v4672_v2, -inf }
0x2a11   :  { %4675 = vmax.xlane.f32.xlu1 %v4674_v8  ;;  %v5474_v8 = vld [vmem:[%s7994_s6 + $0x20] sm:$0xff] }
0x2a9d   :  { %v4679_v57 = vpop.xlane.xlu0 %4678 }
0x2a9e   :  { %v4681_v61 = vsub.f32 %v4673_v37, %v4679_v57  ;;  %v4676_v15 = vpop.xlane.xlu1 %4675  ;;  %v5475_v57 = vld [vmem:[%s7994_s6 + $0x28] sm:$0xff] }
0x2a9f   :  { %v4680_v7 = vsub.f32 %v4672_v2, %v4676_v15  ;;  %v5476_v15 = vld [vmem:[%s7994_s6 + $0x30] sm:$0xff] }
0x2aa0   :  { %v4684_v19 = vmul.f32 1.442695, %v4681_v61  ;;  %v6494_v61 = vpack.c.bf16 %v5475_v57, %v5474_v8 }
0x2aa1   :  { %v4682_v12 = vmul.f32 1.442695, %v4680_v7  ;;  %v5477_v7 = vld [vmem:[%s7994_s6 + $0x38] sm:$0xff] }
0x2aa2   :  { %6892 = vpow2.f32 %v4684_v19  ;;  %6495 = vmatprep.subr.bf16.mxu0 %v6494_v61  ;;  %v5481_v19 = vld [vmem:[%s7995_s7 + $0x40] sm:$0xff] }
0x2aa3   :  { %6894 = vpow2.f32 %v4682_v12  ;;  %6497 = vmatpush3.bf16.msra.mxu0 %v6494_v61  ;;  %v5482_v12 = vld [vmem:[%s7995_s7 + $0x48] sm:$0xff] }
0x2aac   :  { %v6893_v21 = vpop.eup %6892 }
0x2aad   :  { %v6895_v23 = vpop.eup %6894  ;;  %v4689_v20 = vsel %vm1093_vm7, %v6893_v21, 0.0 }
0x2aae   :  { %4690 = vadd.xlane.f32.xlu1 %v4689_v20  ;;  %v4686_v24 = vsel %vm1093_vm7, %v6895_v23, 0.0  ;;  %v5484_v20 = vld [vmem:[%s7995_s7 + $0x58] sm:$0xff] }
0x2aaf   :  { %4687 = vadd.xlane.f32.xlu0 %v4686_v24 }
0x2abf   :  { %4700 = vrot.lane.b32.xlu1 %v7749_v50, %s6922_s29 }
0x2ac3   :  { %6747 = vrot.lane.b32.xlu1 %v7704_v55, %s6927_s13 }
0x2ac5   :  { %6742 = vrot.lane.b32.xlu0 %v7744_v47, %s6922_s29 }
0x2ac7   :  { %4788 = vrot.lane.b32.xlu1 %v7828_v10, %s6929_s15 }
0x2ac9   :  { %6752 = vrot.lane.b32.xlu0 %v7689_v62, %s6927_s13 }
0x2acb   :  { %4796 = vrot.lane.b32.xlu1 %v4566_v16, %s6930_s3 }
0x2acd   :  { %4790 = vrot.lane.b32.xlu0 %v7826_v59, %s6929_s15 }
0x2ad1   :  { %4798 = vrot.lane.b32.xlu0 %v6147_v36, %s6930_s3 }
0x2b3b   :  { %v4691_v50 = vpop.xlane.xlu1 %4690 }
0x2b3c   :  { %6896 = vrcp.f32 %v4691_v50  ;;  %v4688_v17 = vpop.xlane.xlu0 %4687  ;;  %v5485_v50 = vld [vmem:[%s7995_s7 + $0x60] sm:$0xff] }
0x2b3d   :  { %6898 = vrcp.f32 %v4688_v17  ;;  %v5486_v17 = vld [vmem:[%s7995_s7 + $0x68] sm:$0xff] }
0x2b3f   :  { %v4701_v55 = vpop.permute.xlu1 %4700 }
0x2b40   :  { %v6743_v25 = vpop.permute.xlu0 %6742 }
0x2b41   :  { %v6745_v47 = vunpack.i.h.bf16 %v6743_v25  ;;  %v6744_v28 = vunpack.i.l.bf16 %v6743_v25 }
0x2b43   :  { %v6482_v18 = vpack.c.bf16 %v6745_v47, %v6744_v28  ;;  %v6748_v10 = vpop.permute.xlu1 %6747 }
0x2b44   :  { %v6750_v29 = vunpack.i.h.bf16 %v6748_v10  ;;  %v6749_v30 = vunpack.i.l.bf16 %v6748_v10  ;;  %v6753_v62 = vpop.permute.xlu0 %6752 }
0x2b45   :  { %v6755_v13 = vunpack.i.h.bf16 %v6753_v62  ;;  %v6754_v31 = vunpack.i.l.bf16 %v6753_v62  ;;  %6483 = vmatprep.subr.bf16.mxu1 %v6482_v18 }
0x2b46   :  { %v6897_v34 = vpop.eup %6896  ;;  %6485 = vmatpush3.bf16.msra.mxu1 %v6482_v18  ;;  %v6486_v40 = vpack.c.bf16 %v6750_v29, %v6749_v30 }
0x2b47   :  { %v6899_v59 = vpop.eup %6898  ;;  %6161 = vmatprep.subr.mxu1 %v4701_v55  ;;  %v4695_v33 = vmul.f32 %v6897_v34, %v6893_v21  ;;  %v6490_v44 = vpack.c.bf16 %v6755_v13, %v6754_v31  ;;  %v4789_v45 = vpop.permute.xlu1 %4788  ;;  %v5483_v21 = vld [vmem:[%s7995_s7 + $0x50] sm:$0xff] }
0x2b48   :  { %v4694_v43 = vmul.f32 %v6899_v59, %v6895_v23  ;;  %v4791_v0 = vpop.permute.xlu0 %4790  ;;  %v4810_v48 = vsel %vm247_vm4, %v7824_v6, %v4789_v45  ;;  %v6502_v23 = vpack.c.bf16 %v5482_v12, %v5481_v19  ;;  %v6506_v24 = vpack.c.bf16 %v5484_v20, %v5483_v21  ;;  %v5489_v45 = vld [vmem:[%s7992_s8 + $0x4] ss:$0 sm:$0xff] }
0x2b49   :  { %v4811_v41 = vsel %vm247_vm4, %v7822_v26, %v4791_v0 }
0x2b4a   :  { %6162 = vmatpush3.msra.mxu1 %v4701_v55  ;;  %6163 = vmatprep.mubr.msk.f32.mxu1 %vm1093_vm7, %v4694_v43  ;;  %v6510_v55 = vpack.c.bf16 %v5486_v17, %v5485_v50 }
0x2b4b   :  { %6164 = vmatmul.mubr.msk.f32.vlgmr.msra.gmra.mrb[46].mxu1 %vm1093_vm7, %v4695_v33  ;;  %6487 = vmatprep.subr.bf16.mxu1 %v6486_v40  ;;  %v4797_v3 = vpop.permute.xlu1 %4796 }
0x2b4c   :  { %6489 = vmatpush3.bf16.msra.mxu1 %v6486_v40  ;;  %v4799_v22 = vpop.permute.xlu0 %4798  ;;  %v4812_v52 = vsel %vm343_vm6, %v4810_v48, %v4797_v3 }
0x2b4d   :  { %6491 = vmatprep.subr.bf16.mxu1 %v6490_v44  ;;  %v4813_v53 = vsel %vm343_vm6, %v4811_v41, %v4799_v22  ;;  %v5478_v22 = vld [vmem:[%s7992_s8 + $0x5] ss:$0 sm:$0xff] }
0x2b50   :  { %6493 = vmatpush3.bf16.msra.mxu1 %v6490_v44 }
0x2b51   :  { %6503 = vmatprep.subr.bf16.mxu1 %v6502_v23 }
0x2c1e   :  { %v6165_v32 = vpop.f32.mrb[46].mxu1 }
0x2c1f   :  { %4806 = vrot.lane.b32.xlu0 %v6165_v32, %s8004_s12  ;;  %v4777_v35 = vpop.f32.mrb[47].mxu1  ;;  %v5487_v32 = vld [vmem:[%s7995_s7 + $0x70] sm:$0xff] }
0x2c20   :  { %4804 = vrot.lane.b32.xlu1 %v4777_v35, %s8004_s12  ;;  %v5488_v35 = vld [vmem:[%s7995_s7 + $0x78] sm:$0xff] }
0x2c21   :  { %v6514_v0 = vpack.c.bf16 %v5488_v35, %v5487_v32 }
0x2c24   :  { %4828 = vrot.lane.b32.xlu1 %v7713_v42, %s6927_s13 }
0x2c91   :  { %v4807_v49 = vpop.permute.xlu0 %4806 }
0x2c92   :  { %v4805_v54 = vpop.permute.xlu1 %4804  ;;  %v4815_v42 = vsel %vm1093_vm7, %v4813_v53, %v4807_v49 }
0x2c93   :  { %v4814_v56 = vsel %vm1093_vm7, %v4812_v52, %v4805_v54 }
0x2c94   :  { %6174 = vmatprep.mubr.msk.f32.mxu1 %vm159_vm3, %v4814_v56 }
0x2c95   :  { %6175 = vmatmul.mubr.msk.f32.vlgmr.msra.gmra.mrb[48].mxu1 %vm159_vm3, %v4815_v42 }
0x2c96   :  { %v4829_v1 = vpop.permute.xlu1 %4828  ;;  %6505 = vmatpush3.bf16.msra.mxu1 %v6502_v23 }
0x2c97   :  { %6507 = vmatprep.subr.bf16.mxu1 %v6506_v24 }
0x2c9a   :  { %6509 = vmatpush3.bf16.msra.mxu1 %v6506_v24 }
0x2c9b   :  { %6511 = vmatprep.subr.bf16.mxu1 %v6510_v55 }
0x2c9e   :  { %6513 = vmatpush3.bf16.msra.mxu1 %v6510_v55 }
0x2c9f   :  { %6515 = vmatprep.subr.bf16.mxu1 %v6514_v0 }
0x2ca2   :  { %6517 = vmatpush3.bf16.msra.mxu1 %v6514_v0 }
0x2d68   :  { %v6176_v4 = vpop.f32.mrb[48].mxu1 }
0x2d69   :  { %v4909_v6 = vadd.f32 %v6176_v4, %v4829_v1  ;;  %v4903_v51 = vpop.f32.mrb[49].mxu1 }
0x2d6a   :  { %v4904_v27 = vadd.f32 %v4903_v51, %v4829_v1 }
0x2d6b   :  { %v4913_v26 = vadd.f32 %v4909_v6, %v7732_v38 }
0x2d6c   :  { %v4912_v39 = vadd.f32 %v4904_v27, %v7726_v9 }
0x2d6d   :  { %v4918_v60 = vsel %vm159_vm3, %v4913_v26, 0.0 }
0x2d6e   :  { %4919 = vadd.xlane.f32.xlu1 %v4918_v60  ;;  %v4915_v36 = vsel %vm159_vm3, %v4912_v39, 0.0 }
0x2d6f   :  { %4916 = vadd.xlane.f32.xlu0 %v4915_v36 }
0x2d7f   :  { %4946 = vrot.lane.b32.xlu1 %v7702_v14, %s6920_s27 }
0x2d83   :  { %5064 = vrot.lane.b32.xlu1 %v5489_v45, %s6920_s27 }
0x2dfb   :  { %v4920_v16 = vpop.xlane.xlu1 %4919 }
0x2dfc   :  { %v4922_v11 = vmul.f32 0.03125, %v4920_v16  ;;  %v4917_v63 = vpop.xlane.xlu0 %4916 }
0x2dfd   :  { %v4921_v5 = vmul.f32 0.03125, %v4917_v63 }
0x2dfe   :  { %v4924_v58 = vsub.f32 %v4913_v26, %v4922_v11 }
0x2dff   :  { %v4923_v37 = vsub.f32 %v4912_v39, %v4921_v5  ;;  %v4947_v62 = vpop.permute.xlu1 %4946 }
0x2e00   :  { %v4926_v46 = vmul.f32 %v4924_v58, %v4924_v58 }
0x2e01   :  { %v4925_v2 = vmul.f32 %v4923_v37, %v4923_v37 }
0x2e02   :  { %v4930_v9 = vsel %vm159_vm3, %v4926_v46, 0.0 }
0x2e03   :  { %v4927_v38 = vsel %vm159_vm3, %v4925_v2, 0.0  ;;  %v5065_v53 = vpop.permute.xlu1 %5064 }
0x2e04   :  { %4928 = vadd.xlane.f32.xlu0 %v4927_v38 }
0x2e08   :  { %4931 = vadd.xlane.f32.xlu0 %v4930_v9 }
0x2e1e   :  { %4951 = vrot.lane.b32.xlu0 %v7702_v14, %s6927_s13  ;;  %v6498_v14 = vpack.c.bf16 %v5477_v7, %v5476_v15 }
0x2e20   :  { %6499 = vmatprep.subr.bf16.mxu0 %v6498_v14 }
0x2e21   :  { %6501 = vmatpush3.bf16.msra.mxu0 %v6498_v14 }
0x2e91   :  { %v4929_v25 = vpop.xlane.xlu0 %4928 }
0x2e92   :  { %v4933_v47 = vmul.f32 0.03125, %v4929_v25 }
0x2e94   :  { %v4935_v28 = vadd.f32 1e-05, %v4933_v47 }
0x2e95   :  { %v4932_v18 = vpop.xlane.xlu0 %4931 }
0x2e96   :  { %6900 = vrsqrt.f32 %v4935_v28  ;;  %v4934_v10 = vmul.f32 0.03125, %v4932_v18 }
0x2e98   :  { %v4936_v29 = vadd.f32 1e-05, %v4934_v10 }
0x2e99   :  { %v4952_v31 = vpop.permute.xlu0 %4951 }
0x2e9a   :  { %6902 = vrsqrt.f32 %v4936_v29 }
0x2ea0   :  { %v6901_v30 = vpop.eup %6900 }
0x2ea1   :  { %v4939_v13 = vmul.f32 %v6901_v30, %v4923_v37 }
0x2ea3   :  { %v4949_v34 = vmul.f32 %v4947_v62, %v4939_v13 }
0x2ea4   :  { %v6903_v59 = vpop.eup %6902 }
0x2ea5   :  { %v4940_v40 = vmul.f32 %v6903_v59, %v4924_v58  ;;  %v4954_v43 = vadd.f32 %v4952_v31, %v4949_v34  ;;  %v5222_v34 = vld [vmem:[%s7996_s9] sm:$0xff]  ;;  %v5223_v59 = vld [vmem:[%s7996_s9 + $0x8] sm:$0xff] }
0x2ea7   :  { %v4950_v33 = vmul.f32 %v4947_v62, %v4940_v40  ;;  %6185 = vmatprep.mubr.msk.f32.mxu0 %vm159_vm3, %v4954_v43  ;;  %v6518_v40 = vpack.c.bf16 %v5223_v59, %v5222_v34 }
0x2ea9   :  { %v4955_v44 = vadd.f32 %v4952_v31, %v4950_v33  ;;  %v5492_v31 = vld [vmem:[%s7992_s8 + $0x6] ss:$0 sm:$0xff]  ;;  %6519 = vmatprep.subr.bf16.mxu0 %v6518_v40  ;;  %v5225_v33 = vld [vmem:[%s7996_s9 + $0x18] sm:$0xff] }
0x2eab   :  { %6186 = vmatmul.mubr.msk.f32.vlgmr.msra.gmra.mrb[48].mxu0 %vm159_vm3, %v4955_v44 }
0x2eac   :  { %6521 = vmatpush3.bf16.msra.mxu0 %v6518_v40 }
0x2f7e   :  { %v6187_v3 = vpop.f32.mrb[48].mxu0 }
0x2f7f   :  { %v5044_v48 = vadd.f32 %v6187_v3, %v5478_v22  ;;  %v5038_v49 = vpop.f32.mrb[49].mxu0 }
0x2f80   :  { %v5039_v41 = vadd.f32 %v5478_v22, %v5038_v49 }
0x2f81   :  { %v5048_v54 = vmax.f32 %v5044_v48, 0.0 }
0x2f82   :  { %v5047_v52 = vmax.f32 %v5039_v41, 0.0 }
0x2f84   :  { %6204 = vmatprep.mubr.msk.f32.mxu1 %vm61_vm0, %v5047_v52 }
0x2f85   :  { %6205 = vmatmul.mubr.msk.f32.vlgmr.msra.gmra.mrb[50].mxu1 %vm61_vm0, %v5048_v54 }
0x3058   :  { %v6206_v56 = vpop.f32.mrb[50].mxu1 }
0x3059   :  { %v5145_v42 = vadd.f32 %v6206_v56, %v5065_v53  ;;  %v5139_v1 = vpop.f32.mrb[51].mxu1 }
0x305a   :  { %v5140_v4 = vadd.f32 %v5139_v1, %v5065_v53 }
0x305b   :  { %v5149_v6 = vadd.f32 %v5145_v42, %v4955_v44 }
0x305c   :  { %v5148_v51 = vadd.f32 %v5140_v4, %v4954_v43  ;;  %v5224_v43 = vld [vmem:[%s7996_s9 + $0x10] sm:$0xff]  ;;  %v5493_v4 = vld [vmem:[%s7992_s8 + $0x7] ss:$0 sm:$0xff] }
0x305d   :  { %v5153_v27 = vsel %vm159_vm3, %v5149_v6, 0.0  ;;  %v6522_v44 = vpack.c.bf16 %v5225_v33, %v5224_v43 }
0x305e   :  { %5154 = vadd.xlane.f32.xlu0 %v5153_v27  ;;  %v5150_v26 = vsel %vm159_vm3, %v5148_v51, 0.0 }
0x305f   :  { %5151 = vadd.xlane.f32.xlu1 %v5150_v26  ;;  %6523 = vmatprep.subr.bf16.mxu0 %v6522_v44 }
0x3060   :  { %6525 = vmatpush3.bf16.msra.mxu0 %v6522_v44 }
0x30eb   :  { %v5155_v39 = vpop.xlane.xlu0 %5154 }
0x30ec   :  { %v5157_v60 = vmul.f32 0.03125, %v5155_v39  ;;  %v5152_v36 = vpop.xlane.xlu1 %5151 }
0x30ed   :  { %v5156_v16 = vmul.f32 0.03125, %v5152_v36 }
0x30ee   :  { %v5159_v11 = vsub.f32 %v5149_v6, %v5157_v60 }
0x30ef   :  { %v5158_v63 = vsub.f32 %v5148_v51, %v5156_v16 }
0x30f0   :  { %v5161_v5 = vmul.f32 %v5159_v11, %v5159_v11 }
0x30f1   :  { %v5160_v58 = vmul.f32 %v5158_v63, %v5158_v63 }
0x30f2   :  { %v5165_v37 = vsel %vm159_vm3, %v5161_v5, 0.0 }
0x30f3   :  { %5166 = vadd.xlane.f32.xlu1 %v5165_v37  ;;  %v5162_v2 = vsel %vm159_vm3, %v5160_v58, 0.0 }
0x30f4   :  { %5163 = vadd.xlane.f32.xlu0 %v5162_v2 }
0x310a   :  { %5178 = vrot.lane.b32.xlu0 %v5489_v45, %s6918_s25 }
0x3180   :  { %v5167_v38 = vpop.xlane.xlu1 %5166 }
0x3181   :  { %v5169_v46 = vmul.f32 0.03125, %v5167_v38  ;;  %v5164_v9 = vpop.xlane.xlu0 %5163 }
0x3182   :  { %v5168_v8 = vmul.f32 0.03125, %v5164_v9 }
0x3183   :  { %v5171_v57 = vadd.f32 1e-05, %v5169_v46 }
0x3184   :  { %v5170_v61 = vadd.f32 1e-05, %v5168_v8 }
0x3185   :  { %6904 = vrsqrt.f32 %v5171_v57  ;;  %v5179_v12 = vpop.permute.xlu0 %5178 }
0x3186   :  { %6906 = vrsqrt.f32 %v5170_v61 }
0x318f   :  { %v6905_v15 = vpop.eup %6904 }
0x3190   :  { %v6907_v7 = vpop.eup %6906  ;;  %v5175_v14 = vmul.f32 %v6905_v15, %v5159_v11 }
0x3191   :  { %v5174_v19 = vmul.f32 %v6907_v7, %v5158_v63 }
0x3192   :  { %v5177_v23 = vmul.f32 %v5489_v45, %v5175_v14 }
0x3193   :  { %v5176_v21 = vmul.f32 %v5489_v45, %v5174_v19 }
0x3194   :  { %v5182_v24 = vadd.f32 %v5179_v12, %v5177_v23 }
0x3195   :  { %v5181_v20 = vadd.f32 %v5179_v12, %v5176_v21 }
0x3196   :  { %v5187_v17 = vsel %vm159_vm3, %v5182_v24, 0.0 }
0x3197   :  { %v5184_v50 = vsel %vm159_vm3, %v5181_v20, 0.0 }
0x3198   :  { %5185 = vadd.xlane.f32.xlu1 %v5184_v50 }
0x319c   :  { %5188 = vadd.xlane.f32.xlu1 %v5187_v17 }
0x3225   :  { %v5186_v55 = vpop.xlane.xlu1 %5185 }
0x3226   :  { %v5190_v25 = vmul.f32 0.03125, %v5186_v55 }
0x3228   :  { %v5192_v18 = vsub.f32 %v5181_v20, %v5190_v25 }
0x3229   :  { %v5189_v47 = vpop.xlane.xlu1 %5188 }
0x322a   :  { %v5191_v28 = vmul.f32 0.03125, %v5189_v47  ;;  %v5194_v62 = vmul.f32 %v5192_v18, %v5192_v18 }
0x322c   :  { %v5193_v10 = vsub.f32 %v5182_v24, %v5191_v28  ;;  %v5196_v13 = vsel %vm159_vm3, %v5194_v62, 0.0 }
0x322e   :  { %v5195_v29 = vmul.f32 %v5193_v10, %v5193_v10 }
0x3230   :  { %v5199_v30 = vsel %vm159_vm3, %v5195_v29, 0.0 }
0x3231   :  { %5200 = vadd.xlane.f32.xlu1 %v5199_v30 }
0x3235   :  { %5197 = vadd.xlane.f32.xlu1 %v5196_v13 }
0x3246   :  { %5217 = vrot.lane.b32.xlu1 %v5492_v31, %s6918_s25 }
0x32be   :  { %v5201_v32 = vpop.xlane.xlu1 %5200 }
0x32bf   :  { %v5203_v35 = vmul.f32 0.03125, %v5201_v32 }
0x32c1   :  { %v5205_v0 = vadd.f32 1e-05, %v5203_v35 }
0x32c2   :  { %v5198_v45 = vpop.xlane.xlu1 %5197 }
0x32c3   :  { %6908 = vrsqrt.f32 %v5205_v0  ;;  %v5202_v22 = vmul.f32 0.03125, %v5198_v45 }
0x32c5   :  { %v5204_v3 = vadd.f32 1e-05, %v5202_v22 }
0x32c6   :  { %v5218_v56 = vpop.permute.xlu1 %5217 }
0x32c7   :  { %6910 = vrsqrt.f32 %v5204_v3 }
0x32cd   :  { %v6909_v48 = vpop.eup %6908 }
0x32ce   :  { %v5209_v49 = vmul.f32 %v6909_v48, %v5193_v10 }
0x32d0   :  { %v5215_v54 = vmul.f32 %v5492_v31, %v5209_v49 }
0x32d1   :  { %v6911_v41 = vpop.eup %6910 }
0x32d2   :  { %v5208_v52 = vmul.f32 %v6911_v41, %v5192_v18  ;;  %v5221_v1 = vadd.f32 %v5218_v56, %v5215_v54 }
0x32d4   :  { %v5214_v53 = vmul.f32 %v5492_v31, %v5208_v52 }
0x32d6   :  { %v5220_v42 = vadd.f32 %v5218_v56, %v5214_v53 }
0x32d8   :  { %6215 = vmatprep.mubr.msk.f32.mxu0 %vm159_vm3, %v5220_v42 }
0x32d9   :  { %6216 = vmatmul.mubr.msk.f32.vlgmr.msra.gmra.mrb[50].mxu0 %vm159_vm3, %v5221_v1 }
0x33ac   :  { %v6217_v6 = vpop.f32.mrb[50].mxu0 }
0x33ad   :  { %v5309_v51 = vadd.f32 %v6217_v6, %v5493_v4  ;;  %v5303_v27 = vpop.f32.mrb[51].mxu0 }
0x33ae   :  { %v5304_v26 = vadd.f32 %v5493_v4, %v5303_v27 }
0x33af   :  { %5313 = vst [vmem:[%s7997_s10 + $0x8] sm:$0xff] %v5309_v51 }
0x33b0   :  { %5312 = vst [vmem:[%s7997_s10] sm:$0xff] %v5304_v26 }

</bundles_post_ra>
